<compile_context>
chip_gen: v5e
topology: v5e:2x2
jax: 0.10.0
libtpu: 0.0.40
codegen_flags: <defaults>
</compile_context>

<pallas_src>
import jax
import jax.numpy as jnp
from jax.experimental import pallas as pl
from jax.experimental.pallas import tpu as pltpu


# ----------------------------------------------------------------------------
# Fused Pallas kernel: conv3x3/s2 + ReLU + 1x1 conv + bilinear upsample
# ----------------------------------------------------------------------------
def _fused_seg_kernel(x_ref, k1t_ref, b1_ref, l2t_ref, b2_ref, o_ref):
    """Whole-batch fused forward pass (two MXU matmuls + VPU ReLU).

    x_ref   : (N, C*H*W)          flattened NCHW input
    k1t_ref : (C*H*W, F*OH*OW)    folded conv3x3/s2/pad1 (transposed)
    b1_ref  : (1, F*OH*OW)        backbone bias (per flattened feature elem)
    l2t_ref : (F*OH*OW, NC*H*W)   folded 1x1-classifier x bilinear (transposed)
    b2_ref  : (1, NC*H*W)         classifier bias pushed through the upsample
    o_ref   : (N, NC*H*W)         flattened NCHW output logits
    """
    feat = jnp.dot(x_ref[...], k1t_ref[...],
                   preferred_element_type=jnp.float32) + b1_ref[...]
    feat = jnp.maximum(feat, 0.0)                                   # (N, F*OH*OW)
    out = jnp.dot(feat, l2t_ref[...],
                  preferred_element_type=jnp.float32) + b2_ref[...]  # (N, NC*H*W)
    o_ref[...] = out.astype(o_ref.dtype)


# ----------------------------------------------------------------------------
# Constant-matrix builders (depend on params/shapes only, not on x)
# ----------------------------------------------------------------------------
def _tap_selection(out_size, in_size, stride=2, ksize=3, pad=1):
    """S[k, o, i] = 1 iff i == stride*o + k - pad (zero row when out of range)."""
    o = jnp.arange(out_size)
    i = jnp.arange(in_size)
    k = jnp.arange(ksize)
    idx = stride * o[None, :, None] + k[:, None, None] - pad     # (k, out, 1)
    return (i[None, None, :] == idx).astype(jnp.float32)         # (k, out, in)


def _bilinear_weight_matrix(out_size, in_size):
    """PyTorch align_corners=False bilinear interpolation matrix (out, in)."""
    scale = in_size / out_size
    o = jnp.arange(out_size, dtype=jnp.float32)
    src = jnp.maximum(scale * (o + 0.5) - 0.5, 0.0)
    i0 = jnp.floor(src).astype(jnp.int32)
    i0 = jnp.minimum(i0, in_size - 1)
    i1 = jnp.minimum(i0 + 1, in_size - 1)
    lam1 = src - i0.astype(jnp.float32)
    lam0 = 1.0 - lam1
    w = jnp.zeros((out_size, in_size), dtype=jnp.float32)
    rows = jnp.arange(out_size)
    w = w.at[rows, i0].add(lam0)
    w = w.at[rows, i1].add(lam1)
    return w


# ----------------------------------------------------------------------------
# Model
# ----------------------------------------------------------------------------
def init_params(key, c_in=4, feat=8, num_classes=3):
    k1, k2, k3, k4 = jax.random.split(key, 4)
    w_backbone = jax.random.normal(k1, (feat, c_in, 3, 3), jnp.float32) * 0.1
    b_backbone = jax.random.normal(k2, (feat,), jnp.float32) * 0.1
    w_cls = jax.random.normal(k3, (num_classes, feat, 1, 1), jnp.float32) * 0.1
    b_cls = jax.random.normal(k4, (num_classes,), jnp.float32) * 0.1
    return dict(w_b=w_backbone, b_b=b_backbone, w_c=w_cls, b_c=b_cls)


@jax.jit
def simple_segmentation_model(params, x):
    """x: (N, C, H, W) float32 -> logits (N, num_classes, H, W)."""
    N, C, H, W = x.shape
    F_ = params["w_b"].shape[0]
    NC = params["w_c"].shape[0]
    OH = (H + 2 - 3) // 2 + 1
    OW = (W + 2 - 3) // 2 + 1

    # ---- fold the whole network into two constant matrices + two biases ----
    sh = _tap_selection(OH, H)                                    # (3, OH, H)
    sw = _tap_selection(OW, W)                                    # (3, OW, W)
    # K1^T[(c,h,w),(f,oh,ow)] = sum_{kh,kw} w_b[f,c,kh,kw]*Sh[kh,oh,h]*Sw[kw,ow,w]
    k1t = jnp.einsum("fckl,koh,lpw->chwfop", params["w_b"], sh, sw)
    k1t = k1t.reshape(C * H * W, F_ * OH * OW)                    # (CHW, F*OH*OW)
    b1 = jnp.repeat(params["b_b"], OH * OW).reshape(1, F_ * OH * OW)

    wc2 = params["w_c"].reshape(NC, F_)                           # (NC, F)
    wh = _bilinear_weight_matrix(H, OH)                           # (H, OH)
    ww = _bilinear_weight_matrix(W, OW)                           # (W, OW)
    # L2^T[(f,oh,ow),(k,h,w)] = Wc[k,f]*Wh[h,oh]*Ww[w,ow]
    l2t = jnp.einsum("kf,ho,wp->fopkhw", wc2, wh, ww)
    l2t = l2t.reshape(F_ * OH * OW, NC * H * W)                   # (F*OH*OW, NC*H*W)
    # Classifier bias pushed through the upsample (exact: rows sum to 1).
    b2 = jnp.einsum("k,h,w->khw", params["b_c"], wh.sum(axis=1), ww.sum(axis=1))
    b2 = b2.reshape(1, NC * H * W)

    # Contiguous (bitcast) flatten: NCHW -> (N, C*H*W); W stays innermost.
    x_flat = x.reshape(N, C * H * W)

    flops = 2 * N * ((C * H * W) * (F_ * OH * OW)
                     + (F_ * OH * OW) * (NC * H * W))
    bytes_accessed = 4 * (x_flat.size + N * NC * H * W
                          + k1t.size + b1.size + l2t.size + b2.size)

    out_flat = pl.pallas_call(
        _fused_seg_kernel,
        out_shape=jax.ShapeDtypeStruct((N, NC * H * W), jnp.float32),
        grid=(1,),                                                # single step: whole batch
        in_specs=[
            pl.BlockSpec((N, C * H * W), lambda i: (0, 0)),       # x (flattened)
            pl.BlockSpec((C * H * W, F_ * OH * OW), lambda i: (0, 0)),   # K1^T
            pl.BlockSpec((1, F_ * OH * OW), lambda i: (0, 0)),           # b1
            pl.BlockSpec((F_ * OH * OW, NC * H * W), lambda i: (0, 0)),  # L2^T
            pl.BlockSpec((1, NC * H * W), lambda i: (0, 0)),             # b2
        ],
        out_specs=pl.BlockSpec((N, NC * H * W), lambda i: (0, 0)),
        compiler_params=pltpu.CompilerParams(
            dimension_semantics=("arbitrary",),
            vmem_limit_bytes=32 * 1024 * 1024,
        ),
        cost_estimate=pl.CostEstimate(
            flops=flops, transcendentals=0, bytes_accessed=bytes_accessed),
    )(x_flat, k1t, b1, l2t, b2)

    # Contiguous (bitcast) reshape back to NCHW.
    return out_flat.reshape(N, NC, H, W)


# ----------------------------------------------------------------------------
# Pure-JAX reference (for correctness check only)
# ----------------------------------------------------------------------------
def _reference(params, x):
    N, C, H, W = x.shape
    feat = jax.lax.conv_general_dilated(
        x, params["w_b"], window_strides=(2, 2), padding=((1, 1), (1, 1)),
        dimension_numbers=("NCHW", "OIHW", "NCHW"))
    feat = jnp.maximum(feat + params["b_b"][None, :, None, None], 0.0)
    logits = jax.lax.conv_general_dilated(
        feat, params["w_c"], window_strides=(1, 1), padding="VALID",
        dimension_numbers=("NCHW", "OIHW", "NCHW"))
    logits = logits + params["b_c"][None, :, None, None]
    OH, OW = logits.shape[2], logits.shape[3]
    wh = _bilinear_weight_matrix(H, OH)
    ww = _bilinear_weight_matrix(W, OW)
    tmp = jnp.einsum("nkoq,wq->nkow", logits, ww)
    return jnp.einsum("ho,nkow->nkhw", wh, tmp)


if __name__ == "__main__":
    key = jax.random.PRNGKey(0)
    pkey, xkey = jax.random.split(key)
    params = init_params(pkey, c_in=4, feat=8, num_classes=3)
    x = jax.random.normal(xkey, (2, 4, 16, 16), jnp.float32)     # NCHW, like PyTorch

    out = simple_segmentation_model(params, x)
    jax.block_until_ready(out)
    assert out.shape == (2, 3, 16, 16), out.shape

    ref = _reference(params, x)
    max_err = float(jnp.max(jnp.abs(out - ref)))
    assert jnp.allclose(out, ref, atol=1e-3, rtol=1e-3), max_err
    print("KERNEL_OK")
</pallas_src>

<mosaic_0001>
module attributes {stable_mosaic.version = 11 : i64} {
  func.func @_fused_seg_kernel(%arg0: i32, %arg1: memref<2x1024xf32, #tpu.memory_space<vmem>>, %arg2: memref<1024x512xf32, #tpu.memory_space<vmem>>, %arg3: memref<1x512xf32, #tpu.memory_space<vmem>>, %arg4: memref<512x768xf32, #tpu.memory_space<vmem>>, %arg5: memref<1x768xf32, #tpu.memory_space<vmem>>, %arg6: memref<2x768xf32, #tpu.memory_space<vmem>>) attributes {dimension_semantics = [#tpu.dimension_semantics<arbitrary>], iteration_bounds = array<i64: 1>, scalar_prefetch = 0 : i64, scratch_operands = 0 : i64, tpu.core_type = #tpu.core_type<tc>, window_params = [{pipeline_mode = #tpu.pipeline_mode<synchronous>, transform_indices = @transform_0, window_bounds = array<i64: 2, 1024>}, {pipeline_mode = #tpu.pipeline_mode<synchronous>, transform_indices = @transform_1, window_bounds = array<i64: 1024, 512>}, {pipeline_mode = #tpu.pipeline_mode<synchronous>, transform_indices = @transform_2, window_bounds = array<i64: 1, 512>}, {pipeline_mode = #tpu.pipeline_mode<synchronous>, transform_indices = @transform_3, window_bounds = array<i64: 512, 768>}, {pipeline_mode = #tpu.pipeline_mode<synchronous>, transform_indices = @transform_4, window_bounds = array<i64: 1, 768>}, {pipeline_mode = #tpu.pipeline_mode<synchronous>, transform_indices = @transform_5, window_bounds = array<i64: 2, 768>}]} {
    %c0 = arith.constant 0 : index
    %c0_0 = arith.constant 0 : index
    %0 = vector.load %arg1[%c0, %c0_0] : memref<2x1024xf32, #tpu.memory_space<vmem>>, vector<2x1024xf32>
    %c0_1 = arith.constant 0 : index
    %c0_2 = arith.constant 0 : index
    %1 = vector.load %arg2[%c0_1, %c0_2] : memref<1024x512xf32, #tpu.memory_space<vmem>>, vector<1024x512xf32>
    %cst = arith.constant dense<0.000000e+00> : vector<2x512xf32>
    %2 = tpu.matmul %0, %1, %cst {dimension_numbers = #tpu.dot_dimension_numbers<[1], [0], [0], [1], [0, 0, 1, 1], [], []>} : vector<2x1024xf32>, vector<1024x512xf32>, vector<2x512xf32> -> vector<2x512xf32>
    %c0_3 = arith.constant 0 : index
    %c0_4 = arith.constant 0 : index
    %3 = vector.load %arg3[%c0_3, %c0_4] : memref<1x512xf32, #tpu.memory_space<vmem>>, vector<1x512xf32>
    %4 = vector.broadcast %3 : vector<1x512xf32> to vector<2x512xf32>
    %5 = arith.addf %2, %4 : vector<2x512xf32>
    %cst_5 = arith.constant 0.000000e+00 : f32
    %6 = vector.broadcast %cst_5 : f32 to vector<2x512xf32>
    %7 = arith.maximumf %5, %6 : vector<2x512xf32>
    %c0_6 = arith.constant 0 : index
    %c0_7 = arith.constant 0 : index
    %8 = vector.load %arg4[%c0_6, %c0_7] : memref<512x768xf32, #tpu.memory_space<vmem>>, vector<512x768xf32>
    %cst_8 = arith.constant dense<0.000000e+00> : vector<2x768xf32>
    %9 = tpu.matmul %7, %8, %cst_8 {dimension_numbers = #tpu.dot_dimension_numbers<[1], [0], [0], [1], [0, 0, 1, 1], [], []>} : vector<2x512xf32>, vector<512x768xf32>, vector<2x768xf32> -> vector<2x768xf32>
    %c0_9 = arith.constant 0 : index
    %c0_10 = arith.constant 0 : index
    %10 = vector.load %arg5[%c0_9, %c0_10] : memref<1x768xf32, #tpu.memory_space<vmem>>, vector<1x768xf32>
    %11 = vector.broadcast %10 : vector<1x768xf32> to vector<2x768xf32>
    %12 = arith.addf %9, %11 : vector<2x768xf32>
    %c0_11 = arith.constant 0 : index
    %c0_12 = arith.constant 0 : index
    %13 = vector.load %arg6[%c0_11, %c0_12] : memref<2x768xf32, #tpu.memory_space<vmem>>, vector<2x768xf32>
    tpu.vector_store %arg6[%c0_11, %c0_12], %12 {strides = array<i32>} : memref<2x768xf32, #tpu.memory_space<vmem>>, vector<2x768xf32>,
    return
  }
  func.func @transform_0(%arg0: i32) -> (i32, i32) {
    %c0_i32 = arith.constant 0 : i32
    %c0_i32_0 = arith.constant 0 : i32
    %c0_i32_1 = arith.constant 0 : i32
    return %c0_i32, %c0_i32_0 : i32, i32
  }
  func.func @transform_1(%arg0: i32) -> (i32, i32) {
    %c0_i32 = arith.constant 0 : i32
    %c0_i32_0 = arith.constant 0 : i32
    %c0_i32_1 = arith.constant 0 : i32
    return %c0_i32, %c0_i32_0 : i32, i32
  }
  func.func @transform_2(%arg0: i32) -> (i32, i32) {
    %c0_i32 = arith.constant 0 : i32
    %c0_i32_0 = arith.constant 0 : i32
    %c0_i32_1 = arith.constant 0 : i32
    return %c0_i32, %c0_i32_0 : i32, i32
  }
  func.func @transform_3(%arg0: i32) -> (i32, i32) {
    %c0_i32 = arith.constant 0 : i32
    %c0_i32_0 = arith.constant 0 : i32
    %c0_i32_1 = arith.constant 0 : i32
    return %c0_i32, %c0_i32_0 : i32, i32
  }
  func.func @transform_4(%arg0: i32) -> (i32, i32) {
    %c0_i32 = arith.constant 0 : i32
    %c0_i32_0 = arith.constant 0 : i32
    %c0_i32_1 = arith.constant 0 : i32
    return %c0_i32, %c0_i32_0 : i32, i32
  }
  func.func @transform_5(%arg0: i32) -> (i32, i32) {
    %c0_i32 = arith.constant 0 : i32
    %c0_i32_0 = arith.constant 0 : i32
    %c0_i32_1 = arith.constant 0 : i32
    return %c0_i32, %c0_i32_0 : i32, i32
  }
}

</mosaic_0001>

<bundles_post_ra>
// kernel: simple_segmentation_model.1
= control target key start
LH: loop header
LB: loop body
LE: loop exit
PB: predicated region body
PF: predicated region fallthrough
CT: control target
= control target key end

     0   :  { %vm2097_vm0 = vcmask 1041408   ;;  %vm2099_vm1 = vcmask 1045508   ;;  %vm2101_vm2 = vcmask 1043456   ;;  %s4966_s1 = inlined_call_operand.vmem [shape: f32[1024,512], index: 1, kind: input, shape index: {}]   ;;  %s4967_s0 = inlined_call_operand.vmem [shape: f32[2,1024], index: 0, kind: input, shape index: {}]   ;;  %s4968_s2 = inlined_call_operand.vmem [shape: f32[1,512], index: 2, kind: input, shape index: {}]   ;;  %s4969_s3 = inlined_call_operand.vmem [shape: f32[512,768], index: 3, kind: input, shape index: {}]   ;;  %s4970_s4 = inlined_call_operand.vmem [shape: f32[1,768], index: 4, kind: input, shape index: {}]   ;;  %s4971_s5 = inlined_call_operand.vmem [shape: f32[2,768], index: 5, kind: output, shape index: {}]  }
   0x1   :  { %v82_v0 = vld [vmem:[%s4966_s1 + $0x1e0] sm:$0xff] }
   0x2   :  { %v146_v1 = vld [vmem:[%s4966_s1 + $0x3e0] sm:$0xff]  ;;  %565 = vmatpush.msra.mxu0 %v82_v0 }
   0x3   :  { %v210_v2 = vld [vmem:[%s4966_s1 + $0x5e0] sm:$0xff]  ;;  %585 = vmatpush.msra.mxu1 %v146_v1 }
   0x4   :  { %v78_v3 = vld [vmem:[%s4966_s1 + $0x1c0] sm:$0xff]  ;;  %605 = vmatpush.msra.mxu2 %v210_v2 }
   0x5   :  { %v142_v4 = vld [vmem:[%s4966_s1 + $0x3c0] sm:$0xff]  ;;  %566 = vmatpush.msra.mxu0 %v78_v3 }
   0x6   :  { %v206_v5 = vld [vmem:[%s4966_s1 + $0x5c0] sm:$0xff]  ;;  %586 = vmatpush.msra.mxu1 %v142_v4 }
   0x7   :  { %v274_v6 = vld [vmem:[%s4966_s1 + $0x7e0] sm:$0xff]  ;;  %606 = vmatpush.msra.mxu2 %v206_v5 }
   0x8   :  { %v74_v7 = vld [vmem:[%s4966_s1 + $0x1a0] sm:$0xff]  ;;  %625 = vmatpush.msra.mxu3 %v274_v6 }
   0x9   :  { %v138_v8 = vld [vmem:[%s4966_s1 + $0x3a0] sm:$0xff]  ;;  %567 = vmatpush.msra.mxu0 %v74_v7 }
   0xa   :  { %v202_v9 = vld [vmem:[%s4966_s1 + $0x5a0] sm:$0xff]  ;;  %587 = vmatpush.msra.mxu1 %v138_v8 }
   0xb   :  { %v270_v10 = vld [vmem:[%s4966_s1 + $0x7c0] sm:$0xff]  ;;  %607 = vmatpush.msra.mxu2 %v202_v9 }
   0xc   :  { %v70_v11 = vld [vmem:[%s4966_s1 + $0x180] sm:$0xff]  ;;  %626 = vmatpush.msra.mxu3 %v270_v10 }
   0xd   :  { %v134_v12 = vld [vmem:[%s4966_s1 + $0x380] sm:$0xff]  ;;  %568 = vmatpush.msra.mxu0 %v70_v11 }
   0xe   :  { %v198_v13 = vld [vmem:[%s4966_s1 + $0x580] sm:$0xff]  ;;  %588 = vmatpush.msra.mxu1 %v134_v12 }
   0xf   :  { %v266_v14 = vld [vmem:[%s4966_s1 + $0x7a0] sm:$0xff]  ;;  %608 = vmatpush.msra.mxu2 %v198_v13 }
  0x10   :  { %v66_v15 = vld [vmem:[%s4966_s1 + $0x160] sm:$0xff]  ;;  %627 = vmatpush.msra.mxu3 %v266_v14 }
  0x11   :  { %v130_v16 = vld [vmem:[%s4966_s1 + $0x360] sm:$0xff]  ;;  %569 = vmatpush.msra.mxu0 %v66_v15 }
  0x12   :  { %v194_v17 = vld [vmem:[%s4966_s1 + $0x560] sm:$0xff]  ;;  %589 = vmatpush.msra.mxu1 %v130_v16 }
  0x13   :  { %v262_v18 = vld [vmem:[%s4966_s1 + $0x780] sm:$0xff]  ;;  %609 = vmatpush.msra.mxu2 %v194_v17 }
  0x14   :  { %v62_v19 = vld [vmem:[%s4966_s1 + $0x140] sm:$0xff]  ;;  %628 = vmatpush.msra.mxu3 %v262_v18 }
  0x15   :  { %v126_v20 = vld [vmem:[%s4966_s1 + $0x340] sm:$0xff]  ;;  %570 = vmatpush.msra.mxu0 %v62_v19 }
  0x16   :  { %v190_v21 = vld [vmem:[%s4966_s1 + $0x540] sm:$0xff]  ;;  %590 = vmatpush.msra.mxu1 %v126_v20 }
  0x17   :  { %v258_v22 = vld [vmem:[%s4966_s1 + $0x760] sm:$0xff]  ;;  %610 = vmatpush.msra.mxu2 %v190_v21 }
  0x18   :  { %v58_v23 = vld [vmem:[%s4966_s1 + $0x120] sm:$0xff]  ;;  %629 = vmatpush.msra.mxu3 %v258_v22 }
  0x19   :  { %v122_v24 = vld [vmem:[%s4966_s1 + $0x320] sm:$0xff]  ;;  %571 = vmatpush.msra.mxu0 %v58_v23 }
  0x1a   :  { %v186_v25 = vld [vmem:[%s4966_s1 + $0x520] sm:$0xff]  ;;  %591 = vmatpush.msra.mxu1 %v122_v24 }
  0x1b   :  { %v254_v26 = vld [vmem:[%s4966_s1 + $0x740] sm:$0xff]  ;;  %611 = vmatpush.msra.mxu2 %v186_v25 }
  0x1c   :  { %v54_v27 = vld [vmem:[%s4966_s1 + $0x100] sm:$0xff]  ;;  %630 = vmatpush.msra.mxu3 %v254_v26 }
  0x1d   :  { %v118_v28 = vld [vmem:[%s4966_s1 + $0x300] sm:$0xff]  ;;  %572 = vmatpush.msra.mxu0 %v54_v27 }
  0x1e   :  { %v182_v29 = vld [vmem:[%s4966_s1 + $0x500] sm:$0xff]  ;;  %592 = vmatpush.msra.mxu1 %v118_v28 }
  0x1f   :  { %v250_v30 = vld [vmem:[%s4966_s1 + $0x720] sm:$0xff]  ;;  %612 = vmatpush.msra.mxu2 %v182_v29 }
  0x20   :  { %v50_v31 = vld [vmem:[%s4966_s1 + $0xe0] sm:$0xff]  ;;  %631 = vmatpush.msra.mxu3 %v250_v30 }
  0x21   :  { %v114_v32 = vld [vmem:[%s4966_s1 + $0x2e0] sm:$0xff]  ;;  %573 = vmatpush.msra.mxu0 %v50_v31 }
  0x22   :  { %v178_v33 = vld [vmem:[%s4966_s1 + $0x4e0] sm:$0xff]  ;;  %593 = vmatpush.msra.mxu1 %v114_v32 }
  0x23   :  { %v246_v34 = vld [vmem:[%s4966_s1 + $0x700] sm:$0xff]  ;;  %613 = vmatpush.msra.mxu2 %v178_v33 }
  0x24   :  { %v46_v35 = vld [vmem:[%s4966_s1 + $0xc0] sm:$0xff]  ;;  %632 = vmatpush.msra.mxu3 %v246_v34 }
  0x25   :  { %v110_v36 = vld [vmem:[%s4966_s1 + $0x2c0] sm:$0xff]  ;;  %574 = vmatpush.msra.mxu0 %v46_v35 }
  0x26   :  { %v174_v37 = vld [vmem:[%s4966_s1 + $0x4c0] sm:$0xff]  ;;  %594 = vmatpush.msra.mxu1 %v110_v36 }
  0x27   :  { %v242_v38 = vld [vmem:[%s4966_s1 + $0x6e0] sm:$0xff]  ;;  %614 = vmatpush.msra.mxu2 %v174_v37 }
  0x28   :  { %v42_v39 = vld [vmem:[%s4966_s1 + $0xa0] sm:$0xff]  ;;  %633 = vmatpush.msra.mxu3 %v242_v38  ;;  %v21_v38 = vld [vmem:[%s4967_s0 + $0x8] sm:$0xff] }
  0x29   :  { %v106_v40 = vld [vmem:[%s4966_s1 + $0x2a0] sm:$0xff]  ;;  %575 = vmatpush.msra.mxu0 %v42_v39  ;;  %548 = vst [vmem:[#allocation1 + $0x20] ss:$4 sm:$0xff] %v21_v38  ;;  %v119_v38 = vld [vmem:[%s4966_s1 + $0x308] sm:$0xff] }
  0x2a   :  { %v170_v41 = vld [vmem:[%s4966_s1 + $0x4a0] sm:$0xff]  ;;  %595 = vmatpush.msra.mxu1 %v106_v40 }
  0x2b   :  { %v238_v42 = vld [vmem:[%s4966_s1 + $0x6c0] sm:$0xff]  ;;  %615 = vmatpush.msra.mxu2 %v170_v41 }
  0x2c   :  { %v38_v43 = vld [vmem:[%s4966_s1 + $0x80] sm:$0xff]  ;;  %634 = vmatpush.msra.mxu3 %v238_v42 }
  0x2d   :  { %v102_v44 = vld [vmem:[%s4966_s1 + $0x280] sm:$0xff]  ;;  %576 = vmatpush.msra.mxu0 %v38_v43 }
  0x2e   :  { %v166_v45 = vld [vmem:[%s4966_s1 + $0x480] sm:$0xff]  ;;  %596 = vmatpush.msra.mxu1 %v102_v44 }
  0x2f   :  { %v234_v46 = vld [vmem:[%s4966_s1 + $0x6a0] sm:$0xff]  ;;  %616 = vmatpush.msra.mxu2 %v166_v45 }
  0x30   :  { %v34_v47 = vld [vmem:[%s4966_s1 + $0x60] sm:$0xff]  ;;  %635 = vmatpush.msra.mxu3 %v234_v46 }
  0x31   :  { %v98_v48 = vld [vmem:[%s4966_s1 + $0x260] sm:$0xff]  ;;  %577 = vmatpush.msra.mxu0 %v34_v47 }
  0x32   :  { %v162_v49 = vld [vmem:[%s4966_s1 + $0x460] sm:$0xff]  ;;  %597 = vmatpush.msra.mxu1 %v98_v48 }
  0x33   :  { %v230_v50 = vld [vmem:[%s4966_s1 + $0x680] sm:$0xff]  ;;  %617 = vmatpush.msra.mxu2 %v162_v49 }
  0x34   :  { %v30_v51 = vld [vmem:[%s4966_s1 + $0x40] sm:$0xff]  ;;  %636 = vmatpush.msra.mxu3 %v230_v50 }
  0x35   :  { %v94_v52 = vld [vmem:[%s4966_s1 + $0x240] sm:$0xff]  ;;  %578 = vmatpush.msra.mxu0 %v30_v51 }
  0x36   :  { %v158_v53 = vld [vmem:[%s4966_s1 + $0x440] sm:$0xff]  ;;  %598 = vmatpush.msra.mxu1 %v94_v52 }
  0x37   :  { %v226_v54 = vld [vmem:[%s4966_s1 + $0x660] sm:$0xff]  ;;  %618 = vmatpush.msra.mxu2 %v158_v53 }
  0x38   :  { %v26_v55 = vld [vmem:[%s4966_s1 + $0x20] sm:$0xff]  ;;  %637 = vmatpush.msra.mxu3 %v226_v54 }
  0x39   :  { %v90_v56 = vld [vmem:[%s4966_s1 + $0x220] sm:$0xff]  ;;  %579 = vmatpush.msra.mxu0 %v26_v55 }
  0x3a   :  { %v154_v57 = vld [vmem:[%s4966_s1 + $0x420] sm:$0xff]  ;;  %599 = vmatpush.msra.mxu1 %v90_v56 }
  0x3b   :  { %v222_v58 = vld [vmem:[%s4966_s1 + $0x640] sm:$0xff]  ;;  %619 = vmatpush.msra.mxu2 %v154_v57 }
  0x3c   :  { %v22_v59 = vld [vmem:[%s4966_s1] sm:$0xff]  ;;  %638 = vmatpush.msra.mxu3 %v222_v58 }
  0x3d   :  { %v86_v60 = vld [vmem:[%s4966_s1 + $0x200] sm:$0xff]  ;;  %580 = vmatpush.msra.mxu0 %v22_v59 }
  0x3e   :  { %v150_v61 = vld [vmem:[%s4966_s1 + $0x400] sm:$0xff]  ;;  %600 = vmatpush.msra.mxu1 %v86_v60 }
  0x3f   :  { %v218_v62 = vld [vmem:[%s4966_s1 + $0x620] sm:$0xff]  ;;  %620 = vmatpush.msra.mxu2 %v150_v61 }
  0x40   :  { %v338_v63 = vld [vmem:[%s4966_s1 + $0x9e0] sm:$0xff]  ;;  %639 = vmatpush.msra.mxu3 %v218_v62 }
  0x41   :  { %v402_v0 = vld [vmem:[%s4966_s1 + $0xbe0] sm:$0xff]  ;;  %645 = vmatpush.msrb.mxu0 %v338_v63 }
  0x42   :  { %v466_v1 = vld [vmem:[%s4966_s1 + $0xde0] sm:$0xff]  ;;  %665 = vmatpush.msrb.mxu1 %v402_v0 }
  0x43   :  { %v214_v2 = vld [vmem:[%s4966_s1 + $0x600] sm:$0xff]  ;;  %685 = vmatpush.msrb.mxu2 %v466_v1 }
  0x44   :  { %v334_v3 = vld [vmem:[%s4966_s1 + $0x9c0] sm:$0xff]  ;;  %640 = vmatpush.msra.mxu3 %v214_v2 }
  0x45   :  { %v398_v4 = vld [vmem:[%s4966_s1 + $0xbc0] sm:$0xff]  ;;  %646 = vmatpush.msrb.mxu0 %v334_v3 }
  0x46   :  { %v462_v5 = vld [vmem:[%s4966_s1 + $0xdc0] sm:$0xff]  ;;  %666 = vmatpush.msrb.mxu1 %v398_v4  ;;  %v83_v4 = vld [vmem:[%s4966_s1 + $0x1e8] sm:$0xff] }
  0x47   :  { %v530_v6 = vld [vmem:[%s4966_s1 + $0xfe0] sm:$0xff]  ;;  %686 = vmatpush.msrb.mxu2 %v462_v5  ;;  %v147_v5 = vld [vmem:[%s4966_s1 + $0x3e8] sm:$0xff] }
  0x48   :  { %v330_v7 = vld [vmem:[%s4966_s1 + $0x9a0] sm:$0xff]  ;;  %705 = vmatpush.msrb.mxu3 %v530_v6  ;;  %v211_v6 = vld [vmem:[%s4966_s1 + $0x5e8] sm:$0xff] }
  0x49   :  { %v394_v8 = vld [vmem:[%s4966_s1 + $0xba0] sm:$0xff]  ;;  %647 = vmatpush.msrb.mxu0 %v330_v7 }
  0x4a   :  { %v458_v9 = vld [vmem:[%s4966_s1 + $0xda0] sm:$0xff]  ;;  %667 = vmatpush.msrb.mxu1 %v394_v8  ;;  %v79_v8 = vld [vmem:[%s4966_s1 + $0x1c8] sm:$0xff] }
  0x4b   :  { %v526_v10 = vld [vmem:[%s4966_s1 + $0xfc0] sm:$0xff]  ;;  %687 = vmatpush.msrb.mxu2 %v458_v9 }
  0x4c   :  { %v326_v11 = vld [vmem:[%s4966_s1 + $0x980] sm:$0xff]  ;;  %706 = vmatpush.msrb.mxu3 %v526_v10  ;;  %v143_v10 = vld [vmem:[%s4966_s1 + $0x3c8] sm:$0xff] }
  0x4d   :  { %v390_v12 = vld [vmem:[%s4966_s1 + $0xb80] sm:$0xff]  ;;  %648 = vmatpush.msrb.mxu0 %v326_v11  ;;  %v207_v11 = vld [vmem:[%s4966_s1 + $0x5c8] sm:$0xff] }
  0x4e   :  { %v454_v13 = vld [vmem:[%s4966_s1 + $0xd80] sm:$0xff]  ;;  %668 = vmatpush.msrb.mxu1 %v390_v12  ;;  %v275_v12 = vld [vmem:[%s4966_s1 + $0x7e8] sm:$0xff] }
  0x4f   :  { %v522_v14 = vld [vmem:[%s4966_s1 + $0xfa0] sm:$0xff]  ;;  %688 = vmatpush.msrb.mxu2 %v454_v13  ;;  %v75_v13 = vld [vmem:[%s4966_s1 + $0x1a8] sm:$0xff] }
  0x50   :  { %v322_v15 = vld [vmem:[%s4966_s1 + $0x960] sm:$0xff]  ;;  %707 = vmatpush.msrb.mxu3 %v522_v14  ;;  %v139_v14 = vld [vmem:[%s4966_s1 + $0x3a8] sm:$0xff] }
  0x51   :  { %v386_v16 = vld [vmem:[%s4966_s1 + $0xb60] sm:$0xff]  ;;  %649 = vmatpush.msrb.mxu0 %v322_v15  ;;  %v203_v15 = vld [vmem:[%s4966_s1 + $0x5a8] sm:$0xff] }
  0x52   :  { %v450_v17 = vld [vmem:[%s4966_s1 + $0xd60] sm:$0xff]  ;;  %669 = vmatpush.msrb.mxu1 %v386_v16  ;;  %v271_v16 = vld [vmem:[%s4966_s1 + $0x7c8] sm:$0xff] }
  0x53   :  { %v518_v18 = vld [vmem:[%s4966_s1 + $0xf80] sm:$0xff]  ;;  %689 = vmatpush.msrb.mxu2 %v450_v17  ;;  %v71_v17 = vld [vmem:[%s4966_s1 + $0x188] sm:$0xff] }
  0x54   :  { %v318_v19 = vld [vmem:[%s4966_s1 + $0x940] sm:$0xff]  ;;  %708 = vmatpush.msrb.mxu3 %v518_v18  ;;  %v135_v18 = vld [vmem:[%s4966_s1 + $0x388] sm:$0xff] }
  0x55   :  { %v382_v20 = vld [vmem:[%s4966_s1 + $0xb40] sm:$0xff]  ;;  %650 = vmatpush.msrb.mxu0 %v318_v19  ;;  %v199_v19 = vld [vmem:[%s4966_s1 + $0x588] sm:$0xff] }
  0x56   :  { %v446_v21 = vld [vmem:[%s4966_s1 + $0xd40] sm:$0xff]  ;;  %670 = vmatpush.msrb.mxu1 %v382_v20  ;;  %v267_v20 = vld [vmem:[%s4966_s1 + $0x7a8] sm:$0xff] }
  0x57   :  { %v514_v22 = vld [vmem:[%s4966_s1 + $0xf60] sm:$0xff]  ;;  %690 = vmatpush.msrb.mxu2 %v446_v21  ;;  %v2597_v21 = vld.sshfl [vmem:[#allocation1 + $0x30] sm:$0xff pattern:$0x73625140] }
  0x58   :  { %v314_v23 = vld [vmem:[%s4966_s1 + $0x920] sm:$0xff]  ;;  %709 = vmatpush.msrb.mxu3 %v514_v22  ;;  %v67_v22 = vld [vmem:[%s4966_s1 + $0x168] sm:$0xff] }
  0x59   :  { %v378_v24 = vld [vmem:[%s4966_s1 + $0xb20] sm:$0xff]  ;;  %651 = vmatpush.msrb.mxu0 %v314_v23  ;;  %v131_v23 = vld [vmem:[%s4966_s1 + $0x368] sm:$0xff] }
  0x5a   :  { %v20_v25 = vld [vmem:[%s4967_s0] sm:$0xff]  ;;  %671 = vmatpush.msrb.mxu1 %v378_v24  ;;  %v195_v24 = vld [vmem:[%s4966_s1 + $0x568] sm:$0xff] }
  0x5b   :  { %v442_v26 = vld [vmem:[%s4966_s1 + $0xd20] sm:$0xff]  ;;  %546 = vst [vmem:[#allocation1] ss:$4 sm:$0xff] %v20_v25  ;;  %v263_v25 = vld [vmem:[%s4966_s1 + $0x788] sm:$0xff] }
  0x5c   :  { %v510_v27 = vld [vmem:[%s4966_s1 + $0xf40] sm:$0xff]  ;;  %691 = vmatpush.msrb.mxu2 %v442_v26 }
  0x5d   :  { %v310_v28 = vld [vmem:[%s4966_s1 + $0x900] sm:$0xff]  ;;  %710 = vmatpush.msrb.mxu3 %v510_v27  ;;  %v2614_v27 = vld.sshfl [vmem:[#allocation1 + $0x38] sm:$0xff pattern:$0x73625140] }
  0x5e   :  { %v374_v29 = vld [vmem:[%s4966_s1 + $0xb00] sm:$0xff]  ;;  %652 = vmatpush.msrb.mxu0 %v310_v28  ;;  %v63_v28 = vld [vmem:[%s4966_s1 + $0x148] sm:$0xff] }
  0x5f   :  { %v438_v30 = vld [vmem:[%s4966_s1 + $0xd00] sm:$0xff]  ;;  %672 = vmatpush.msrb.mxu1 %v374_v29  ;;  %v127_v29 = vld [vmem:[%s4966_s1 + $0x348] sm:$0xff] }
  0x60   :  { %v506_v31 = vld [vmem:[%s4966_s1 + $0xf20] sm:$0xff]  ;;  %692 = vmatpush.msrb.mxu2 %v438_v30  ;;  %v191_v30 = vld [vmem:[%s4966_s1 + $0x548] sm:$0xff] }
  0x61   :  { %v306_v32 = vld [vmem:[%s4966_s1 + $0x8e0] sm:$0xff]  ;;  %711 = vmatpush.msrb.mxu3 %v506_v31  ;;  %v259_v31 = vld [vmem:[%s4966_s1 + $0x768] sm:$0xff] }
  0x62   :  { %v370_v33 = vld [vmem:[%s4966_s1 + $0xae0] sm:$0xff]  ;;  %653 = vmatpush.msrb.mxu0 %v306_v32  ;;  %v2539_v2 = vld.sshfl [vmem:[#allocation1 + $0x8] sm:$0xff pattern:$0x73625140] }
  0x63   :  { %v434_v34 = vld [vmem:[%s4966_s1 + $0xce0] sm:$0xff]  ;;  %673 = vmatpush.msrb.mxu1 %v370_v33  ;;  %v2541_v3 = vld.sshfl [vmem:[#allocation1 + $0x10] sm:$0xff pattern:$0x73625140]  ;;  %v59_v33 = vld [vmem:[%s4966_s1 + $0x128] sm:$0xff] }
  0x64   :  { %v502_v35 = vld [vmem:[%s4966_s1 + $0xf00] sm:$0xff]  ;;  %693 = vmatpush.msrb.mxu2 %v434_v34  ;;  %601 = vmatmul.f32.vlgmr.msra.gmra.mxu1 %v2539_v2  ;;  %v2561_v9 = vld.sshfl [vmem:[#allocation1 + $0x18] sm:$0xff pattern:$0x73625140]  ;;  %v123_v34 = vld [vmem:[%s4966_s1 + $0x328] sm:$0xff] }
  0x65   :  { %v302_v36 = vld [vmem:[%s4966_s1 + $0x8c0] sm:$0xff]  ;;  %712 = vmatpush.msrb.mxu3 %v502_v35  ;;  %621 = vmatmul.f32.vlgmr.msra.gmra.mxu2 %v2541_v3  ;;  %v2629_v32 = vld.sshfl [vmem:[#allocation1 + $0x28] sm:$0xff pattern:$0x73625140] }
  0x66   :  { %v366_v37 = vld [vmem:[%s4966_s1 + $0xac0] sm:$0xff]  ;;  %654 = vmatpush.msrb.mxu0 %v302_v36  ;;  %641 = vmatmul.f32.vlgmr.msra.gmra.mxu3 %v2561_v9  ;;  %v187_v35 = vld [vmem:[%s4966_s1 + $0x528] sm:$0xff] }
  0x67   :  { %v430_v39 = vld [vmem:[%s4966_s1 + $0xcc0] sm:$0xff]  ;;  %674 = vmatpush.msrb.mxu1 %v366_v37  ;;  %v255_v36 = vld [vmem:[%s4966_s1 + $0x748] sm:$0xff] }
  0x68   :  { %v498_v40 = vld [vmem:[%s4966_s1 + $0xee0] sm:$0xff]  ;;  %694 = vmatpush.msrb.mxu2 %v430_v39  ;;  %v55_v37 = vld [vmem:[%s4966_s1 + $0x108] sm:$0xff] }
  0x69   :  { %v298_v41 = vld [vmem:[%s4966_s1 + $0x8a0] sm:$0xff]  ;;  %713 = vmatpush.msrb.mxu3 %v498_v40  ;;  %v183_v39 = vld [vmem:[%s4966_s1 + $0x508] sm:$0xff] }
  0x6a   :  { %v362_v42 = vld [vmem:[%s4966_s1 + $0xaa0] sm:$0xff]  ;;  %655 = vmatpush.msrb.mxu0 %v298_v41  ;;  %v251_v40 = vld [vmem:[%s4966_s1 + $0x728] sm:$0xff] }
  0x6b   :  { %v426_v43 = vld [vmem:[%s4966_s1 + $0xca0] sm:$0xff]  ;;  %675 = vmatpush.msrb.mxu1 %v362_v42  ;;  %v51_v41 = vld [vmem:[%s4966_s1 + $0xe8] sm:$0xff] }
  0x6c   :  { %v494_v44 = vld [vmem:[%s4966_s1 + $0xec0] sm:$0xff]  ;;  %695 = vmatpush.msrb.mxu2 %v426_v43  ;;  %v115_v42 = vld [vmem:[%s4966_s1 + $0x2e8] sm:$0xff] }
  0x6d   :  { %v294_v45 = vld [vmem:[%s4966_s1 + $0x880] sm:$0xff]  ;;  %714 = vmatpush.msrb.mxu3 %v494_v44  ;;  %v179_v43 = vld [vmem:[%s4966_s1 + $0x4e8] sm:$0xff] }
  0x6e   :  { %v358_v46 = vld [vmem:[%s4966_s1 + $0xa80] sm:$0xff]  ;;  %656 = vmatpush.msrb.mxu0 %v294_v45  ;;  %v247_v44 = vld [vmem:[%s4966_s1 + $0x708] sm:$0xff] }
  0x6f   :  { %v422_v47 = vld [vmem:[%s4966_s1 + $0xc80] sm:$0xff]  ;;  %676 = vmatpush.msrb.mxu1 %v358_v46  ;;  %v47_v45 = vld [vmem:[%s4966_s1 + $0xc8] sm:$0xff] }
  0x70   :  { %v490_v48 = vld [vmem:[%s4966_s1 + $0xea0] sm:$0xff]  ;;  %696 = vmatpush.msrb.mxu2 %v422_v47  ;;  %v111_v46 = vld [vmem:[%s4966_s1 + $0x2c8] sm:$0xff] }
  0x71   :  { %v290_v49 = vld [vmem:[%s4966_s1 + $0x860] sm:$0xff]  ;;  %715 = vmatpush.msrb.mxu3 %v490_v48  ;;  %v175_v47 = vld [vmem:[%s4966_s1 + $0x4c8] sm:$0xff] }
  0x72   :  { %v354_v50 = vld [vmem:[%s4966_s1 + $0xa60] sm:$0xff]  ;;  %657 = vmatpush.msrb.mxu0 %v290_v49  ;;  %v243_v48 = vld [vmem:[%s4966_s1 + $0x6e8] sm:$0xff] }
  0x73   :  { %v418_v51 = vld [vmem:[%s4966_s1 + $0xc60] sm:$0xff]  ;;  %677 = vmatpush.msrb.mxu1 %v354_v50  ;;  %v43_v49 = vld [vmem:[%s4966_s1 + $0xa8] sm:$0xff] }
  0x74   :  { %v486_v52 = vld [vmem:[%s4966_s1 + $0xe80] sm:$0xff]  ;;  %697 = vmatpush.msrb.mxu2 %v418_v51  ;;  %v107_v50 = vld [vmem:[%s4966_s1 + $0x2a8] sm:$0xff] }
  0x75   :  { %v286_v53 = vld [vmem:[%s4966_s1 + $0x840] sm:$0xff]  ;;  %716 = vmatpush.msrb.mxu3 %v486_v52  ;;  %v171_v51 = vld [vmem:[%s4966_s1 + $0x4a8] sm:$0xff] }
  0x76   :  { %v350_v54 = vld [vmem:[%s4966_s1 + $0xa40] sm:$0xff]  ;;  %658 = vmatpush.msrb.mxu0 %v286_v53  ;;  %v239_v52 = vld [vmem:[%s4966_s1 + $0x6c8] sm:$0xff] }
  0x77   :  { %v414_v55 = vld [vmem:[%s4966_s1 + $0xc40] sm:$0xff]  ;;  %678 = vmatpush.msrb.mxu1 %v350_v54  ;;  %v39_v53 = vld [vmem:[%s4966_s1 + $0x88] sm:$0xff] }
  0x78   :  { %v482_v56 = vld [vmem:[%s4966_s1 + $0xe60] sm:$0xff]  ;;  %698 = vmatpush.msrb.mxu2 %v414_v55  ;;  %v103_v54 = vld [vmem:[%s4966_s1 + $0x288] sm:$0xff] }
  0x79   :  { %v282_v57 = vld [vmem:[%s4966_s1 + $0x820] sm:$0xff]  ;;  %717 = vmatpush.msrb.mxu3 %v482_v56  ;;  %v167_v55 = vld [vmem:[%s4966_s1 + $0x488] sm:$0xff] }
  0x7a   :  { %v346_v58 = vld [vmem:[%s4966_s1 + $0xa20] sm:$0xff]  ;;  %659 = vmatpush.msrb.mxu0 %v282_v57  ;;  %v235_v56 = vld [vmem:[%s4966_s1 + $0x6a8] sm:$0xff] }
  0x7b   :  { %v410_v59 = vld [vmem:[%s4966_s1 + $0xc20] sm:$0xff]  ;;  %679 = vmatpush.msrb.mxu1 %v346_v58  ;;  %v35_v57 = vld [vmem:[%s4966_s1 + $0x68] sm:$0xff] }
  0x7c   :  { %v478_v60 = vld [vmem:[%s4966_s1 + $0xe40] sm:$0xff]  ;;  %699 = vmatpush.msrb.mxu2 %v410_v59  ;;  %v99_v58 = vld [vmem:[%s4966_s1 + $0x268] sm:$0xff] }
  0x7d   :  { %v278_v61 = vld [vmem:[%s4966_s1 + $0x800] sm:$0xff]  ;;  %718 = vmatpush.msrb.mxu3 %v478_v60  ;;  %v163_v59 = vld [vmem:[%s4966_s1 + $0x468] sm:$0xff] }
  0x7e   :  { %v342_v62 = vld [vmem:[%s4966_s1 + $0xa00] sm:$0xff]  ;;  %660 = vmatpush.msrb.mxu0 %v278_v61  ;;  %v231_v60 = vld [vmem:[%s4966_s1 + $0x688] sm:$0xff] }
  0x7f   :  { %v406_v63 = vld [vmem:[%s4966_s1 + $0xc00] sm:$0xff]  ;;  %680 = vmatpush.msrb.mxu1 %v342_v62  ;;  %v31_v61 = vld [vmem:[%s4966_s1 + $0x48] sm:$0xff] }
  0x80   :  { %v474_v0 = vld [vmem:[%s4966_s1 + $0xe20] sm:$0xff]  ;;  %700 = vmatpush.msrb.mxu2 %v406_v63  ;;  %681 = vmatmul.f32.vlgmr.msrb.gmra.mxu1 %v2629_v32  ;;  %v95_v62 = vld [vmem:[%s4966_s1 + $0x248] sm:$0xff] }
  0x81   :  { %v2537_v1 = vld.sshfl [vmem:[#allocation1] sm:$0xff pattern:$0x73625140]  ;;  %719 = vmatpush.msrb.mxu3 %v474_v0  ;;  %745 = vmatpush.msra.mxu1 %v147_v5  ;;  %v159_v63 = vld [vmem:[%s4966_s1 + $0x448] sm:$0xff] }
  0x82   :  { %581 = vmatmul.f32.vlgmr.msra.gmra.mxu0 %v2537_v1  ;;  %v470_v7 = vld [vmem:[%s4966_s1 + $0xe00] sm:$0xff]  ;;  %765 = vmatpush.msra.mxu2 %v211_v6  ;;  %v227_v0 = vld [vmem:[%s4966_s1 + $0x668] sm:$0xff] }
  0x83   :  { %725 = vmatpush.msra.mxu0 %v83_v4  ;;  %720 = vmatpush.msrb.mxu3 %v470_v7  ;;  %v2611_v26 = vld.sshfl [vmem:[#allocation1 + $0x20] sm:$0xff pattern:$0x73625140]  ;;  %v27_v4 = vld [vmem:[%s4966_s1 + $0x28] sm:$0xff] }
  0x84   :  { %746 = vmatpush.msra.mxu1 %v143_v10  ;;  %766 = vmatpush.msra.mxu2 %v207_v11  ;;  %v91_v5 = vld [vmem:[%s4966_s1 + $0x228] sm:$0xff] }
  0x85   :  { %726 = vmatpush.msra.mxu0 %v79_v8  ;;  %785 = vmatpush.msra.mxu3 %v275_v12  ;;  %v155_v6 = vld [vmem:[%s4966_s1 + $0x428] sm:$0xff] }
  0x86   :  { %747 = vmatpush.msra.mxu1 %v139_v14  ;;  %767 = vmatpush.msra.mxu2 %v203_v15  ;;  %v223_v7 = vld [vmem:[%s4966_s1 + $0x648] sm:$0xff] }
  0x87   :  { %727 = vmatpush.msra.mxu0 %v75_v13  ;;  %786 = vmatpush.msra.mxu3 %v271_v16  ;;  %v23_v8 = vld [vmem:[%s4966_s1 + $0x8] sm:$0xff] }
  0x88   :  { %748 = vmatpush.msra.mxu1 %v135_v18  ;;  %768 = vmatpush.msra.mxu2 %v199_v19  ;;  %v87_v10 = vld [vmem:[%s4966_s1 + $0x208] sm:$0xff] }
  0x89   :  { %728 = vmatpush.msra.mxu0 %v71_v17  ;;  %787 = vmatpush.msra.mxu3 %v267_v20  ;;  %v151_v11 = vld [vmem:[%s4966_s1 + $0x408] sm:$0xff] }
  0x8a   :  { %701 = vmatmul.f32.vlgmr.msrb.gmra.mxu2 %v2597_v21  ;;  %749 = vmatpush.msra.mxu1 %v131_v23  ;;  %v219_v12 = vld [vmem:[%s4966_s1 + $0x628] sm:$0xff] }
  0x8b   :  { %729 = vmatpush.msra.mxu0 %v67_v22  ;;  %769 = vmatpush.msra.mxu2 %v195_v24  ;;  %v339_v13 = vld [vmem:[%s4966_s1 + $0x9e8] sm:$0xff] }
  0x8c   :  { %788 = vmatpush.msra.mxu3 %v263_v25  ;;  %661 = vmatmul.f32.vlgmr.msrb.gmra.mxu0 %v2611_v26  ;;  %v403_v14 = vld [vmem:[%s4966_s1 + $0xbe8] sm:$0xff] }
  0x8d   :  { %721 = vmatmul.f32.vlgmr.msrb.gmra.mxu3 %v2614_v27  ;;  %730 = vmatpush.msra.mxu0 %v63_v28  ;;  %v467_v15 = vld [vmem:[%s4966_s1 + $0xde8] sm:$0xff] }
  0x8e   :  { %750 = vmatpush.msra.mxu1 %v127_v29  ;;  %770 = vmatpush.msra.mxu2 %v191_v30  ;;  %v215_v16 = vld [vmem:[%s4966_s1 + $0x608] sm:$0xff] }
  0x8f   :  { %789 = vmatpush.msra.mxu3 %v259_v31  ;;  %731 = vmatpush.msra.mxu0 %v59_v33  ;;  %v335_v17 = vld [vmem:[%s4966_s1 + $0x9c8] sm:$0xff] }
  0x90   :  { %751 = vmatpush.msra.mxu1 %v123_v34  ;;  %771 = vmatpush.msra.mxu2 %v187_v35  ;;  %v399_v18 = vld [vmem:[%s4966_s1 + $0xbc8] sm:$0xff] }
  0x91   :  { %790 = vmatpush.msra.mxu3 %v255_v36  ;;  %732 = vmatpush.msra.mxu0 %v55_v37  ;;  %v463_v19 = vld [vmem:[%s4966_s1 + $0xdc8] sm:$0xff] }
  0x92   :  { %752 = vmatpush.msra.mxu1 %v119_v38  ;;  %772 = vmatpush.msra.mxu2 %v183_v39  ;;  %v531_v20 = vld [vmem:[%s4966_s1 + $0xfe8] sm:$0xff] }
  0x93   :  { %791 = vmatpush.msra.mxu3 %v251_v40  ;;  %733 = vmatpush.msra.mxu0 %v51_v41  ;;  %v331_v22 = vld [vmem:[%s4966_s1 + $0x9a8] sm:$0xff] }
  0x94   :  { %753 = vmatpush.msra.mxu1 %v115_v42  ;;  %773 = vmatpush.msra.mxu2 %v179_v43  ;;  %v395_v23 = vld [vmem:[%s4966_s1 + $0xba8] sm:$0xff] }
  0x95   :  { %792 = vmatpush.msra.mxu3 %v247_v44  ;;  %734 = vmatpush.msra.mxu0 %v47_v45  ;;  %v459_v24 = vld [vmem:[%s4966_s1 + $0xda8] sm:$0xff] }
  0x96   :  { %754 = vmatpush.msra.mxu1 %v111_v46  ;;  %774 = vmatpush.msra.mxu2 %v175_v47  ;;  %v527_v25 = vld [vmem:[%s4966_s1 + $0xfc8] sm:$0xff] }
  0x97   :  { %793 = vmatpush.msra.mxu3 %v243_v48  ;;  %735 = vmatpush.msra.mxu0 %v43_v49  ;;  %v327_v28 = vld [vmem:[%s4966_s1 + $0x988] sm:$0xff] }
  0x98   :  { %755 = vmatpush.msra.mxu1 %v107_v50  ;;  %775 = vmatpush.msra.mxu2 %v171_v51  ;;  %v391_v29 = vld [vmem:[%s4966_s1 + $0xb88] sm:$0xff] }
  0x99   :  { %794 = vmatpush.msra.mxu3 %v239_v52  ;;  %736 = vmatpush.msra.mxu0 %v39_v53  ;;  %v455_v30 = vld [vmem:[%s4966_s1 + $0xd88] sm:$0xff] }
  0x9a   :  { %756 = vmatpush.msra.mxu1 %v103_v54  ;;  %776 = vmatpush.msra.mxu2 %v167_v55  ;;  %v523_v31 = vld [vmem:[%s4966_s1 + $0xfa8] sm:$0xff] }
  0x9b   :  { %795 = vmatpush.msra.mxu3 %v235_v56  ;;  %737 = vmatpush.msra.mxu0 %v35_v57  ;;  %v323_v33 = vld [vmem:[%s4966_s1 + $0x968] sm:$0xff] }
  0x9c   :  { %757 = vmatpush.msra.mxu1 %v99_v58  ;;  %777 = vmatpush.msra.mxu2 %v163_v59  ;;  %v387_v34 = vld [vmem:[%s4966_s1 + $0xb68] sm:$0xff] }
  0x9d   :  { %796 = vmatpush.msra.mxu3 %v231_v60  ;;  %738 = vmatpush.msra.mxu0 %v31_v61  ;;  %v451_v35 = vld [vmem:[%s4966_s1 + $0xd68] sm:$0xff] }
  0x9e   :  { %758 = vmatpush.msra.mxu1 %v95_v62  ;;  %778 = vmatpush.msra.mxu2 %v159_v63  ;;  %v519_v36 = vld [vmem:[%s4966_s1 + $0xf88] sm:$0xff] }
  0x9f   :  { %797 = vmatpush.msra.mxu3 %v227_v0  ;;  %739 = vmatpush.msra.mxu0 %v27_v4  ;;  %v319_v37 = vld [vmem:[%s4966_s1 + $0x948] sm:$0xff] }
  0xa0   :  { %759 = vmatpush.msra.mxu1 %v91_v5  ;;  %779 = vmatpush.msra.mxu2 %v155_v6  ;;  %v383_v38 = vld [vmem:[%s4966_s1 + $0xb48] sm:$0xff] }
  0xa1   :  { %798 = vmatpush.msra.mxu3 %v223_v7  ;;  %740 = vmatpush.msra.mxu0 %v23_v8  ;;  %v447_v39 = vld [vmem:[%s4966_s1 + $0xd48] sm:$0xff] }
  0xa2   :  { %760 = vmatpush.msra.mxu1 %v87_v10  ;;  %780 = vmatpush.msra.mxu2 %v151_v11  ;;  %v515_v40 = vld [vmem:[%s4966_s1 + $0xf68] sm:$0xff] }
  0xa3   :  { %799 = vmatpush.msra.mxu3 %v219_v12  ;;  %805 = vmatpush.msrb.mxu0 %v339_v13  ;;  %v315_v41 = vld [vmem:[%s4966_s1 + $0x928] sm:$0xff] }
  0xa4   :  { %825 = vmatpush.msrb.mxu1 %v403_v14  ;;  %845 = vmatpush.msrb.mxu2 %v467_v15  ;;  %v379_v42 = vld [vmem:[%s4966_s1 + $0xb28] sm:$0xff] }
  0xa5   :  { %800 = vmatpush.msra.mxu3 %v215_v16  ;;  %806 = vmatpush.msrb.mxu0 %v335_v17  ;;  %v443_v43 = vld [vmem:[%s4966_s1 + $0xd28] sm:$0xff] }
  0xa6   :  { %826 = vmatpush.msrb.mxu1 %v399_v18  ;;  %846 = vmatpush.msrb.mxu2 %v463_v19  ;;  %v511_v44 = vld [vmem:[%s4966_s1 + $0xf48] sm:$0xff] }
  0xa7   :  { %865 = vmatpush.msrb.mxu3 %v531_v20  ;;  %807 = vmatpush.msrb.mxu0 %v331_v22  ;;  %v311_v45 = vld [vmem:[%s4966_s1 + $0x908] sm:$0xff]  ;;  %v84_v22 = vld [vmem:[%s4966_s1 + $0x1f0] sm:$0xff] }
  0xa8   :  { %827 = vmatpush.msrb.mxu1 %v395_v23  ;;  %847 = vmatpush.msrb.mxu2 %v459_v24  ;;  %v375_v46 = vld [vmem:[%s4966_s1 + $0xb08] sm:$0xff]  ;;  %v148_v23 = vld [vmem:[%s4966_s1 + $0x3f0] sm:$0xff] }
  0xa9   :  { %866 = vmatpush.msrb.mxu3 %v527_v25  ;;  %808 = vmatpush.msrb.mxu0 %v327_v28  ;;  %v439_v47 = vld [vmem:[%s4966_s1 + $0xd08] sm:$0xff]  ;;  %v212_v24 = vld [vmem:[%s4966_s1 + $0x5f0] sm:$0xff] }
  0xaa   :  { %828 = vmatpush.msrb.mxu1 %v391_v29  ;;  %848 = vmatpush.msrb.mxu2 %v455_v30  ;;  %v507_v48 = vld [vmem:[%s4966_s1 + $0xf28] sm:$0xff]  ;;  %v80_v28 = vld [vmem:[%s4966_s1 + $0x1d0] sm:$0xff] }
  0xab   :  { %867 = vmatpush.msrb.mxu3 %v523_v31  ;;  %809 = vmatpush.msrb.mxu0 %v323_v33  ;;  %v307_v49 = vld [vmem:[%s4966_s1 + $0x8e8] sm:$0xff]  ;;  %v144_v29 = vld [vmem:[%s4966_s1 + $0x3d0] sm:$0xff] }
  0xac   :  { %829 = vmatpush.msrb.mxu1 %v387_v34  ;;  %849 = vmatpush.msrb.mxu2 %v451_v35  ;;  %v371_v50 = vld [vmem:[%s4966_s1 + $0xae8] sm:$0xff]  ;;  %v76_v30 = vld [vmem:[%s4966_s1 + $0x1b0] sm:$0xff] }
  0xad   :  { %868 = vmatpush.msrb.mxu3 %v519_v36  ;;  %810 = vmatpush.msrb.mxu0 %v319_v37  ;;  %v435_v51 = vld [vmem:[%s4966_s1 + $0xce8] sm:$0xff]  ;;  %v140_v31 = vld [vmem:[%s4966_s1 + $0x3b0] sm:$0xff] }
  0xae   :  { %830 = vmatpush.msrb.mxu1 %v383_v38  ;;  %850 = vmatpush.msrb.mxu2 %v447_v39  ;;  %v503_v52 = vld [vmem:[%s4966_s1 + $0xf08] sm:$0xff]  ;;  %v204_v33 = vld [vmem:[%s4966_s1 + $0x5b0] sm:$0xff] }
  0xaf   :  { %869 = vmatpush.msrb.mxu3 %v515_v40  ;;  %811 = vmatpush.msrb.mxu0 %v315_v41  ;;  %v303_v53 = vld [vmem:[%s4966_s1 + $0x8c8] sm:$0xff]  ;;  %v272_v34 = vld [vmem:[%s4966_s1 + $0x7d0] sm:$0xff] }
  0xb0   :  { %831 = vmatpush.msrb.mxu1 %v379_v42  ;;  %851 = vmatpush.msrb.mxu2 %v443_v43  ;;  %v367_v54 = vld [vmem:[%s4966_s1 + $0xac8] sm:$0xff]  ;;  %v72_v35 = vld [vmem:[%s4966_s1 + $0x190] sm:$0xff] }
  0xb1   :  { %870 = vmatpush.msrb.mxu3 %v511_v44  ;;  %812 = vmatpush.msrb.mxu0 %v311_v45  ;;  %v431_v55 = vld [vmem:[%s4966_s1 + $0xcc8] sm:$0xff]  ;;  %v136_v36 = vld [vmem:[%s4966_s1 + $0x390] sm:$0xff] }
  0xb2   :  { %832 = vmatpush.msrb.mxu1 %v375_v46  ;;  %852 = vmatpush.msrb.mxu2 %v439_v47  ;;  %v499_v56 = vld [vmem:[%s4966_s1 + $0xee8] sm:$0xff]  ;;  %v200_v37 = vld [vmem:[%s4966_s1 + $0x590] sm:$0xff] }
  0xb3   :  { %871 = vmatpush.msrb.mxu3 %v507_v48  ;;  %813 = vmatpush.msrb.mxu0 %v307_v49  ;;  %v299_v57 = vld [vmem:[%s4966_s1 + $0x8a8] sm:$0xff]  ;;  %v268_v38 = vld [vmem:[%s4966_s1 + $0x7b0] sm:$0xff] }
  0xb4   :  { %833 = vmatpush.msrb.mxu1 %v371_v50  ;;  %853 = vmatpush.msrb.mxu2 %v435_v51  ;;  %v363_v58 = vld [vmem:[%s4966_s1 + $0xaa8] sm:$0xff]  ;;  %v68_v39 = vld [vmem:[%s4966_s1 + $0x170] sm:$0xff] }
  0xb5   :  { %872 = vmatpush.msrb.mxu3 %v503_v52  ;;  %814 = vmatpush.msrb.mxu0 %v303_v53  ;;  %v427_v59 = vld [vmem:[%s4966_s1 + $0xca8] sm:$0xff]  ;;  %v132_v40 = vld [vmem:[%s4966_s1 + $0x370] sm:$0xff] }
  0xb6   :  { %834 = vmatpush.msrb.mxu1 %v367_v54  ;;  %v495_v60 = vld [vmem:[%s4966_s1 + $0xec8] sm:$0xff]  ;;  %854 = vmatpush.msrb.mxu2 %v431_v55  ;;  %v196_v41 = vld [vmem:[%s4966_s1 + $0x570] sm:$0xff] }
  0xb7   :  { %873 = vmatpush.msrb.mxu3 %v499_v56  ;;  %v295_v61 = vld [vmem:[%s4966_s1 + $0x888] sm:$0xff]  ;;  %815 = vmatpush.msrb.mxu0 %v299_v57  ;;  %v264_v42 = vld [vmem:[%s4966_s1 + $0x790] sm:$0xff] }
  0xb8   :  { %v359_v62 = vld [vmem:[%s4966_s1 + $0xa88] sm:$0xff]  ;;  %835 = vmatpush.msrb.mxu1 %v363_v58  ;;  %855 = vmatpush.msrb.mxu2 %v427_v59  ;;  %v64_v43 = vld [vmem:[%s4966_s1 + $0x150] sm:$0xff] }
  0xb9   :  { %v423_v63 = vld [vmem:[%s4966_s1 + $0xc88] sm:$0xff]  ;;  %874 = vmatpush.msrb.mxu3 %v495_v60  ;;  %816 = vmatpush.msrb.mxu0 %v295_v61  ;;  %v128_v44 = vld [vmem:[%s4966_s1 + $0x350] sm:$0xff] }
  0xba   :  { %v491_v0 = vld [vmem:[%s4966_s1 + $0xea8] sm:$0xff]  ;;  %836 = vmatpush.msrb.mxu1 %v359_v62  ;;  %856 = vmatpush.msrb.mxu2 %v423_v63  ;;  %v192_v45 = vld [vmem:[%s4966_s1 + $0x550] sm:$0xff] }
  0xbb   :  { %v291_v4 = vld [vmem:[%s4966_s1 + $0x868] sm:$0xff]  ;;  %875 = vmatpush.msrb.mxu3 %v491_v0  ;;  %741 = vmatmul.f32.vlgmr.msra.gmra.mxu0 %v2537_v1  ;;  %v208_v1 = vld [vmem:[%s4966_s1 + $0x5d0] sm:$0xff] }
  0xbc   :  { %v355_v5 = vld [vmem:[%s4966_s1 + $0xa68] sm:$0xff]  ;;  %817 = vmatpush.msrb.mxu0 %v291_v4  ;;  %761 = vmatmul.f32.vlgmr.msra.gmra.mxu1 %v2539_v2  ;;  %v276_v2 = vld [vmem:[%s4966_s1 + $0x7f0] sm:$0xff] }
  0xbd   :  { %v419_v6 = vld [vmem:[%s4966_s1 + $0xc68] sm:$0xff]  ;;  %837 = vmatpush.msrb.mxu1 %v355_v5  ;;  %781 = vmatmul.f32.vlgmr.msra.gmra.mxu2 %v2541_v3  ;;  %v260_v46 = vld [vmem:[%s4966_s1 + $0x770] sm:$0xff] }
  0xbe   :  { %v487_v7 = vld [vmem:[%s4966_s1 + $0xe88] sm:$0xff]  ;;  %857 = vmatpush.msrb.mxu2 %v419_v6  ;;  %801 = vmatmul.f32.vlgmr.msra.gmra.mxu3 %v2561_v9  ;;  %v60_v47 = vld [vmem:[%s4966_s1 + $0x130] sm:$0xff] }
  0xbf   :  { %v287_v8 = vld [vmem:[%s4966_s1 + $0x848] sm:$0xff]  ;;  %876 = vmatpush.msrb.mxu3 %v487_v7  ;;  %v124_v48 = vld [vmem:[%s4966_s1 + $0x330] sm:$0xff] }
  0xc0   :  { %v351_v10 = vld [vmem:[%s4966_s1 + $0xa48] sm:$0xff]  ;;  %818 = vmatpush.msrb.mxu0 %v287_v8  ;;  %v188_v49 = vld [vmem:[%s4966_s1 + $0x530] sm:$0xff] }
  0xc1   :  { %v415_v11 = vld [vmem:[%s4966_s1 + $0xc48] sm:$0xff]  ;;  %838 = vmatpush.msrb.mxu1 %v351_v10  ;;  %v256_v50 = vld [vmem:[%s4966_s1 + $0x750] sm:$0xff] }
  0xc2   :  { %v483_v12 = vld [vmem:[%s4966_s1 + $0xe68] sm:$0xff]  ;;  %858 = vmatpush.msrb.mxu2 %v415_v11  ;;  %v56_v51 = vld [vmem:[%s4966_s1 + $0x110] sm:$0xff] }
  0xc3   :  { %v283_v13 = vld [vmem:[%s4966_s1 + $0x828] sm:$0xff]  ;;  %877 = vmatpush.msrb.mxu3 %v483_v12  ;;  %v120_v52 = vld [vmem:[%s4966_s1 + $0x310] sm:$0xff] }
  0xc4   :  { %v347_v14 = vld [vmem:[%s4966_s1 + $0xa28] sm:$0xff]  ;;  %819 = vmatpush.msrb.mxu0 %v283_v13  ;;  %v184_v53 = vld [vmem:[%s4966_s1 + $0x510] sm:$0xff] }
  0xc5   :  { %v411_v15 = vld [vmem:[%s4966_s1 + $0xc28] sm:$0xff]  ;;  %839 = vmatpush.msrb.mxu1 %v347_v14  ;;  %v252_v54 = vld [vmem:[%s4966_s1 + $0x730] sm:$0xff] }
  0xc6   :  { %v479_v16 = vld [vmem:[%s4966_s1 + $0xe48] sm:$0xff]  ;;  %859 = vmatpush.msrb.mxu2 %v411_v15  ;;  %v52_v55 = vld [vmem:[%s4966_s1 + $0xf0] sm:$0xff] }
  0xc7   :  { %v279_v17 = vld [vmem:[%s4966_s1 + $0x808] sm:$0xff]  ;;  %878 = vmatpush.msrb.mxu3 %v479_v16  ;;  %v116_v56 = vld [vmem:[%s4966_s1 + $0x2f0] sm:$0xff] }
  0xc8   :  { %v343_v18 = vld [vmem:[%s4966_s1 + $0xa08] sm:$0xff]  ;;  %820 = vmatpush.msrb.mxu0 %v279_v17  ;;  %v180_v57 = vld [vmem:[%s4966_s1 + $0x4f0] sm:$0xff] }
  0xc9   :  { %v407_v19 = vld [vmem:[%s4966_s1 + $0xc08] sm:$0xff]  ;;  %840 = vmatpush.msrb.mxu1 %v343_v18  ;;  %821 = vmatmul.f32.vlgmr.msrb.gmra.mxu0 %v2611_v26  ;;  %v248_v58 = vld [vmem:[%s4966_s1 + $0x710] sm:$0xff] }
  0xca   :  { %v475_v20 = vld [vmem:[%s4966_s1 + $0xe28] sm:$0xff]  ;;  %860 = vmatpush.msrb.mxu2 %v407_v19  ;;  %885 = vmatpush.msra.mxu0 %v84_v22  ;;  %v48_v59 = vld [vmem:[%s4966_s1 + $0xd0] sm:$0xff] }
  0xcb   :  { %879 = vmatpush.msrb.mxu3 %v475_v20  ;;  %v471_v25 = vld [vmem:[%s4966_s1 + $0xe08] sm:$0xff]  ;;  %905 = vmatpush.msra.mxu1 %v148_v23  ;;  %v112_v60 = vld [vmem:[%s4966_s1 + $0x2d0] sm:$0xff] }
  0xcc   :  { %925 = vmatpush.msra.mxu2 %v212_v24  ;;  %886 = vmatpush.msra.mxu0 %v80_v28  ;;  %v176_v61 = vld [vmem:[%s4966_s1 + $0x4d0] sm:$0xff] }
  0xcd   :  { %880 = vmatpush.msrb.mxu3 %v471_v25  ;;  %906 = vmatpush.msra.mxu1 %v144_v29  ;;  %v244_v62 = vld [vmem:[%s4966_s1 + $0x6f0] sm:$0xff] }
  0xce   :  { %926 = vmatpush.msra.mxu2 %v208_v1  ;;  %887 = vmatpush.msra.mxu0 %v76_v30  ;;  %v44_v63 = vld [vmem:[%s4966_s1 + $0xb0] sm:$0xff] }
  0xcf   :  { %945 = vmatpush.msra.mxu3 %v276_v2  ;;  %907 = vmatpush.msra.mxu1 %v140_v31  ;;  %v108_v0 = vld [vmem:[%s4966_s1 + $0x2b0] sm:$0xff] }
  0xd0   :  { %927 = vmatpush.msra.mxu2 %v204_v33  ;;  %888 = vmatpush.msra.mxu0 %v72_v35  ;;  %v172_v4 = vld [vmem:[%s4966_s1 + $0x4b0] sm:$0xff] }
  0xd1   :  { %946 = vmatpush.msra.mxu3 %v272_v34  ;;  %908 = vmatpush.msra.mxu1 %v136_v36  ;;  %v240_v5 = vld [vmem:[%s4966_s1 + $0x6d0] sm:$0xff] }
  0xd2   :  { %928 = vmatpush.msra.mxu2 %v200_v37  ;;  %889 = vmatpush.msra.mxu0 %v68_v39  ;;  %v40_v6 = vld [vmem:[%s4966_s1 + $0x90] sm:$0xff] }
  0xd3   :  { %947 = vmatpush.msra.mxu3 %v268_v38  ;;  %861 = vmatmul.f32.vlgmr.msrb.gmra.mxu2 %v2597_v21  ;;  %v104_v7 = vld [vmem:[%s4966_s1 + $0x290] sm:$0xff] }
  0xd4   :  { %909 = vmatpush.msra.mxu1 %v132_v40  ;;  %929 = vmatpush.msra.mxu2 %v196_v41  ;;  %v168_v8 = vld [vmem:[%s4966_s1 + $0x490] sm:$0xff] }
  0xd5   :  { %948 = vmatpush.msra.mxu3 %v264_v42  ;;  %890 = vmatpush.msra.mxu0 %v64_v43  ;;  %v236_v10 = vld [vmem:[%s4966_s1 + $0x6b0] sm:$0xff] }
  0xd6   :  { %881 = vmatmul.f32.vlgmr.msrb.gmra.mxu3 %v2614_v27  ;;  %910 = vmatpush.msra.mxu1 %v128_v44  ;;  %v36_v11 = vld [vmem:[%s4966_s1 + $0x70] sm:$0xff] }
  0xd7   :  { %930 = vmatpush.msra.mxu2 %v192_v45  ;;  %949 = vmatpush.msra.mxu3 %v260_v46  ;;  %v100_v12 = vld [vmem:[%s4966_s1 + $0x270] sm:$0xff] }
  0xd8   :  { %841 = vmatmul.f32.vlgmr.msrb.gmra.mxu1 %v2629_v32  ;;  %891 = vmatpush.msra.mxu0 %v60_v47  ;;  %v164_v13 = vld [vmem:[%s4966_s1 + $0x470] sm:$0xff] }
  0xd9   :  { %911 = vmatpush.msra.mxu1 %v124_v48  ;;  %931 = vmatpush.msra.mxu2 %v188_v49  ;;  %v232_v14 = vld [vmem:[%s4966_s1 + $0x690] sm:$0xff] }
  0xda   :  { %950 = vmatpush.msra.mxu3 %v256_v50  ;;  %892 = vmatpush.msra.mxu0 %v56_v51  ;;  %v32_v15 = vld [vmem:[%s4966_s1 + $0x50] sm:$0xff] }
  0xdb   :  { %912 = vmatpush.msra.mxu1 %v120_v52  ;;  %932 = vmatpush.msra.mxu2 %v184_v53  ;;  %v96_v16 = vld [vmem:[%s4966_s1 + $0x250] sm:$0xff] }
  0xdc   :  { %951 = vmatpush.msra.mxu3 %v252_v54  ;;  %893 = vmatpush.msra.mxu0 %v52_v55  ;;  %v160_v17 = vld [vmem:[%s4966_s1 + $0x450] sm:$0xff] }
  0xdd   :  { %913 = vmatpush.msra.mxu1 %v116_v56  ;;  %933 = vmatpush.msra.mxu2 %v180_v57  ;;  %v228_v18 = vld [vmem:[%s4966_s1 + $0x670] sm:$0xff] }
  0xde   :  { %952 = vmatpush.msra.mxu3 %v248_v58  ;;  %894 = vmatpush.msra.mxu0 %v48_v59  ;;  %v28_v19 = vld [vmem:[%s4966_s1 + $0x30] sm:$0xff] }
  0xdf   :  { %914 = vmatpush.msra.mxu1 %v112_v60  ;;  %934 = vmatpush.msra.mxu2 %v176_v61  ;;  %v92_v20 = vld [vmem:[%s4966_s1 + $0x230] sm:$0xff] }
  0xe0   :  { %953 = vmatpush.msra.mxu3 %v244_v62  ;;  %895 = vmatpush.msra.mxu0 %v44_v63  ;;  %v156_v22 = vld [vmem:[%s4966_s1 + $0x430] sm:$0xff] }
  0xe1   :  { %915 = vmatpush.msra.mxu1 %v108_v0  ;;  %935 = vmatpush.msra.mxu2 %v172_v4  ;;  %v224_v23 = vld [vmem:[%s4966_s1 + $0x650] sm:$0xff] }
  0xe2   :  { %954 = vmatpush.msra.mxu3 %v240_v5  ;;  %896 = vmatpush.msra.mxu0 %v40_v6  ;;  %v24_v24 = vld [vmem:[%s4966_s1 + $0x10] sm:$0xff] }
  0xe3   :  { %916 = vmatpush.msra.mxu1 %v104_v7  ;;  %936 = vmatpush.msra.mxu2 %v168_v8  ;;  %v88_v25 = vld [vmem:[%s4966_s1 + $0x210] sm:$0xff] }
  0xe4   :  { %955 = vmatpush.msra.mxu3 %v236_v10  ;;  %897 = vmatpush.msra.mxu0 %v36_v11  ;;  %v152_v28 = vld [vmem:[%s4966_s1 + $0x410] sm:$0xff] }
  0xe5   :  { %917 = vmatpush.msra.mxu1 %v100_v12  ;;  %937 = vmatpush.msra.mxu2 %v164_v13  ;;  %v220_v29 = vld [vmem:[%s4966_s1 + $0x630] sm:$0xff] }
  0xe6   :  { %956 = vmatpush.msra.mxu3 %v232_v14  ;;  %898 = vmatpush.msra.mxu0 %v32_v15  ;;  %v340_v1 = vld [vmem:[%s4966_s1 + $0x9f0] sm:$0xff] }
  0xe7   :  { %918 = vmatpush.msra.mxu1 %v96_v16  ;;  %938 = vmatpush.msra.mxu2 %v160_v17  ;;  %v404_v2 = vld [vmem:[%s4966_s1 + $0xbf0] sm:$0xff] }
  0xe8   :  { %957 = vmatpush.msra.mxu3 %v228_v18  ;;  %899 = vmatpush.msra.mxu0 %v28_v19  ;;  %v468_v30 = vld [vmem:[%s4966_s1 + $0xdf0] sm:$0xff] }
  0xe9   :  { %919 = vmatpush.msra.mxu1 %v92_v20  ;;  %939 = vmatpush.msra.mxu2 %v156_v22  ;;  %v216_v31 = vld [vmem:[%s4966_s1 + $0x610] sm:$0xff] }
  0xea   :  { %958 = vmatpush.msra.mxu3 %v224_v23  ;;  %900 = vmatpush.msra.mxu0 %v24_v24  ;;  %v336_v33 = vld [vmem:[%s4966_s1 + $0x9d0] sm:$0xff] }
  0xeb   :  { %920 = vmatpush.msra.mxu1 %v88_v25  ;;  %940 = vmatpush.msra.mxu2 %v152_v28  ;;  %v400_v34 = vld [vmem:[%s4966_s1 + $0xbd0] sm:$0xff]  ;;  %v3311_v25 = vld.sshfl [vmem:[#allocation1] sm:$0xff pattern:$0x73625140] }
  0xec   :  { %959 = vmatpush.msra.mxu3 %v220_v29  ;;  %965 = vmatpush.msrb.mxu0 %v340_v1  ;;  %v464_v35 = vld [vmem:[%s4966_s1 + $0xdd0] sm:$0xff] }
  0xed   :  { %985 = vmatpush.msrb.mxu1 %v404_v2  ;;  %v532_v36 = vld [vmem:[%s4966_s1 + $0xff0] sm:$0xff]  ;;  %1005 = vmatpush.msrb.mxu2 %v468_v30 }
  0xee   :  { %960 = vmatpush.msra.mxu3 %v216_v31  ;;  %v332_v37 = vld [vmem:[%s4966_s1 + $0x9b0] sm:$0xff]  ;;  %966 = vmatpush.msrb.mxu0 %v336_v33 }
  0xef   :  { %v396_v38 = vld [vmem:[%s4966_s1 + $0xbb0] sm:$0xff]  ;;  %986 = vmatpush.msrb.mxu1 %v400_v34  ;;  %1006 = vmatpush.msrb.mxu2 %v464_v35  ;;  %v85_v35 = vld [vmem:[%s4966_s1 + $0x1f8] sm:$0xff] }
  0xf0   :  { %v460_v39 = vld [vmem:[%s4966_s1 + $0xdb0] sm:$0xff]  ;;  %1025 = vmatpush.msrb.mxu3 %v532_v36  ;;  %967 = vmatpush.msrb.mxu0 %v332_v37  ;;  %v149_v36 = vld [vmem:[%s4966_s1 + $0x3f8] sm:$0xff] }
  0xf1   :  { %v528_v40 = vld [vmem:[%s4966_s1 + $0xfd0] sm:$0xff]  ;;  %987 = vmatpush.msrb.mxu1 %v396_v38  ;;  %1007 = vmatpush.msrb.mxu2 %v460_v39  ;;  %v213_v37 = vld [vmem:[%s4966_s1 + $0x5f8] sm:$0xff] }
  0xf2   :  { %v328_v41 = vld [vmem:[%s4966_s1 + $0x990] sm:$0xff]  ;;  %1026 = vmatpush.msrb.mxu3 %v528_v40  ;;  %941 = vmatmul.f32.vlgmr.msra.gmra.mxu2 %v2541_v3  ;;  %v81_v39 = vld [vmem:[%s4966_s1 + $0x1d8] sm:$0xff] }
  0xf3   :  { %v392_v42 = vld [vmem:[%s4966_s1 + $0xb90] sm:$0xff]  ;;  %968 = vmatpush.msrb.mxu0 %v328_v41  ;;  %961 = vmatmul.f32.vlgmr.msra.gmra.mxu3 %v2561_v9  ;;  %v3330_v9 = vld.sshfl [vmem:[#allocation1 + $0x8] sm:$0xff pattern:$0x73625140]  ;;  %v145_v40 = vld [vmem:[%s4966_s1 + $0x3d8] sm:$0xff] }
  0xf4   :  { %v456_v43 = vld [vmem:[%s4966_s1 + $0xd90] sm:$0xff]  ;;  %988 = vmatpush.msrb.mxu1 %v392_v42  ;;  %901 = vmatmul.f32.vlgmr.msra.gmra.mxu0 %v3311_v25  ;;  %v209_v41 = vld [vmem:[%s4966_s1 + $0x5d8] sm:$0xff] }
  0xf5   :  { %v524_v44 = vld [vmem:[%s4966_s1 + $0xfb0] sm:$0xff]  ;;  %1008 = vmatpush.msrb.mxu2 %v456_v43  ;;  %921 = vmatmul.f32.vlgmr.msra.gmra.mxu1 %v3330_v9  ;;  %v77_v42 = vld [vmem:[%s4966_s1 + $0x1b8] sm:$0xff] }
  0xf6   :  { %v324_v45 = vld [vmem:[%s4966_s1 + $0x970] sm:$0xff]  ;;  %1027 = vmatpush.msrb.mxu3 %v524_v44  ;;  %v141_v43 = vld [vmem:[%s4966_s1 + $0x3b8] sm:$0xff] }
  0xf7   :  { %v388_v46 = vld [vmem:[%s4966_s1 + $0xb70] sm:$0xff]  ;;  %969 = vmatpush.msrb.mxu0 %v324_v45  ;;  %v273_v44 = vld [vmem:[%s4966_s1 + $0x7d8] sm:$0xff] }
  0xf8   :  { %v452_v47 = vld [vmem:[%s4966_s1 + $0xd70] sm:$0xff]  ;;  %989 = vmatpush.msrb.mxu1 %v388_v46  ;;  %v137_v45 = vld [vmem:[%s4966_s1 + $0x398] sm:$0xff] }
  0xf9   :  { %v520_v48 = vld [vmem:[%s4966_s1 + $0xf90] sm:$0xff]  ;;  %1009 = vmatpush.msrb.mxu2 %v452_v47  ;;  %v201_v46 = vld [vmem:[%s4966_s1 + $0x598] sm:$0xff] }
  0xfa   :  { %v320_v49 = vld [vmem:[%s4966_s1 + $0x950] sm:$0xff]  ;;  %1028 = vmatpush.msrb.mxu3 %v520_v48  ;;  %v269_v47 = vld [vmem:[%s4966_s1 + $0x7b8] sm:$0xff] }
  0xfb   :  { %v384_v50 = vld [vmem:[%s4966_s1 + $0xb50] sm:$0xff]  ;;  %970 = vmatpush.msrb.mxu0 %v320_v49  ;;  %v133_v48 = vld [vmem:[%s4966_s1 + $0x378] sm:$0xff] }
  0xfc   :  { %v448_v51 = vld [vmem:[%s4966_s1 + $0xd50] sm:$0xff]  ;;  %990 = vmatpush.msrb.mxu1 %v384_v50  ;;  %v197_v49 = vld [vmem:[%s4966_s1 + $0x578] sm:$0xff] }
  0xfd   :  { %v516_v52 = vld [vmem:[%s4966_s1 + $0xf70] sm:$0xff]  ;;  %1010 = vmatpush.msrb.mxu2 %v448_v51  ;;  %v265_v50 = vld [vmem:[%s4966_s1 + $0x798] sm:$0xff] }
  0xfe   :  { %v316_v53 = vld [vmem:[%s4966_s1 + $0x930] sm:$0xff]  ;;  %1029 = vmatpush.msrb.mxu3 %v516_v52  ;;  %v65_v51 = vld [vmem:[%s4966_s1 + $0x158] sm:$0xff] }
  0xff   :  { %v380_v54 = vld [vmem:[%s4966_s1 + $0xb30] sm:$0xff]  ;;  %971 = vmatpush.msrb.mxu0 %v316_v53  ;;  %v129_v52 = vld [vmem:[%s4966_s1 + $0x358] sm:$0xff] }
 0x100   :  { %v444_v55 = vld [vmem:[%s4966_s1 + $0xd30] sm:$0xff]  ;;  %991 = vmatpush.msrb.mxu1 %v380_v54  ;;  %v193_v53 = vld [vmem:[%s4966_s1 + $0x558] sm:$0xff] }
 0x101   :  { %v512_v56 = vld [vmem:[%s4966_s1 + $0xf50] sm:$0xff]  ;;  %1011 = vmatpush.msrb.mxu2 %v444_v55  ;;  %v261_v54 = vld [vmem:[%s4966_s1 + $0x778] sm:$0xff] }
 0x102   :  { %v312_v57 = vld [vmem:[%s4966_s1 + $0x910] sm:$0xff]  ;;  %1030 = vmatpush.msrb.mxu3 %v512_v56  ;;  %v61_v55 = vld [vmem:[%s4966_s1 + $0x138] sm:$0xff] }
 0x103   :  { %v376_v58 = vld [vmem:[%s4966_s1 + $0xb10] sm:$0xff]  ;;  %972 = vmatpush.msrb.mxu0 %v312_v57  ;;  %v125_v56 = vld [vmem:[%s4966_s1 + $0x338] sm:$0xff] }
 0x104   :  { %v440_v59 = vld [vmem:[%s4966_s1 + $0xd10] sm:$0xff]  ;;  %992 = vmatpush.msrb.mxu1 %v376_v58  ;;  %v189_v57 = vld [vmem:[%s4966_s1 + $0x538] sm:$0xff] }
 0x105   :  { %v508_v60 = vld [vmem:[%s4966_s1 + $0xf30] sm:$0xff]  ;;  %1012 = vmatpush.msrb.mxu2 %v440_v59  ;;  %v257_v58 = vld [vmem:[%s4966_s1 + $0x758] sm:$0xff] }
 0x106   :  { %v308_v61 = vld [vmem:[%s4966_s1 + $0x8f0] sm:$0xff]  ;;  %1031 = vmatpush.msrb.mxu3 %v508_v60  ;;  %v57_v59 = vld [vmem:[%s4966_s1 + $0x118] sm:$0xff] }
 0x107   :  { %v372_v62 = vld [vmem:[%s4966_s1 + $0xaf0] sm:$0xff]  ;;  %973 = vmatpush.msrb.mxu0 %v308_v61  ;;  %v121_v60 = vld [vmem:[%s4966_s1 + $0x318] sm:$0xff] }
 0x108   :  { %v436_v63 = vld [vmem:[%s4966_s1 + $0xcf0] sm:$0xff]  ;;  %993 = vmatpush.msrb.mxu1 %v372_v62  ;;  %v185_v61 = vld [vmem:[%s4966_s1 + $0x518] sm:$0xff] }
 0x109   :  { %v504_v0 = vld [vmem:[%s4966_s1 + $0xf10] sm:$0xff]  ;;  %1013 = vmatpush.msrb.mxu2 %v436_v63  ;;  %v253_v62 = vld [vmem:[%s4966_s1 + $0x738] sm:$0xff] }
 0x10a   :  { %v304_v4 = vld [vmem:[%s4966_s1 + $0x8d0] sm:$0xff]  ;;  %1032 = vmatpush.msrb.mxu3 %v504_v0  ;;  %v53_v63 = vld [vmem:[%s4966_s1 + $0xf8] sm:$0xff] }
 0x10b   :  { %v368_v5 = vld [vmem:[%s4966_s1 + $0xad0] sm:$0xff]  ;;  %974 = vmatpush.msrb.mxu0 %v304_v4  ;;  %v117_v0 = vld [vmem:[%s4966_s1 + $0x2f8] sm:$0xff] }
 0x10c   :  { %v432_v6 = vld [vmem:[%s4966_s1 + $0xcd0] sm:$0xff]  ;;  %994 = vmatpush.msrb.mxu1 %v368_v5  ;;  %v181_v4 = vld [vmem:[%s4966_s1 + $0x4f8] sm:$0xff] }
 0x10d   :  { %v500_v7 = vld [vmem:[%s4966_s1 + $0xef0] sm:$0xff]  ;;  %1014 = vmatpush.msrb.mxu2 %v432_v6  ;;  %v249_v5 = vld [vmem:[%s4966_s1 + $0x718] sm:$0xff] }
 0x10e   :  { %v300_v8 = vld [vmem:[%s4966_s1 + $0x8b0] sm:$0xff]  ;;  %1033 = vmatpush.msrb.mxu3 %v500_v7  ;;  %v49_v6 = vld [vmem:[%s4966_s1 + $0xd8] sm:$0xff] }
 0x10f   :  { %v364_v10 = vld [vmem:[%s4966_s1 + $0xab0] sm:$0xff]  ;;  %975 = vmatpush.msrb.mxu0 %v300_v8  ;;  %v113_v7 = vld [vmem:[%s4966_s1 + $0x2d8] sm:$0xff] }
 0x110   :  { %v428_v11 = vld [vmem:[%s4966_s1 + $0xcb0] sm:$0xff]  ;;  %995 = vmatpush.msrb.mxu1 %v364_v10  ;;  %v177_v8 = vld [vmem:[%s4966_s1 + $0x4d8] sm:$0xff] }
 0x111   :  { %v496_v12 = vld [vmem:[%s4966_s1 + $0xed0] sm:$0xff]  ;;  %1015 = vmatpush.msrb.mxu2 %v428_v11  ;;  %v245_v10 = vld [vmem:[%s4966_s1 + $0x6f8] sm:$0xff] }
 0x112   :  { %v296_v13 = vld [vmem:[%s4966_s1 + $0x890] sm:$0xff]  ;;  %1034 = vmatpush.msrb.mxu3 %v496_v12  ;;  %v45_v11 = vld [vmem:[%s4966_s1 + $0xb8] sm:$0xff] }
 0x113   :  { %v360_v14 = vld [vmem:[%s4966_s1 + $0xa90] sm:$0xff]  ;;  %976 = vmatpush.msrb.mxu0 %v296_v13  ;;  %v109_v12 = vld [vmem:[%s4966_s1 + $0x2b8] sm:$0xff] }
 0x114   :  { %v424_v15 = vld [vmem:[%s4966_s1 + $0xc90] sm:$0xff]  ;;  %996 = vmatpush.msrb.mxu1 %v360_v14  ;;  %v173_v13 = vld [vmem:[%s4966_s1 + $0x4b8] sm:$0xff] }
 0x115   :  { %v492_v16 = vld [vmem:[%s4966_s1 + $0xeb0] sm:$0xff]  ;;  %1016 = vmatpush.msrb.mxu2 %v424_v15  ;;  %v241_v14 = vld [vmem:[%s4966_s1 + $0x6d8] sm:$0xff] }
 0x116   :  { %v292_v17 = vld [vmem:[%s4966_s1 + $0x870] sm:$0xff]  ;;  %1035 = vmatpush.msrb.mxu3 %v492_v16  ;;  %v41_v15 = vld [vmem:[%s4966_s1 + $0x98] sm:$0xff] }
 0x117   :  { %v356_v18 = vld [vmem:[%s4966_s1 + $0xa70] sm:$0xff]  ;;  %977 = vmatpush.msrb.mxu0 %v292_v17  ;;  %v105_v16 = vld [vmem:[%s4966_s1 + $0x298] sm:$0xff] }
 0x118   :  { %v420_v19 = vld [vmem:[%s4966_s1 + $0xc70] sm:$0xff]  ;;  %997 = vmatpush.msrb.mxu1 %v356_v18  ;;  %v169_v17 = vld [vmem:[%s4966_s1 + $0x498] sm:$0xff] }
 0x119   :  { %v488_v20 = vld [vmem:[%s4966_s1 + $0xe90] sm:$0xff]  ;;  %1017 = vmatpush.msrb.mxu2 %v420_v19  ;;  %v237_v18 = vld [vmem:[%s4966_s1 + $0x6b8] sm:$0xff] }
 0x11a   :  { %v288_v22 = vld [vmem:[%s4966_s1 + $0x850] sm:$0xff]  ;;  %1036 = vmatpush.msrb.mxu3 %v488_v20  ;;  %v37_v19 = vld [vmem:[%s4966_s1 + $0x78] sm:$0xff] }
 0x11b   :  { %v352_v23 = vld [vmem:[%s4966_s1 + $0xa50] sm:$0xff]  ;;  %978 = vmatpush.msrb.mxu0 %v288_v22  ;;  %v101_v20 = vld [vmem:[%s4966_s1 + $0x278] sm:$0xff] }
 0x11c   :  { %v416_v24 = vld [vmem:[%s4966_s1 + $0xc50] sm:$0xff]  ;;  %998 = vmatpush.msrb.mxu1 %v352_v23  ;;  %v165_v22 = vld [vmem:[%s4966_s1 + $0x478] sm:$0xff] }
 0x11d   :  { %v484_v3 = vld [vmem:[%s4966_s1 + $0xe70] sm:$0xff]  ;;  %1018 = vmatpush.msrb.mxu2 %v416_v24  ;;  %v233_v23 = vld [vmem:[%s4966_s1 + $0x698] sm:$0xff] }
 0x11e   :  { %v284_v28 = vld [vmem:[%s4966_s1 + $0x830] sm:$0xff]  ;;  %1037 = vmatpush.msrb.mxu3 %v484_v3  ;;  %v33_v24 = vld [vmem:[%s4966_s1 + $0x58] sm:$0xff] }
 0x11f   :  { %v348_v29 = vld [vmem:[%s4966_s1 + $0xa30] sm:$0xff]  ;;  %979 = vmatpush.msrb.mxu0 %v284_v28  ;;  %v97_v3 = vld [vmem:[%s4966_s1 + $0x258] sm:$0xff] }
 0x120   :  { %v412_v1 = vld [vmem:[%s4966_s1 + $0xc30] sm:$0xff]  ;;  %999 = vmatpush.msrb.mxu1 %v348_v29  ;;  %v161_v28 = vld [vmem:[%s4966_s1 + $0x458] sm:$0xff] }
 0x121   :  { %v480_v2 = vld [vmem:[%s4966_s1 + $0xe50] sm:$0xff]  ;;  %1019 = vmatpush.msrb.mxu2 %v412_v1  ;;  %v229_v29 = vld [vmem:[%s4966_s1 + $0x678] sm:$0xff] }
 0x122   :  { %v280_v30 = vld [vmem:[%s4966_s1 + $0x810] sm:$0xff]  ;;  %1038 = vmatpush.msrb.mxu3 %v480_v2  ;;  %v29_v1 = vld [vmem:[%s4966_s1 + $0x38] sm:$0xff] }
 0x123   :  { %v344_v31 = vld [vmem:[%s4966_s1 + $0xa10] sm:$0xff]  ;;  %980 = vmatpush.msrb.mxu0 %v280_v30  ;;  %v93_v2 = vld [vmem:[%s4966_s1 + $0x238] sm:$0xff] }
 0x124   :  { %v408_v33 = vld [vmem:[%s4966_s1 + $0xc10] sm:$0xff]  ;;  %1000 = vmatpush.msrb.mxu1 %v344_v31  ;;  %981 = vmatmul.f32.vlgmr.msrb.gmra.mxu0 %v2611_v26  ;;  %v205_v26 = vld [vmem:[%s4966_s1 + $0x5b8] sm:$0xff] }
 0x125   :  { %v476_v34 = vld [vmem:[%s4966_s1 + $0xe30] sm:$0xff]  ;;  %1020 = vmatpush.msrb.mxu2 %v408_v33  ;;  %1045 = vmatpush.msra.mxu0 %v85_v35  ;;  %v157_v30 = vld [vmem:[%s4966_s1 + $0x438] sm:$0xff] }
 0x126   :  { %1039 = vmatpush.msrb.mxu3 %v476_v34  ;;  %v472_v38 = vld [vmem:[%s4966_s1 + $0xe10] sm:$0xff]  ;;  %1021 = vmatmul.f32.vlgmr.msrb.gmra.mxu2 %v2597_v21  ;;  %v277_v21 = vld [vmem:[%s4966_s1 + $0x7f8] sm:$0xff] }
 0x127   :  { %1065 = vmatpush.msra.mxu1 %v149_v36  ;;  %1085 = vmatpush.msra.mxu2 %v213_v37  ;;  %v225_v31 = vld [vmem:[%s4966_s1 + $0x658] sm:$0xff] }
 0x128   :  { %1040 = vmatpush.msrb.mxu3 %v472_v38  ;;  %1046 = vmatpush.msra.mxu0 %v81_v39  ;;  %v25_v33 = vld [vmem:[%s4966_s1 + $0x18] sm:$0xff] }
 0x129   :  { %1041 = vmatmul.f32.vlgmr.msrb.gmra.mxu3 %v2614_v27  ;;  %1066 = vmatpush.msra.mxu1 %v145_v40  ;;  %v73_v27 = vld [vmem:[%s4966_s1 + $0x198] sm:$0xff] }
 0x12a   :  { %1086 = vmatpush.msra.mxu2 %v209_v41  ;;  %1105 = vmatpush.msra.mxu3 %v277_v21  ;;  %v89_v34 = vld [vmem:[%s4966_s1 + $0x218] sm:$0xff] }
 0x12b   :  { %1001 = vmatmul.f32.vlgmr.msrb.gmra.mxu1 %v2629_v32  ;;  %1047 = vmatpush.msra.mxu0 %v77_v42  ;;  %v69_v32 = vld [vmem:[%s4966_s1 + $0x178] sm:$0xff] }
 0x12c   :  { %1067 = vmatpush.msra.mxu1 %v141_v43  ;;  %1087 = vmatpush.msra.mxu2 %v205_v26  ;;  %v153_v35 = vld [vmem:[%s4966_s1 + $0x418] sm:$0xff] }
 0x12d   :  { %1106 = vmatpush.msra.mxu3 %v273_v44  ;;  %1048 = vmatpush.msra.mxu0 %v73_v27  ;;  %v221_v36 = vld [vmem:[%s4966_s1 + $0x638] sm:$0xff] }
 0x12e   :  { %1068 = vmatpush.msra.mxu1 %v137_v45  ;;  %1088 = vmatpush.msra.mxu2 %v201_v46  ;;  %v341_v37 = vld [vmem:[%s4966_s1 + $0x9f8] sm:$0xff] }
 0x12f   :  { %1107 = vmatpush.msra.mxu3 %v269_v47  ;;  %1049 = vmatpush.msra.mxu0 %v69_v32  ;;  %v405_v38 = vld [vmem:[%s4966_s1 + $0xbf8] sm:$0xff] }
 0x130   :  { %1069 = vmatpush.msra.mxu1 %v133_v48  ;;  %1089 = vmatpush.msra.mxu2 %v197_v49  ;;  %v469_v39 = vld [vmem:[%s4966_s1 + $0xdf8] sm:$0xff] }
 0x131   :  { %1108 = vmatpush.msra.mxu3 %v265_v50  ;;  %1050 = vmatpush.msra.mxu0 %v65_v51  ;;  %v217_v40 = vld [vmem:[%s4966_s1 + $0x618] sm:$0xff] }
 0x132   :  { %1070 = vmatpush.msra.mxu1 %v129_v52  ;;  %1090 = vmatpush.msra.mxu2 %v193_v53  ;;  %v337_v41 = vld [vmem:[%s4966_s1 + $0x9d8] sm:$0xff] }
 0x133   :  { %1109 = vmatpush.msra.mxu3 %v261_v54  ;;  %1051 = vmatpush.msra.mxu0 %v61_v55  ;;  %v401_v21 = vld [vmem:[%s4966_s1 + $0xbd8] sm:$0xff] }
 0x134   :  { %1071 = vmatpush.msra.mxu1 %v125_v56  ;;  %1091 = vmatpush.msra.mxu2 %v189_v57  ;;  %v465_v42 = vld [vmem:[%s4966_s1 + $0xdd8] sm:$0xff] }
 0x135   :  { %1110 = vmatpush.msra.mxu3 %v257_v58  ;;  %1052 = vmatpush.msra.mxu0 %v57_v59  ;;  %v533_v43 = vld [vmem:[%s4966_s1 + $0xff8] sm:$0xff] }
 0x136   :  { %1072 = vmatpush.msra.mxu1 %v121_v60  ;;  %1092 = vmatpush.msra.mxu2 %v185_v61  ;;  %v333_v26 = vld [vmem:[%s4966_s1 + $0x9b8] sm:$0xff]  ;;  %v3625_v61 = vpop.f32.mrf.mxu0 }
 0x137   :  { %1111 = vmatpush.msra.mxu3 %v253_v62  ;;  %1053 = vmatpush.msra.mxu0 %v53_v63  ;;  %v397_v44 = vld [vmem:[%s4966_s1 + $0xbb8] sm:$0xff] }
 0x138   :  { %1073 = vmatpush.msra.mxu1 %v117_v0  ;;  %1093 = vmatpush.msra.mxu2 %v181_v4  ;;  %v461_v27 = vld [vmem:[%s4966_s1 + $0xdb8] sm:$0xff] }
 0x139   :  { %1112 = vmatpush.msra.mxu3 %v249_v5  ;;  %1054 = vmatpush.msra.mxu0 %v49_v6  ;;  %v529_v45 = vld [vmem:[%s4966_s1 + $0xfd8] sm:$0xff] }
 0x13a   :  { %1074 = vmatpush.msra.mxu1 %v113_v7  ;;  %1094 = vmatpush.msra.mxu2 %v177_v8  ;;  %v329_v46 = vld [vmem:[%s4966_s1 + $0x998] sm:$0xff] }
 0x13b   :  { %1113 = vmatpush.msra.mxu3 %v245_v10  ;;  %1055 = vmatpush.msra.mxu0 %v45_v11  ;;  %v393_v47 = vld [vmem:[%s4966_s1 + $0xb98] sm:$0xff]  ;;  %v3651_v10 = vpop.f32.mrf.mxu1 }
 0x13c   :  { %1075 = vmatpush.msra.mxu1 %v109_v12  ;;  %1095 = vmatpush.msra.mxu2 %v173_v13  ;;  %v457_v32 = vld [vmem:[%s4966_s1 + $0xd98] sm:$0xff] }
 0x13d   :  { %1114 = vmatpush.msra.mxu3 %v241_v14  ;;  %1056 = vmatpush.msra.mxu0 %v41_v15  ;;  %v525_v48 = vld [vmem:[%s4966_s1 + $0xfb8] sm:$0xff] }
 0x13e   :  { %1076 = vmatpush.msra.mxu1 %v105_v16  ;;  %1096 = vmatpush.msra.mxu2 %v169_v17  ;;  %v325_v49 = vld [vmem:[%s4966_s1 + $0x978] sm:$0xff] }
 0x13f   :  { %1115 = vmatpush.msra.mxu3 %v237_v18  ;;  %1057 = vmatpush.msra.mxu0 %v37_v19  ;;  %v389_v50 = vld [vmem:[%s4966_s1 + $0xb78] sm:$0xff]  ;;  %v3677_v19 = vpop.f32.mrf.mxu2 }
 0x140   :  { %1077 = vmatpush.msra.mxu1 %v101_v20  ;;  %1097 = vmatpush.msra.mxu2 %v165_v22  ;;  %v453_v51 = vld [vmem:[%s4966_s1 + $0xd78] sm:$0xff] }
 0x141   :  { %1116 = vmatpush.msra.mxu3 %v233_v23  ;;  %1058 = vmatpush.msra.mxu0 %v33_v24  ;;  %v521_v52 = vld [vmem:[%s4966_s1 + $0xf98] sm:$0xff] }
 0x142   :  { %1078 = vmatpush.msra.mxu1 %v97_v3  ;;  %1098 = vmatpush.msra.mxu2 %v161_v28  ;;  %v321_v53 = vld [vmem:[%s4966_s1 + $0x958] sm:$0xff]  ;;  %v3691_v3 = vpop.f32.mrf.mxu0 }
 0x143   :  { %1117 = vmatpush.msra.mxu3 %v229_v29  ;;  %1059 = vmatpush.msra.mxu0 %v29_v1  ;;  %v385_v54 = vld [vmem:[%s4966_s1 + $0xb58] sm:$0xff] }
 0x144   :  { %1079 = vmatpush.msra.mxu1 %v93_v2  ;;  %1099 = vmatpush.msra.mxu2 %v157_v30  ;;  %v449_v55 = vld [vmem:[%s4966_s1 + $0xd58] sm:$0xff]  ;;  %v3702_v2 = vpop.f32.mrf.mxu3 }
 0x145   :  { %1118 = vmatpush.msra.mxu3 %v225_v31  ;;  %1060 = vmatpush.msra.mxu0 %v25_v33  ;;  %v517_v56 = vld [vmem:[%s4966_s1 + $0xf78] sm:$0xff]  ;;  %v2114_v31 = vld.sshfl [vmem:[#allocation1 + $0x10] sm:$0xff pattern:$0x73625140] }
 0x146   :  { %1080 = vmatpush.msra.mxu1 %v89_v34  ;;  %1100 = vmatpush.msra.mxu2 %v153_v35  ;;  %v317_v57 = vld [vmem:[%s4966_s1 + $0x938] sm:$0xff]  ;;  %v3713_v34 = vld [vmem:[%s4968_s2] sm:$0xf]  ;;  %v3715_v35 = vpop.f32.mrf.mxu1 }
 0x147   :  { %1119 = vmatpush.msra.mxu3 %v221_v36  ;;  %1125 = vmatpush.msrb.mxu0 %v341_v37  ;;  %v381_v58 = vld [vmem:[%s4966_s1 + $0xb38] sm:$0xff] }
 0x148   :  { %1145 = vmatpush.msrb.mxu1 %v405_v38  ;;  %1165 = vmatpush.msrb.mxu2 %v469_v39  ;;  %v445_v59 = vld [vmem:[%s4966_s1 + $0xd38] sm:$0xff] }
 0x149   :  { %1120 = vmatpush.msra.mxu3 %v217_v40  ;;  %1126 = vmatpush.msrb.mxu0 %v337_v41  ;;  %v513_v60 = vld [vmem:[%s4966_s1 + $0xf58] sm:$0xff] }
 0x14a   :  { %1146 = vmatpush.msrb.mxu1 %v401_v21  ;;  %1166 = vmatpush.msrb.mxu2 %v465_v42  ;;  %v313_v62 = vld [vmem:[%s4966_s1 + $0x918] sm:$0xff]  ;;  %v536_v21 = vperm.slane %v3713_v34, 0 }
 0x14b   :  { %1185 = vmatpush.msrb.mxu3 %v533_v43  ;;  %1127 = vmatpush.msrb.mxu0 %v333_v26  ;;  %v377_v63 = vld [vmem:[%s4966_s1 + $0xb18] sm:$0xff]  ;;  %v537_v43 = vperm.slane %v3713_v34, 1  ;;  %v3741_v26 = vpop.f32.mrf.mxu2 }
 0x14c   :  { %1147 = vmatpush.msrb.mxu1 %v397_v44  ;;  %1167 = vmatpush.msrb.mxu2 %v461_v27  ;;  %v441_v0 = vld [vmem:[%s4966_s1 + $0xd18] sm:$0xff] }
 0x14d   :  { %1186 = vmatpush.msrb.mxu3 %v529_v45  ;;  %1128 = vmatpush.msrb.mxu0 %v329_v46  ;;  %v509_v4 = vld [vmem:[%s4966_s1 + $0xf38] sm:$0xff]  ;;  %v742_v45 = vpop.f32.mrf.mxu0 }
 0x14e   :  { %1148 = vmatpush.msrb.mxu1 %v393_v47  ;;  %1168 = vmatpush.msrb.mxu2 %v457_v32  ;;  %v309_v5 = vld [vmem:[%s4966_s1 + $0x8f8] sm:$0xff]  ;;  %v583_v32 = vadd.f32 %v3625_v61, %v536_v21  ;;  %v1383_v61 = vld [vmem:[%s4969_s3 + $0x570] sm:$0xff] }
 0x14f   :  { %1187 = vmatpush.msrb.mxu3 %v525_v48  ;;  %1129 = vmatpush.msrb.mxu0 %v325_v49  ;;  %v373_v6 = vld [vmem:[%s4966_s1 + $0xaf8] sm:$0xff]  ;;  %v1395_v48 = vld [vmem:[%s4969_s3 + $0x5d0] sm:$0xff] }
 0x150   :  { %1149 = vmatpush.msrb.mxu1 %v389_v50  ;;  %1169 = vmatpush.msrb.mxu2 %v453_v51  ;;  %v437_v7 = vld [vmem:[%s4966_s1 + $0xcf8] sm:$0xff]  ;;  %v743_v50 = vadd.f32 %v742_v45, %v537_v43  ;;  %v3766_v51 = vpop.f32.mrf.mxu3  ;;  %v1239_v21 = vld [vmem:[%s4969_s3 + $0xf0] sm:$0xff]  ;;  %v1437_v43 = vld [vmem:[%s4969_s3 + $0x720] sm:$0xff] }
 0x151   :  { %1188 = vmatpush.msrb.mxu3 %v521_v52  ;;  %1130 = vmatpush.msrb.mxu0 %v321_v53  ;;  %v505_v8 = vld [vmem:[%s4966_s1 + $0xf18] sm:$0xff]  ;;  %v762_v52 = vpop.f32.mrf.mxu1  ;;  %v2116_v53 = vld.sshfl [vmem:[#allocation1 + $0x30] sm:$0xff pattern:$0x73625140] }
 0x152   :  { %1150 = vmatpush.msrb.mxu1 %v385_v54  ;;  %1170 = vmatpush.msrb.mxu2 %v449_v55  ;;  %v305_v11 = vld [vmem:[%s4966_s1 + $0x8d8] sm:$0xff]  ;;  %v1293_v54 = vld [vmem:[%s4969_s3 + $0x2a0] sm:$0xff] }
 0x153   :  { %1189 = vmatpush.msrb.mxu3 %v517_v56  ;;  %1131 = vmatpush.msrb.mxu0 %v317_v57  ;;  %v369_v12 = vld [vmem:[%s4966_s1 + $0xad8] sm:$0xff]  ;;  %v1389_v55 = vld [vmem:[%s4969_s3 + $0x5a0] sm:$0xff]  ;;  %v1491_v56 = vld [vmem:[%s4969_s3 + $0x8d0] sm:$0xff]  ;;  %v603_v57 = vadd.f32 %v3651_v10, %v583_v32 }
 0x154   :  { %1151 = vmatpush.msrb.mxu1 %v381_v58  ;;  %1171 = vmatpush.msrb.mxu2 %v445_v59  ;;  %v433_v13 = vld [vmem:[%s4966_s1 + $0xcd8] sm:$0xff]  ;;  %v2117_v58 = vld.sshfl [vmem:[#allocation1 + $0x20] sm:$0xff pattern:$0x73625140] }
 0x155   :  { %1190 = vmatpush.msrb.mxu3 %v513_v60  ;;  %1132 = vmatpush.msrb.mxu0 %v313_v62  ;;  %v501_v14 = vld [vmem:[%s4966_s1 + $0xef8] sm:$0xff]  ;;  %v1287_v60 = vld [vmem:[%s4969_s3 + $0x270] sm:$0xff]  ;;  %v763_v62 = vadd.f32 %v762_v52, %v743_v50 }
 0x156   :  { %1152 = vmatpush.msrb.mxu1 %v377_v63  ;;  %1172 = vmatpush.msrb.mxu2 %v441_v0  ;;  %v301_v15 = vld [vmem:[%s4966_s1 + $0x8b8] sm:$0xff]  ;;  %v782_v63 = vpop.f32.mrf.mxu2  ;;  %v1485_v0 = vld [vmem:[%s4969_s3 + $0x8a0] sm:$0xff]  ;;  %v1419_v50 = vld [vmem:[%s4969_s3 + $0x690] sm:$0xff] }
 0x157   :  { %1191 = vmatpush.msrb.mxu3 %v509_v4  ;;  %1133 = vmatpush.msrb.mxu0 %v309_v5  ;;  %v365_v16 = vld [vmem:[%s4966_s1 + $0xab8] sm:$0xff]  ;;  %v2119_v4 = vld.sshfl [vmem:[#allocation1 + $0x28] sm:$0xff pattern:$0x73625140]  ;;  %v1281_v5 = vld [vmem:[%s4969_s3 + $0x240] sm:$0xff]  ;;  %v783_v10 = vadd.f32 %v782_v63, %v763_v62 }
 0x158   :  { %1153 = vmatpush.msrb.mxu1 %v373_v6  ;;  %1173 = vmatpush.msrb.mxu2 %v437_v7  ;;  %v429_v17 = vld [vmem:[%s4966_s1 + $0xcb8] sm:$0xff]  ;;  %v1377_v6 = vld [vmem:[%s4969_s3 + $0x540] sm:$0xff]  ;;  %v1479_v7 = vld [vmem:[%s4969_s3 + $0x870] sm:$0xff] }
 0x159   :  { %1192 = vmatpush.msrb.mxu3 %v505_v8  ;;  %1134 = vmatpush.msrb.mxu0 %v305_v11  ;;  %v497_v18 = vld [vmem:[%s4966_s1 + $0xed8] sm:$0xff]  ;;  %v623_v8 = vadd.f32 %v3677_v19, %v603_v57  ;;  %v1275_v11 = vld [vmem:[%s4969_s3 + $0x210] sm:$0xff]  ;;  %v1305_v57 = vld [vmem:[%s4969_s3 + $0x300] sm:$0xff] }
 0x15a   :  { %1154 = vmatpush.msrb.mxu1 %v369_v12  ;;  %1174 = vmatpush.msrb.mxu2 %v433_v13  ;;  %v297_v20 = vld [vmem:[%s4966_s1 + $0x898] sm:$0xff]  ;;  %v1371_v12 = vld [vmem:[%s4969_s3 + $0x510] sm:$0xff]  ;;  %v802_v13 = vpop.f32.mrf.mxu3  ;;  %v1294_v63 = vld [vmem:[%s4969_s3 + $0x2a8] sm:$0xff] }
 0x15b   :  { %1193 = vmatpush.msrb.mxu3 %v501_v14  ;;  %v361_v22 = vld [vmem:[%s4966_s1 + $0xa98] sm:$0xff]  ;;  %1135 = vmatpush.msrb.mxu0 %v301_v15  ;;  %v1473_v14 = vld [vmem:[%s4969_s3 + $0x840] sm:$0xff]  ;;  %v803_v19 = vadd.f32 %v802_v13, %v783_v10  ;;  %v1407_v62 = vld [vmem:[%s4969_s3 + $0x630] sm:$0xff] }
 0x15c   :  { %1155 = vmatpush.msrb.mxu1 %v365_v16  ;;  %v425_v23 = vld [vmem:[%s4966_s1 + $0xc98] sm:$0xff]  ;;  %1175 = vmatpush.msrb.mxu2 %v429_v17  ;;  %v1269_v15 = vld [vmem:[%s4969_s3 + $0x1e0] sm:$0xff]  ;;  %v1467_v17 = vld [vmem:[%s4969_s3 + $0x810] sm:$0xff] }
 0x15d   :  { %v493_v24 = vld [vmem:[%s4966_s1 + $0xeb8] sm:$0xff]  ;;  %1194 = vmatpush.msrb.mxu3 %v497_v18  ;;  %1136 = vmatpush.msrb.mxu0 %v297_v20  ;;  %v1365_v16 = vld [vmem:[%s4969_s3 + $0x4e0] sm:$0xff]  ;;  %v643_v18 = vadd.f32 %v3702_v2, %v623_v8  ;;  %v1263_v20 = vld [vmem:[%s4969_s3 + $0x1b0] sm:$0xff] }
 0x15e   :  { %v293_v28 = vld [vmem:[%s4966_s1 + $0x878] sm:$0xff]  ;;  %1156 = vmatpush.msrb.mxu1 %v361_v22  ;;  %1176 = vmatpush.msrb.mxu2 %v425_v23  ;;  %v1359_v22 = vld [vmem:[%s4969_s3 + $0x4b0] sm:$0xff]  ;;  %v822_v23 = vpop.f32.mrf.mxu0  ;;  %v1282_v8 = vld [vmem:[%s4969_s3 + $0x248] sm:$0xff] }
 0x15f   :  { %v357_v29 = vld [vmem:[%s4966_s1 + $0xa78] sm:$0xff]  ;;  %1195 = vmatpush.msrb.mxu3 %v493_v24  ;;  %1101 = vmatmul.f32.vlgmr.msra.gmra.mxu2 %v2114_v31  ;;  %v1461_v24 = vld [vmem:[%s4969_s3 + $0x7e0] sm:$0xff]  ;;  %v663_v2 = vadd.f32 %v3691_v3, %v643_v18  ;;  %v1251_v31 = vld [vmem:[%s4969_s3 + $0x150] sm:$0xff] }
 0x160   :  { %v421_v1 = vld [vmem:[%s4966_s1 + $0xc78] sm:$0xff]  ;;  %1137 = vmatpush.msrb.mxu0 %v293_v28  ;;  %1157 = vmatpush.msrb.mxu1 %v357_v29  ;;  %v1257_v28 = vld [vmem:[%s4969_s3 + $0x180] sm:$0xff]  ;;  %v1378_v10 = vld [vmem:[%s4969_s3 + $0x548] sm:$0xff] }
 0x161   :  { %v489_v30 = vld [vmem:[%s4966_s1 + $0xe98] sm:$0xff]  ;;  %1177 = vmatpush.msrb.mxu2 %v421_v1  ;;  %1061 = vmatmul.f32.vlgmr.msra.gmra.mxu0 %v3311_v25  ;;  %v1353_v29 = vld [vmem:[%s4969_s3 + $0x480] sm:$0xff]  ;;  %v1455_v1 = vld [vmem:[%s4969_s3 + $0x7b0] sm:$0xff] }
 0x162   :  { %v289_v33 = vld [vmem:[%s4966_s1 + $0x858] sm:$0xff]  ;;  %1196 = vmatpush.msrb.mxu3 %v489_v30  ;;  %1081 = vmatmul.f32.vlgmr.msra.gmra.mxu1 %v3330_v9  ;;  %v1299_v9 = vld [vmem:[%s4969_s3 + $0x2d0] sm:$0xff]  ;;  %v823_v30 = vadd.f32 %v822_v23, %v803_v19  ;;  %v1245_v3 = vld [vmem:[%s4969_s3 + $0x120] sm:$0xff]  ;;  %v882_v32 = vpop.f32.mrf.mxu3 }
 0x163   :  { %v353_v36 = vld [vmem:[%s4966_s1 + $0xa58] sm:$0xff]  ;;  %1138 = vmatpush.msrb.mxu0 %v289_v33  ;;  %v1347_v33 = vld [vmem:[%s4969_s3 + $0x450] sm:$0xff]  ;;  %v1354_v23 = vld [vmem:[%s4969_s3 + $0x488] sm:$0xff] }
 0x164   :  { %v417_v37 = vld [vmem:[%s4966_s1 + $0xc58] sm:$0xff]  ;;  %1158 = vmatpush.msrb.mxu1 %v353_v36  ;;  %v842_v36 = vpop.f32.mrf.mxu1 }
 0x165   :  { %v485_v38 = vld [vmem:[%s4966_s1 + $0xe78] sm:$0xff]  ;;  %1178 = vmatpush.msrb.mxu2 %v417_v37  ;;  %v1449_v37 = vld [vmem:[%s4969_s3 + $0x780] sm:$0xff] }
 0x166   :  { %v2115_v39 = vld.sshfl [vmem:[#allocation1 + $0x18] sm:$0xff pattern:$0x73625140]  ;;  %1197 = vmatpush.msrb.mxu3 %v485_v38  ;;  %v1341_v38 = vld [vmem:[%s4969_s3 + $0x420] sm:$0xff] }
 0x167   :  { %1121 = vmatmul.f32.vlgmr.msra.gmra.mxu3 %v2115_v39  ;;  %v285_v40 = vld [vmem:[%s4966_s1 + $0x838] sm:$0xff]  ;;  %v1443_v39 = vld [vmem:[%s4969_s3 + $0x750] sm:$0xff] }
 0x168   :  { %v349_v41 = vld [vmem:[%s4966_s1 + $0xa38] sm:$0xff]  ;;  %1139 = vmatpush.msrb.mxu0 %v285_v40  ;;  %v683_v40 = vadd.f32 %v3715_v35, %v663_v2  ;;  %v1233_v35 = vld [vmem:[%s4969_s3 + $0xc0] sm:$0xff]  ;;  %v538_v2 = vperm.slane %v3713_v34, 2 }
 0x169   :  { %v413_v25 = vld [vmem:[%s4966_s1 + $0xc38] sm:$0xff]  ;;  %1159 = vmatpush.msrb.mxu1 %v349_v41  ;;  %v843_v41 = vadd.f32 %v842_v36, %v823_v30  ;;  %v1342_v36 = vld [vmem:[%s4969_s3 + $0x428] sm:$0xff] }
 0x16a   :  { %v481_v42 = vld [vmem:[%s4966_s1 + $0xe58] sm:$0xff]  ;;  %1179 = vmatpush.msrb.mxu2 %v413_v25  ;;  %v1335_v25 = vld [vmem:[%s4969_s3 + $0x3f0] sm:$0xff]  ;;  %v703_v45 = vadd.f32 %v3741_v26, %v683_v40  ;;  %v1221_v26 = vld [vmem:[%s4969_s3 + $0x60] sm:$0xff] }
 0x16b   :  { %v281_v44 = vld [vmem:[%s4966_s1 + $0x818] sm:$0xff]  ;;  %1198 = vmatpush.msrb.mxu3 %v481_v42  ;;  %v862_v42 = vpop.f32.mrf.mxu2 }
 0x16c   :  { %v345_v27 = vld [vmem:[%s4966_s1 + $0xa18] sm:$0xff]  ;;  %1140 = vmatpush.msrb.mxu0 %v281_v44  ;;  %v1329_v44 = vld [vmem:[%s4969_s3 + $0x3c0] sm:$0xff]  ;;  %v723_v52 = vadd.f32 %v3766_v51, %v703_v45  ;;  %v1438_v45 = vld [vmem:[%s4969_s3 + $0x728] sm:$0xff] }
 0x16d   :  { %v409_v46 = vld [vmem:[%s4966_s1 + $0xc18] sm:$0xff]  ;;  %1160 = vmatpush.msrb.mxu1 %v345_v27  ;;  %1141 = vmatmul.f32.vlgmr.msrb.gmra.mxu0 %v2117_v58  ;;  %v1431_v27 = vld [vmem:[%s4969_s3 + $0x6f0] sm:$0xff]  ;;  %v1209_v51 = vld [vmem:[%s4969_s3] sm:$0xff] }
 0x16e   :  { %v477_v47 = vld [vmem:[%s4966_s1 + $0xe38] sm:$0xff]  ;;  %1180 = vmatpush.msrb.mxu2 %v409_v46  ;;  %1607 = vmatpush.msra.mxu0 %v1299_v9  ;;  %v863_v46 = vadd.f32 %v862_v42, %v843_v41  ;;  %v1323_v9 = vld [vmem:[%s4969_s3 + $0x390] sm:$0xff]  ;;  %v3907_v58 = vmax.f32 %v723_v52, 0.0  ;;  %v1234_v42 = vld [vmem:[%s4969_s3 + $0xc8] sm:$0xff] }
 0x16f   :  { %v473_v49 = vld [vmem:[%s4966_s1 + $0xe18] sm:$0xff]  ;;  %1199 = vmatpush.msrb.mxu3 %v477_v47  ;;  %1181 = vmatmul.f32.vlgmr.msrb.gmra.mxu2 %v2116_v53  ;;  %v1227_v47 = vld [vmem:[%s4969_s3 + $0x90] sm:$0xff] }
 0x170   :  { %1627 = vmatpush.msra.mxu1 %v1395_v48  ;;  %v2118_v59 = vld.sshfl [vmem:[#allocation1 + $0x38] sm:$0xff pattern:$0x73625140]  ;;  %1608 = vmatpush.msra.mxu0 %v1293_v54  ;;  %v1425_v48 = vld [vmem:[%s4969_s3 + $0x6c0] sm:$0xff]  ;;  %v883_v53 = vadd.f32 %v882_v32, %v863_v46  ;;  %v1215_v54 = vld [vmem:[%s4969_s3 + $0x30] sm:$0xff] }
 0x171   :  { %1200 = vmatpush.msrb.mxu3 %v473_v49  ;;  %1161 = vmatmul.f32.vlgmr.msrb.gmra.mxu1 %v2119_v4  ;;  %v1317_v49 = vld [vmem:[%s4969_s3 + $0x360] sm:$0xff]  ;;  %v1372_v13 = vld [vmem:[%s4969_s3 + $0x518] sm:$0xff]  ;;  %v1563_v46 = vld [vmem:[%s4969_s3 + $0xb10] sm:$0xff] }
 0x172   :  { %1201 = vmatmul.f32.vlgmr.msrb.gmra.mxu3 %v2118_v59  ;;  %1628 = vmatpush.msra.mxu1 %v1389_v55  ;;  %v1311_v55 = vld [vmem:[%s4969_s3 + $0x330] sm:$0xff]  ;;  %v3909_v59 = vmax.f32 %v883_v53, 0.0  ;;  %v1401_v4 = vld [vmem:[%s4969_s3 + $0x600] sm:$0xff]  ;;  %v1264_v18 = vld [vmem:[%s4969_s3 + $0x1b8] sm:$0xff] }
 0x173   :  { %1647 = vmatpush.msra.mxu2 %v1491_v56  ;;  %1609 = vmatpush.msra.mxu0 %v1287_v60  ;;  %v1413_v56 = vld [vmem:[%s4969_s3 + $0x660] sm:$0xff]  ;;  %v1300_v60 = vld [vmem:[%s4969_s3 + $0x2d8] sm:$0xff] }
 0x174   :  { %1629 = vmatpush.msra.mxu1 %v1383_v61  ;;  %v1396_v61 = vld [vmem:[%s4969_s3 + $0x5d8] sm:$0xff] }
 0x175   :  { %1648 = vmatpush.msra.mxu2 %v1485_v0  ;;  %1610 = vmatpush.msra.mxu0 %v1281_v5  ;;  %v1390_v0 = vld [vmem:[%s4969_s3 + $0x5a8] sm:$0xff]  ;;  %v1288_v5 = vld [vmem:[%s4969_s3 + $0x278] sm:$0xff] }
 0x176   :  { %1630 = vmatpush.msra.mxu1 %v1377_v6  ;;  %v1384_v6 = vld [vmem:[%s4969_s3 + $0x578] sm:$0xff]  ;;  %v962_v52 = vpop.f32.mrf.mxu3 }
 0x177   :  { %1649 = vmatpush.msra.mxu2 %v1479_v7  ;;  %1611 = vmatpush.msra.mxu0 %v1275_v11  ;;  %v1492_v7 = vld [vmem:[%s4969_s3 + $0x8d8] sm:$0xff]  ;;  %v1486_v11 = vld [vmem:[%s4969_s3 + $0x8a8] sm:$0xff] }
 0x178   :  { %1631 = vmatpush.msra.mxu1 %v1371_v12  ;;  %v1276_v12 = vld [vmem:[%s4969_s3 + $0x218] sm:$0xff] }
 0x179   :  { %1650 = vmatpush.msra.mxu2 %v1473_v14  ;;  %1612 = vmatpush.msra.mxu0 %v1269_v15  ;;  %v1480_v14 = vld [vmem:[%s4969_s3 + $0x878] sm:$0xff]  ;;  %v1270_v15 = vld [vmem:[%s4969_s3 + $0x1e8] sm:$0xff] }
 0x17a   :  { %1632 = vmatpush.msra.mxu1 %v1365_v16  ;;  %v1366_v16 = vld [vmem:[%s4969_s3 + $0x4e8] sm:$0xff]  ;;  %v1360_v19 = vld [vmem:[%s4969_s3 + $0x4b8] sm:$0xff] }
 0x17b   :  { %1651 = vmatpush.msra.mxu2 %v1467_v17  ;;  %1613 = vmatpush.msra.mxu0 %v1263_v20  ;;  %v1474_v17 = vld [vmem:[%s4969_s3 + $0x848] sm:$0xff]  ;;  %v1468_v20 = vld [vmem:[%s4969_s3 + $0x818] sm:$0xff] }
 0x17c   :  { %1633 = vmatpush.msra.mxu1 %v1359_v22  ;;  %v1258_v22 = vld [vmem:[%s4969_s3 + $0x188] sm:$0xff]  ;;  %v1456_v30 = vld [vmem:[%s4969_s3 + $0x7b8] sm:$0xff] }
 0x17d   :  { %1652 = vmatpush.msra.mxu2 %v1461_v24  ;;  %1614 = vmatpush.msra.mxu0 %v1257_v28  ;;  %v1462_v24 = vld [vmem:[%s4969_s3 + $0x7e8] sm:$0xff]  ;;  %v1587_v28 = vld [vmem:[%s4969_s3 + $0xbd0] sm:$0xff]  ;;  %v1336_v40 = vld [vmem:[%s4969_s3 + $0x3f8] sm:$0xff] }
 0x17e   :  { %1634 = vmatpush.msra.mxu1 %v1353_v29  ;;  %v1252_v29 = vld [vmem:[%s4969_s3 + $0x158] sm:$0xff]  ;;  %1667 = vmatpush.msra.mxu3 %v1587_v28  ;;  %v1379_v28 = vld [vmem:[%s4969_s3 + $0x550] sm:$0xff] }
 0x17f   :  { %1653 = vmatpush.msra.mxu2 %v1455_v1  ;;  %1615 = vmatpush.msra.mxu0 %v1251_v31  ;;  %v1348_v1 = vld [vmem:[%s4969_s3 + $0x458] sm:$0xff]  ;;  %v1581_v31 = vld [vmem:[%s4969_s3 + $0xba0] sm:$0xff] }
 0x180   :  { %1635 = vmatpush.msra.mxu1 %v1347_v33  ;;  %v1246_v33 = vld [vmem:[%s4969_s3 + $0x128] sm:$0xff]  ;;  %1668 = vmatpush.msra.mxu3 %v1581_v31  ;;  %v1493_v31 = vld [vmem:[%s4969_s3 + $0x8e0] sm:$0xff] }
 0x181   :  { %1654 = vmatpush.msra.mxu2 %v1449_v37  ;;  %1616 = vmatpush.msra.mxu0 %v1245_v3  ;;  %v902_v37 = vpop.f32.mrf.mxu0  ;;  %v1450_v3 = vld [vmem:[%s4969_s3 + $0x788] sm:$0xff] }
 0x182   :  { %1636 = vmatpush.msra.mxu1 %v1341_v38  ;;  %v1575_v38 = vld [vmem:[%s4969_s3 + $0xb70] sm:$0xff]  ;;  %v903_v41 = vadd.f32 %v902_v37, %v538_v2  ;;  %v1277_v2 = vld [vmem:[%s4969_s3 + $0x220] sm:$0xff] }
 0x183   :  { %1655 = vmatpush.msra.mxu2 %v1443_v39  ;;  %1617 = vmatpush.msra.mxu0 %v1239_v21  ;;  %v1240_v39 = vld [vmem:[%s4969_s3 + $0xf8] sm:$0xff]  ;;  %v1367_v37 = vld [vmem:[%s4969_s3 + $0x4f0] sm:$0xff] }
 0x184   :  { %1637 = vmatpush.msra.mxu1 %v1335_v25  ;;  %1669 = vmatpush.msra.mxu3 %v1575_v38  ;;  %v1444_v21 = vld [vmem:[%s4969_s3 + $0x758] sm:$0xff]  ;;  %v1569_v25 = vld [vmem:[%s4969_s3 + $0xb40] sm:$0xff] }
 0x185   :  { %1656 = vmatpush.msra.mxu2 %v1437_v43  ;;  %1618 = vmatpush.msra.mxu0 %v1233_v35  ;;  %v1330_v43 = vld [vmem:[%s4969_s3 + $0x3c8] sm:$0xff]  ;;  %v922_v35 = vpop.f32.mrf.mxu1  ;;  %v1509_v38 = vld [vmem:[%s4969_s3 + $0x960] sm:$0xff] }
 0x186   :  { %1638 = vmatpush.msra.mxu1 %v1329_v44  ;;  %1670 = vmatpush.msra.mxu3 %v1569_v25  ;;  %v923_v44 = vadd.f32 %v922_v35, %v903_v41  ;;  %v1481_v41 = vld [vmem:[%s4969_s3 + $0x880] sm:$0xff]  ;;  %v1259_v25 = vld [vmem:[%s4969_s3 + $0x190] sm:$0xff] }
 0x187   :  { %1657 = vmatpush.msra.mxu2 %v1431_v27  ;;  %1619 = vmatpush.msra.mxu0 %v1227_v47  ;;  %v942_v27 = vpop.f32.mrf.mxu2  ;;  %v1228_v47 = vld [vmem:[%s4969_s3 + $0x98] sm:$0xff]  ;;  %v1497_v35 = vld [vmem:[%s4969_s3 + $0x900] sm:$0xff] }
 0x188   :  { %1639 = vmatpush.msra.mxu1 %v1323_v9  ;;  %v1324_v9 = vld [vmem:[%s4969_s3 + $0x398] sm:$0xff]  ;;  %1671 = vmatpush.msra.mxu3 %v1563_v46  ;;  %v943_v32 = vadd.f32 %v942_v27, %v923_v44  ;;  %v1253_v27 = vld [vmem:[%s4969_s3 + $0x160] sm:$0xff]  ;;  %v1247_v46 = vld [vmem:[%s4969_s3 + $0x130] sm:$0xff] }
 0x189   :  { %1658 = vmatpush.msra.mxu2 %v1425_v48  ;;  %1620 = vmatpush.msra.mxu0 %v1221_v26  ;;  %v1432_v48 = vld [vmem:[%s4969_s3 + $0x6f8] sm:$0xff]  ;;  %v1557_v26 = vld [vmem:[%s4969_s3 + $0xae0] sm:$0xff] }
 0x18a   :  { %1640 = vmatpush.msra.mxu1 %v1317_v49  ;;  %v1222_v49 = vld [vmem:[%s4969_s3 + $0x68] sm:$0xff]  ;;  %1672 = vmatpush.msra.mxu3 %v1557_v26  ;;  %v963_v53 = vadd.f32 %v962_v52, %v943_v32  ;;  %v1588_v44 = vld [vmem:[%s4969_s3 + $0xbd8] sm:$0xff]  ;;  %v1469_v32 = vld [vmem:[%s4969_s3 + $0x820] sm:$0xff] }
 0x18b   :  { %1659 = vmatpush.msra.mxu2 %v1419_v50  ;;  %1621 = vmatpush.msra.mxu0 %v1215_v54  ;;  %v1318_v50 = vld [vmem:[%s4969_s3 + $0x368] sm:$0xff]  ;;  %v1337_v26 = vld [vmem:[%s4969_s3 + $0x400] sm:$0xff]  ;;  %v1235_v52 = vld [vmem:[%s4969_s3 + $0xd0] sm:$0xff] }
 0x18c   :  { %1641 = vmatpush.msra.mxu1 %v1311_v55  ;;  %v1426_v54 = vld [vmem:[%s4969_s3 + $0x6c8] sm:$0xff]  ;;  %v1551_v55 = vld [vmem:[%s4969_s3 + $0xab0] sm:$0xff] }
 0x18d   :  { %1660 = vmatpush.msra.mxu2 %v1413_v56  ;;  %1622 = vmatpush.msra.mxu0 %v1209_v51  ;;  %v1216_v56 = vld [vmem:[%s4969_s3 + $0x38] sm:$0xff] }
 0x18e   :  { %1642 = vmatpush.msra.mxu1 %v1305_v57  ;;  %1623 = vmatmul.f32.vlgmr.msra.gmra.mxu0 %v3907_v58  ;;  %v1312_v51 = vld [vmem:[%s4969_s3 + $0x338] sm:$0xff] }
 0x18f   :  { %1643 = vmatmul.f32.vlgmr.msra.gmra.mxu1 %v3909_v59  ;;  %1687 = vmatpush.msrb.mxu0 %v1300_v60  ;;  %v1420_v60 = vld [vmem:[%s4969_s3 + $0x698] sm:$0xff] }
 0x190   :  { %1707 = vmatpush.msrb.mxu1 %v1396_v61  ;;  %1661 = vmatpush.msra.mxu2 %v1407_v62  ;;  %v1545_v61 = vld [vmem:[%s4969_s3 + $0xa80] sm:$0xff]  ;;  %v1210_v62 = vld [vmem:[%s4969_s3 + $0x8] sm:$0xff] }
 0x191   :  { %1688 = vmatpush.msrb.mxu0 %v1294_v63  ;;  %1673 = vmatpush.msra.mxu3 %v1551_v55  ;;  %v1306_v63 = vld [vmem:[%s4969_s3 + $0x308] sm:$0xff]  ;;  %v1457_v55 = vld [vmem:[%s4969_s3 + $0x7c0] sm:$0xff] }
 0x192   :  { %1708 = vmatpush.msrb.mxu1 %v1390_v0  ;;  %1662 = vmatpush.msra.mxu2 %v1401_v4  ;;  %v1539_v4 = vld [vmem:[%s4969_s3 + $0xa50] sm:$0xff] }
 0x193   :  { %1689 = vmatpush.msrb.mxu0 %v1288_v5  ;;  %1674 = vmatpush.msra.mxu3 %v1545_v61  ;;  %v1301_v5 = vld [vmem:[%s4969_s3 + $0x2e0] sm:$0xff]  ;;  %v1223_v61 = vld [vmem:[%s4969_s3 + $0x70] sm:$0xff] }
 0x194   :  { %1709 = vmatpush.msrb.mxu1 %v1384_v6  ;;  %1727 = vmatpush.msrb.mxu2 %v1492_v7  ;;  %v1397_v6 = vld [vmem:[%s4969_s3 + $0x5e0] sm:$0xff] }
 0x195   :  { %1690 = vmatpush.msrb.mxu0 %v1282_v8  ;;  %1675 = vmatpush.msra.mxu3 %v1539_v4  ;;  %v1217_v4 = vld [vmem:[%s4969_s3 + $0x40] sm:$0xff] }
 0x196   :  { %1710 = vmatpush.msrb.mxu1 %v1378_v10  ;;  %1728 = vmatpush.msrb.mxu2 %v1486_v11  ;;  %v1414_v11 = vld [vmem:[%s4969_s3 + $0x668] sm:$0xff] }
 0x197   :  { %1691 = vmatpush.msrb.mxu0 %v1276_v12  ;;  %v1295_v12 = vld [vmem:[%s4969_s3 + $0x2b0] sm:$0xff] }
 0x198   :  { %1711 = vmatpush.msrb.mxu1 %v1372_v13  ;;  %1729 = vmatpush.msrb.mxu2 %v1480_v14  ;;  %v1391_v13 = vld [vmem:[%s4969_s3 + $0x5b0] sm:$0xff] }
 0x199   :  { %1692 = vmatpush.msrb.mxu0 %v1270_v15  ;;  %v1408_v15 = vld [vmem:[%s4969_s3 + $0x638] sm:$0xff] }
 0x19a   :  { %1712 = vmatpush.msrb.mxu1 %v1366_v16  ;;  %1730 = vmatpush.msrb.mxu2 %v1474_v17  ;;  %v1533_v16 = vld [vmem:[%s4969_s3 + $0xa20] sm:$0xff] }
 0x19b   :  { %1693 = vmatpush.msrb.mxu0 %v1264_v18  ;;  %v1289_v17 = vld [vmem:[%s4969_s3 + $0x280] sm:$0xff]  ;;  %1676 = vmatpush.msra.mxu3 %v1533_v16  ;;  %v1296_v16 = vld [vmem:[%s4969_s3 + $0x2b8] sm:$0xff] }
 0x19c   :  { %1713 = vmatpush.msrb.mxu1 %v1360_v19  ;;  %1731 = vmatpush.msrb.mxu2 %v1468_v20  ;;  %v1385_v18 = vld [vmem:[%s4969_s3 + $0x580] sm:$0xff] }
 0x19d   :  { %1694 = vmatpush.msrb.mxu0 %v1258_v22  ;;  %v1402_v22 = vld [vmem:[%s4969_s3 + $0x608] sm:$0xff] }
 0x19e   :  { %1714 = vmatpush.msrb.mxu1 %v1354_v23  ;;  %1732 = vmatpush.msrb.mxu2 %v1462_v24  ;;  %v1527_v23 = vld [vmem:[%s4969_s3 + $0x9f0] sm:$0xff] }
 0x19f   :  { %1695 = vmatpush.msrb.mxu0 %v1252_v29  ;;  %v1283_v24 = vld [vmem:[%s4969_s3 + $0x250] sm:$0xff]  ;;  %1677 = vmatpush.msra.mxu3 %v1527_v23  ;;  %v1421_v23 = vld [vmem:[%s4969_s3 + $0x6a0] sm:$0xff] }
 0x1a0   :  { %1715 = vmatpush.msrb.mxu1 %v1348_v1  ;;  %1733 = vmatpush.msrb.mxu2 %v1456_v30  ;;  %v1521_v1 = vld [vmem:[%s4969_s3 + $0x9c0] sm:$0xff] }
 0x1a1   :  { %1696 = vmatpush.msrb.mxu0 %v1246_v33  ;;  %v982_v57 = vpop.f32.mrf.mxu0  ;;  %v1373_v30 = vld [vmem:[%s4969_s3 + $0x520] sm:$0xff]  ;;  %1678 = vmatpush.msra.mxu3 %v1521_v1  ;;  %v1515_v33 = vld [vmem:[%s4969_s3 + $0x990] sm:$0xff]  ;;  %v1528_v1 = vld [vmem:[%s4969_s3 + $0x9f8] sm:$0xff] }
 0x1a2   :  { %1716 = vmatpush.msrb.mxu1 %v1342_v36  ;;  %1734 = vmatpush.msrb.mxu2 %v1450_v3  ;;  %v983_v0 = vadd.f32 %v982_v57, %v963_v53  ;;  %v1271_v36 = vld [vmem:[%s4969_s3 + $0x1f0] sm:$0xff]  ;;  %v1564_v57 = vld [vmem:[%s4969_s3 + $0xb18] sm:$0xff] }
 0x1a3   :  { %1697 = vmatpush.msrb.mxu0 %v1240_v39  ;;  %1679 = vmatpush.msra.mxu3 %v1515_v33  ;;  %v1487_v3 = vld [vmem:[%s4969_s3 + $0x8b0] sm:$0xff]  ;;  %v1265_v39 = vld [vmem:[%s4969_s3 + $0x1c0] sm:$0xff]  ;;  %v1522_v33 = vld [vmem:[%s4969_s3 + $0x9c8] sm:$0xff] }
 0x1a4   :  { %1717 = vmatpush.msrb.mxu1 %v1336_v40  ;;  %1735 = vmatpush.msrb.mxu2 %v1444_v21  ;;  %v1361_v40 = vld [vmem:[%s4969_s3 + $0x4c0] sm:$0xff]  ;;  %v1503_v21 = vld [vmem:[%s4969_s3 + $0x930] sm:$0xff] }
 0x1a5   :  { %1698 = vmatpush.msrb.mxu0 %v1234_v42  ;;  %1680 = vmatpush.msra.mxu3 %v1509_v38  ;;  %v1355_v42 = vld [vmem:[%s4969_s3 + $0x490] sm:$0xff]  ;;  %v1516_v38 = vld [vmem:[%s4969_s3 + $0x998] sm:$0xff] }
 0x1a6   :  { %1718 = vmatpush.msrb.mxu1 %v1330_v43  ;;  %1736 = vmatpush.msrb.mxu2 %v1438_v45  ;;  %v1475_v43 = vld [vmem:[%s4969_s3 + $0x850] sm:$0xff]  ;;  %v1349_v45 = vld [vmem:[%s4969_s3 + $0x460] sm:$0xff] }
 0x1a7   :  { %1699 = vmatpush.msrb.mxu0 %v1228_v47  ;;  %1681 = vmatpush.msra.mxu3 %v1503_v21  ;;  %v1343_v47 = vld [vmem:[%s4969_s3 + $0x430] sm:$0xff]  ;;  %v1510_v21 = vld [vmem:[%s4969_s3 + $0x968] sm:$0xff] }
 0x1a8   :  { %1719 = vmatpush.msrb.mxu1 %v1324_v9  ;;  %1737 = vmatpush.msrb.mxu2 %v1432_v48  ;;  %v1002_v7 = vpop.f32.mrf.mxu1  ;;  %v1582_v9 = vld [vmem:[%s4969_s3 + $0xba8] sm:$0xff]  ;;  %v1241_v48 = vld [vmem:[%s4969_s3 + $0x100] sm:$0xff]  ;;  %v1331_v53 = vld [vmem:[%s4969_s3 + $0x3d0] sm:$0xff] }
 0x1a9   :  { %1700 = vmatpush.msrb.mxu0 %v1222_v49  ;;  %v1003_v8 = vadd.f32 %v1002_v7, %v983_v0  ;;  %v1022_v10 = vpop.f32.mrf.mxu2  ;;  %1682 = vmatpush.msra.mxu3 %v1497_v35  ;;  %v1576_v49 = vld [vmem:[%s4969_s3 + $0xb78] sm:$0xff]  ;;  %v1445_v0 = vld [vmem:[%s4969_s3 + $0x760] sm:$0xff]  ;;  %v1439_v7 = vld [vmem:[%s4969_s3 + $0x730] sm:$0xff] }
 0x1aa   :  { %1720 = vmatpush.msrb.mxu1 %v1318_v50  ;;  %1738 = vmatpush.msrb.mxu2 %v1426_v54  ;;  %v1463_v50 = vld [vmem:[%s4969_s3 + $0x7f0] sm:$0xff]  ;;  %v1570_v54 = vld [vmem:[%s4969_s3 + $0xb48] sm:$0xff] }
 0x1ab   :  { %1701 = vmatpush.msrb.mxu0 %v1216_v56  ;;  %v1023_v14 = vadd.f32 %v1022_v10, %v1003_v8  ;;  %1747 = vmatpush.msrb.mxu3 %v1588_v44  ;;  %v1229_v56 = vld [vmem:[%s4969_s3 + $0xa0] sm:$0xff]  ;;  %v1211_v8 = vld [vmem:[%s4969_s3 + $0x10] sm:$0xff]  ;;  %v1494_v35 = vld [vmem:[%s4969_s3 + $0x8e8] sm:$0xff] }
 0x1ac   :  { %1721 = vmatpush.msrb.mxu1 %v1312_v51  ;;  %1739 = vmatpush.msrb.mxu2 %v1420_v60  ;;  %v1042_v19 = vpop.f32.mrf.mxu3  ;;  %v1325_v51 = vld [vmem:[%s4969_s3 + $0x3a0] sm:$0xff]  ;;  %v1451_v60 = vld [vmem:[%s4969_s3 + $0x790] sm:$0xff]  ;;  %v1254_v44 = vld [vmem:[%s4969_s3 + $0x168] sm:$0xff] }
 0x1ad   :  { %1702 = vmatpush.msrb.mxu0 %v1210_v62  ;;  %v1043_v20 = vadd.f32 %v1042_v19, %v1023_v14  ;;  %1748 = vmatpush.msrb.mxu3 %v1582_v9  ;;  %v1319_v62 = vld [vmem:[%s4969_s3 + $0x370] sm:$0xff]  ;;  %v1433_v14 = vld [vmem:[%s4969_s3 + $0x700] sm:$0xff]  ;;  %v1290_v19 = vld [vmem:[%s4969_s3 + $0x288] sm:$0xff] }
 0x1ae   :  { %1722 = vmatpush.msrb.mxu1 %v1306_v63  ;;  %1703 = vmatmul.f32.vlgmr.msrb.gmra.mxu0 %v3907_v58  ;;  %v1558_v63 = vld [vmem:[%s4969_s3 + $0xae8] sm:$0xff]  ;;  %v1307_v10 = vld [vmem:[%s4969_s3 + $0x310] sm:$0xff]  ;;  %v1344_v9 = vld [vmem:[%s4969_s3 + $0x438] sm:$0xff] }
 0x1af   :  { %1723 = vmatmul.f32.vlgmr.msrb.gmra.mxu1 %v3909_v59  ;;  %1767 = vmatpush.msra.mxu0 %v1301_v5  ;;  %v4123_v29 = vmax.f32 %v1043_v20, 0.0  ;;  %v1313_v5 = vld [vmem:[%s4969_s3 + $0x340] sm:$0xff]  ;;  %v1386_v20 = vld [vmem:[%s4969_s3 + $0x588] sm:$0xff] }
 0x1b0   :  { %1787 = vmatpush.msra.mxu1 %v1397_v6  ;;  %1740 = vmatpush.msrb.mxu2 %v1414_v11  ;;  %v1552_v6 = vld [vmem:[%s4969_s3 + $0xab8] sm:$0xff]  ;;  %v1546_v11 = vld [vmem:[%s4969_s3 + $0xa88] sm:$0xff] }
 0x1b1   :  { %1768 = vmatpush.msra.mxu0 %v1295_v12  ;;  %1663 = vmatmul.f32.vlgmr.msra.gmra.mxu2 %v4123_v29  ;;  %v1302_v12 = vld [vmem:[%s4969_s3 + $0x2e8] sm:$0xff] }
 0x1b2   :  { %1788 = vmatpush.msra.mxu1 %v1391_v13  ;;  %1741 = vmatpush.msrb.mxu2 %v1408_v15  ;;  %v1398_v13 = vld [vmem:[%s4969_s3 + $0x5e8] sm:$0xff]  ;;  %v1540_v15 = vld [vmem:[%s4969_s3 + $0xa58] sm:$0xff] }
 0x1b3   :  { %1769 = vmatpush.msra.mxu0 %v1289_v17  ;;  %1749 = vmatpush.msrb.mxu3 %v1576_v49  ;;  %v1392_v17 = vld [vmem:[%s4969_s3 + $0x5b8] sm:$0xff]  ;;  %v539_v49 = vperm.slane %v3713_v34, 3  ;;  %v1470_v34 = vld [vmem:[%s4969_s3 + $0x828] sm:$0xff] }
 0x1b4   :  { %1789 = vmatpush.msra.mxu1 %v1385_v18  ;;  %1742 = vmatpush.msrb.mxu2 %v1402_v22  ;;  %v1427_v18 = vld [vmem:[%s4969_s3 + $0x6d0] sm:$0xff]  ;;  %v1534_v22 = vld [vmem:[%s4969_s3 + $0xa28] sm:$0xff] }
 0x1b5   :  { %1770 = vmatpush.msra.mxu0 %v1283_v24  ;;  %1750 = vmatpush.msrb.mxu3 %v1570_v54  ;;  %v1284_v24 = vld [vmem:[%s4969_s3 + $0x258] sm:$0xff] }
 0x1b6   :  { %1790 = vmatpush.msra.mxu1 %v1379_v28  ;;  %1807 = vmatpush.msra.mxu2 %v1493_v31  ;;  %v1380_v28 = vld [vmem:[%s4969_s3 + $0x558] sm:$0xff]  ;;  %v1374_v31 = vld [vmem:[%s4969_s3 + $0x528] sm:$0xff] }
 0x1b7   :  { %1771 = vmatpush.msra.mxu0 %v1277_v2  ;;  %1751 = vmatpush.msrb.mxu3 %v1564_v57  ;;  %v1415_v2 = vld [vmem:[%s4969_s3 + $0x670] sm:$0xff]  ;;  %v1464_v57 = vld [vmem:[%s4969_s3 + $0x7f8] sm:$0xff] }
 0x1b8   :  { %1791 = vmatpush.msra.mxu1 %v1373_v30  ;;  %1808 = vmatpush.msra.mxu2 %v1487_v3  ;;  %v1278_v30 = vld [vmem:[%s4969_s3 + $0x228] sm:$0xff]  ;;  %v1368_v3 = vld [vmem:[%s4969_s3 + $0x4f8] sm:$0xff] }
 0x1b9   :  { %1772 = vmatpush.msra.mxu0 %v1271_v36  ;;  %1743 = vmatmul.f32.vlgmr.msrb.gmra.mxu2 %v4123_v29  ;;  %v1409_v36 = vld [vmem:[%s4969_s3 + $0x640] sm:$0xff] }
 0x1ba   :  { %1792 = vmatpush.msra.mxu1 %v1367_v37  ;;  %1809 = vmatpush.msra.mxu2 %v1481_v41  ;;  %v1272_v37 = vld [vmem:[%s4969_s3 + $0x1f8] sm:$0xff]  ;;  %v1362_v41 = vld [vmem:[%s4969_s3 + $0x4c8] sm:$0xff] }
 0x1bb   :  { %1773 = vmatpush.msra.mxu0 %v1265_v39  ;;  %1752 = vmatpush.msrb.mxu3 %v1558_v63  ;;  %v1403_v39 = vld [vmem:[%s4969_s3 + $0x610] sm:$0xff]  ;;  %v1458_v63 = vld [vmem:[%s4969_s3 + $0x7c8] sm:$0xff] }
 0x1bc   :  { %1793 = vmatpush.msra.mxu1 %v1361_v40  ;;  %1810 = vmatpush.msra.mxu2 %v1475_v43  ;;  %v1266_v40 = vld [vmem:[%s4969_s3 + $0x1c8] sm:$0xff]  ;;  %v1504_v43 = vld [vmem:[%s4969_s3 + $0x938] sm:$0xff] }
 0x1bd   :  { %1774 = vmatpush.msra.mxu0 %v1259_v25  ;;  %1753 = vmatpush.msrb.mxu3 %v1552_v6  ;;  %v1260_v25 = vld [vmem:[%s4969_s3 + $0x198] sm:$0xff]  ;;  %v1314_v6 = vld [vmem:[%s4969_s3 + $0x348] sm:$0xff] }
 0x1be   :  { %1794 = vmatpush.msra.mxu1 %v1355_v42  ;;  %1811 = vmatpush.msra.mxu2 %v1469_v32  ;;  %v1356_v42 = vld [vmem:[%s4969_s3 + $0x498] sm:$0xff]  ;;  %v1482_v32 = vld [vmem:[%s4969_s3 + $0x888] sm:$0xff] }
 0x1bf   :  { %1775 = vmatpush.msra.mxu0 %v1253_v27  ;;  %1754 = vmatpush.msrb.mxu3 %v1546_v11  ;;  %v1350_v27 = vld [vmem:[%s4969_s3 + $0x468] sm:$0xff]  ;;  %v1308_v11 = vld [vmem:[%s4969_s3 + $0x318] sm:$0xff] }
 0x1c0   :  { %1795 = vmatpush.msra.mxu1 %v1349_v45  ;;  %1812 = vmatpush.msra.mxu2 %v1463_v50  ;;  %v1498_v45 = vld [vmem:[%s4969_s3 + $0x908] sm:$0xff]  ;;  %v1476_v50 = vld [vmem:[%s4969_s3 + $0x858] sm:$0xff] }
 0x1c1   :  { %1776 = vmatpush.msra.mxu0 %v1247_v46  ;;  %1755 = vmatpush.msrb.mxu3 %v1540_v15  ;;  %v1488_v46 = vld [vmem:[%s4969_s3 + $0x8b8] sm:$0xff]  ;;  %v1303_v15 = vld [vmem:[%s4969_s3 + $0x2f0] sm:$0xff] }
 0x1c2   :  { %1796 = vmatpush.msra.mxu1 %v1343_v47  ;;  %1813 = vmatpush.msra.mxu2 %v1457_v55  ;;  %v1248_v47 = vld [vmem:[%s4969_s3 + $0x138] sm:$0xff]  ;;  %v1230_v55 = vld [vmem:[%s4969_s3 + $0xa8] sm:$0xff] }
 0x1c3   :  { %1777 = vmatpush.msra.mxu0 %v1241_v48  ;;  %1756 = vmatpush.msrb.mxu3 %v1534_v22  ;;  %v1242_v48 = vld [vmem:[%s4969_s3 + $0x108] sm:$0xff]  ;;  %v1393_v22 = vld [vmem:[%s4969_s3 + $0x5c0] sm:$0xff] }
 0x1c4   :  { %1797 = vmatpush.msra.mxu1 %v1337_v26  ;;  %1814 = vmatpush.msra.mxu2 %v1451_v60  ;;  %v1338_v26 = vld [vmem:[%s4969_s3 + $0x408] sm:$0xff]  ;;  %v1224_v60 = vld [vmem:[%s4969_s3 + $0x78] sm:$0xff] }
 0x1c5   :  { %1778 = vmatpush.msra.mxu0 %v1235_v52  ;;  %1757 = vmatpush.msrb.mxu3 %v1528_v1  ;;  %v1236_v52 = vld [vmem:[%s4969_s3 + $0xd8] sm:$0xff] }
 0x1c6   :  { %1798 = vmatpush.msra.mxu1 %v1331_v53  ;;  %1815 = vmatpush.msra.mxu2 %v1445_v0  ;;  %v1332_v53 = vld [vmem:[%s4969_s3 + $0x3d8] sm:$0xff] }
 0x1c7   :  { %1779 = vmatpush.msra.mxu0 %v1229_v56  ;;  %1758 = vmatpush.msrb.mxu3 %v1522_v33  ;;  %v1326_v56 = vld [vmem:[%s4969_s3 + $0x3a8] sm:$0xff]  ;;  %v1285_v33 = vld [vmem:[%s4969_s3 + $0x260] sm:$0xff] }
 0x1c8   :  { %1799 = vmatpush.msra.mxu1 %v1325_v51  ;;  %1816 = vmatpush.msra.mxu2 %v1439_v7  ;;  %v1452_v7 = vld [vmem:[%s4969_s3 + $0x798] sm:$0xff] }
 0x1c9   :  { %1780 = vmatpush.msra.mxu0 %v1223_v61  ;;  %1759 = vmatpush.msrb.mxu3 %v1516_v38  ;;  %v1320_v61 = vld [vmem:[%s4969_s3 + $0x378] sm:$0xff] }
 0x1ca   :  { %1800 = vmatpush.msra.mxu1 %v1319_v62  ;;  %1817 = vmatpush.msra.mxu2 %v1433_v14 }
 0x1cb   :  { %1781 = vmatpush.msra.mxu0 %v1217_v4  ;;  %1760 = vmatpush.msrb.mxu3 %v1510_v21  ;;  %v1416_v21 = vld [vmem:[%s4969_s3 + $0x678] sm:$0xff] }
 0x1cc   :  { %1801 = vmatpush.msra.mxu1 %v1313_v5  ;;  %1818 = vmatpush.msra.mxu2 %v1427_v18  ;;  %v1218_v5 = vld [vmem:[%s4969_s3 + $0x48] sm:$0xff] }
 0x1cd   :  { %1782 = vmatpush.msra.mxu0 %v1211_v8  ;;  %1761 = vmatpush.msrb.mxu3 %v1504_v43  ;;  %v1369_v43 = vld [vmem:[%s4969_s3 + $0x500] sm:$0xff] }
 0x1ce   :  { %1802 = vmatpush.msra.mxu1 %v1307_v10  ;;  %1783 = vmatmul.f32.vlgmr.msra.gmra.mxu0 %v3907_v58  ;;  %v1212_v10 = vld [vmem:[%s4969_s3 + $0x18] sm:$0xff] }
 0x1cf   :  { %1803 = vmatmul.f32.vlgmr.msra.gmra.mxu1 %v3909_v59  ;;  %1847 = vmatpush.msrb.mxu0 %v1302_v12 }
 0x1d0   :  { %1867 = vmatpush.msrb.mxu1 %v1398_v13  ;;  %1819 = vmatpush.msra.mxu2 %v1421_v23  ;;  %v1446_v13 = vld [vmem:[%s4969_s3 + $0x768] sm:$0xff] }
 0x1d1   :  { %1848 = vmatpush.msrb.mxu0 %v1296_v16  ;;  %1762 = vmatpush.msrb.mxu3 %v1498_v45  ;;  %v1399_v16 = vld [vmem:[%s4969_s3 + $0x5f0] sm:$0xff]  ;;  %v1434_v23 = vld [vmem:[%s4969_s3 + $0x708] sm:$0xff] }
 0x1d2   :  { %1868 = vmatpush.msrb.mxu1 %v1392_v17  ;;  %1820 = vmatpush.msra.mxu2 %v1415_v2  ;;  %v1440_v17 = vld [vmem:[%s4969_s3 + $0x738] sm:$0xff]  ;;  %v1387_v2 = vld [vmem:[%s4969_s3 + $0x590] sm:$0xff] }
 0x1d3   :  { %1849 = vmatpush.msrb.mxu0 %v1290_v19  ;;  %v1297_v19 = vld [vmem:[%s4969_s3 + $0x2c0] sm:$0xff]  ;;  %v1363_v45 = vld [vmem:[%s4969_s3 + $0x4d0] sm:$0xff] }
 0x1d4   :  { %1869 = vmatpush.msrb.mxu1 %v1386_v20  ;;  %1821 = vmatpush.msra.mxu2 %v1409_v36 }
 0x1d5   :  { %1850 = vmatpush.msrb.mxu0 %v1284_v24 }
 0x1d6   :  { %1870 = vmatpush.msrb.mxu1 %v1380_v28  ;;  %1822 = vmatpush.msra.mxu2 %v1403_v39  ;;  %v1291_v28 = vld [vmem:[%s4969_s3 + $0x290] sm:$0xff] }
 0x1d7   :  { %1851 = vmatpush.msrb.mxu0 %v1278_v30  ;;  %1823 = vmatmul.f32.vlgmr.msra.gmra.mxu2 %v4123_v29  ;;  %v1428_v30 = vld [vmem:[%s4969_s3 + $0x6d8] sm:$0xff]  ;;  %v1279_v39 = vld [vmem:[%s4969_s3 + $0x230] sm:$0xff] }
 0x1d8   :  { %1871 = vmatpush.msrb.mxu1 %v1374_v31  ;;  %1887 = vmatpush.msrb.mxu2 %v1494_v35  ;;  %v1410_v35 = vld [vmem:[%s4969_s3 + $0x648] sm:$0xff] }
 0x1d9   :  { %1852 = vmatpush.msrb.mxu0 %v1272_v37  ;;  %v1381_v37 = vld [vmem:[%s4969_s3 + $0x560] sm:$0xff] }
 0x1da   :  { %1872 = vmatpush.msrb.mxu1 %v1368_v3  ;;  %1888 = vmatpush.msrb.mxu2 %v1488_v46  ;;  %v1422_v3 = vld [vmem:[%s4969_s3 + $0x6a8] sm:$0xff]  ;;  %v1404_v46 = vld [vmem:[%s4969_s3 + $0x618] sm:$0xff] }
 0x1db   :  { %1853 = vmatpush.msrb.mxu0 %v1266_v40 }
 0x1dc   :  { %1873 = vmatpush.msrb.mxu1 %v1362_v41  ;;  %1889 = vmatpush.msrb.mxu2 %v1482_v32  ;;  %v1375_v41 = vld [vmem:[%s4969_s3 + $0x530] sm:$0xff] }
 0x1dd   :  { %1854 = vmatpush.msrb.mxu0 %v1260_v25  ;;  %v1495_v32 = vld [vmem:[%s4969_s3 + $0x8f0] sm:$0xff] }
 0x1de   :  { %1874 = vmatpush.msrb.mxu1 %v1356_v42  ;;  %v1062_v54 = vpop.f32.mrf.mxu0  ;;  %1890 = vmatpush.msrb.mxu2 %v1476_v50  ;;  %v1273_v42 = vld [vmem:[%s4969_s3 + $0x200] sm:$0xff] }
 0x1df   :  { %1855 = vmatpush.msrb.mxu0 %v1254_v44  ;;  %v1063_v51 = vadd.f32 %v1062_v54, %v539_v49  ;;  %v1082_v62 = vpop.f32.mrf.mxu1  ;;  %v1267_v44 = vld [vmem:[%s4969_s3 + $0x1d0] sm:$0xff]  ;;  %v1489_v50 = vld [vmem:[%s4969_s3 + $0x8c0] sm:$0xff] }
 0x1e0   :  { %1875 = vmatpush.msrb.mxu1 %v1350_v27  ;;  %1891 = vmatpush.msrb.mxu2 %v1470_v34  ;;  %v1589_v27 = vld [vmem:[%s4969_s3 + $0xbe0] sm:$0xff]  ;;  %v1351_v49 = vld [vmem:[%s4969_s3 + $0x470] sm:$0xff] }
 0x1e1   :  { %1856 = vmatpush.msrb.mxu0 %v1248_v47  ;;  %v1083_v0 = vadd.f32 %v1082_v62, %v1063_v51  ;;  %v1261_v47 = vld [vmem:[%s4969_s3 + $0x1a0] sm:$0xff]  ;;  %v1483_v54 = vld [vmem:[%s4969_s3 + $0x890] sm:$0xff] }
 0x1e2   :  { %1876 = vmatpush.msrb.mxu1 %v1344_v9  ;;  %v1102_v4 = vpop.f32.mrf.mxu2  ;;  %1892 = vmatpush.msrb.mxu2 %v1464_v57  ;;  %v1357_v9 = vld [vmem:[%s4969_s3 + $0x4a0] sm:$0xff]  ;;  %v1339_v51 = vld [vmem:[%s4969_s3 + $0x410] sm:$0xff] }
 0x1e3   :  { %1857 = vmatpush.msrb.mxu0 %v1242_v48  ;;  %v1103_v8 = vadd.f32 %v1102_v4, %v1083_v0  ;;  %v1583_v48 = vld [vmem:[%s4969_s3 + $0xbb0] sm:$0xff]  ;;  %v1345_v34 = vld [vmem:[%s4969_s3 + $0x440] sm:$0xff] }
 0x1e4   :  { %1877 = vmatpush.msrb.mxu1 %v1338_v26  ;;  %1893 = vmatpush.msrb.mxu2 %v1458_v63  ;;  %v1255_v26 = vld [vmem:[%s4969_s3 + $0x170] sm:$0xff]  ;;  %v1477_v57 = vld [vmem:[%s4969_s3 + $0x860] sm:$0xff] }
 0x1e5   :  { %1858 = vmatpush.msrb.mxu0 %v1236_v52  ;;  %v1577_v52 = vld [vmem:[%s4969_s3 + $0xb80] sm:$0xff]  ;;  %v1471_v63 = vld [vmem:[%s4969_s3 + $0x830] sm:$0xff] }
 0x1e6   :  { %1878 = vmatpush.msrb.mxu1 %v1332_v53  ;;  %1894 = vmatpush.msrb.mxu2 %v1452_v7  ;;  %v1249_v53 = vld [vmem:[%s4969_s3 + $0x140] sm:$0xff]  ;;  %v1231_v0 = vld [vmem:[%s4969_s3 + $0xb0] sm:$0xff] }
 0x1e7   :  { %1859 = vmatpush.msrb.mxu0 %v1230_v55  ;;  %v1571_v55 = vld [vmem:[%s4969_s3 + $0xb50] sm:$0xff]  ;;  %v1333_v62 = vld [vmem:[%s4969_s3 + $0x3e0] sm:$0xff] }
 0x1e8   :  { %1879 = vmatpush.msrb.mxu1 %v1326_v56  ;;  %1895 = vmatpush.msrb.mxu2 %v1446_v13  ;;  %v1243_v56 = vld [vmem:[%s4969_s3 + $0x110] sm:$0xff]  ;;  %v1225_v7 = vld [vmem:[%s4969_s3 + $0x80] sm:$0xff] }
 0x1e9   :  { %1860 = vmatpush.msrb.mxu0 %v1224_v60  ;;  %v1237_v60 = vld [vmem:[%s4969_s3 + $0xe0] sm:$0xff]  ;;  %v1559_v4 = vld [vmem:[%s4969_s3 + $0xaf0] sm:$0xff] }
 0x1ea   :  { %1880 = vmatpush.msrb.mxu1 %v1320_v61  ;;  %v1122_v12 = vpop.f32.mrf.mxu3  ;;  %v1142_v18 = vpop.f32.mrf.mxu0  ;;  %1896 = vmatpush.msrb.mxu2 %v1440_v17  ;;  %v1565_v61 = vld [vmem:[%s4969_s3 + $0xb20] sm:$0xff]  ;;  %v1547_v13 = vld [vmem:[%s4969_s3 + $0xa90] sm:$0xff] }
 0x1eb   :  { %1861 = vmatpush.msrb.mxu0 %v1218_v5  ;;  %v1123_v14 = vadd.f32 %v1122_v12, %v1103_v8  ;;  %v1327_v5 = vld [vmem:[%s4969_s3 + $0x3b0] sm:$0xff]  ;;  %v1553_v8 = vld [vmem:[%s4969_s3 + $0xac0] sm:$0xff] }
 0x1ec   :  { %1881 = vmatpush.msrb.mxu1 %v1314_v6  ;;  %1897 = vmatpush.msrb.mxu2 %v1434_v23  ;;  %v1465_v6 = vld [vmem:[%s4969_s3 + $0x800] sm:$0xff]  ;;  %v1219_v12 = vld [vmem:[%s4969_s3 + $0x50] sm:$0xff] }
 0x1ed   :  { %1862 = vmatpush.msrb.mxu0 %v1212_v10  ;;  %v1143_v20 = vadd.f32 %v1142_v18, %v1123_v14  ;;  %v1321_v10 = vld [vmem:[%s4969_s3 + $0x380] sm:$0xff]  ;;  %v1315_v14 = vld [vmem:[%s4969_s3 + $0x350] sm:$0xff] }
 0x1ee   :  { %1882 = vmatpush.msrb.mxu1 %v1308_v11  ;;  %1863 = vmatmul.f32.vlgmr.msrb.gmra.mxu0 %v3907_v58  ;;  %v1162_v24 = vpop.f32.mrf.mxu1  ;;  %v1459_v11 = vld [vmem:[%s4969_s3 + $0x7d0] sm:$0xff]  ;;  %v1541_v17 = vld [vmem:[%s4969_s3 + $0xa60] sm:$0xff] }
 0x1ef   :  { %1883 = vmatmul.f32.vlgmr.msrb.gmra.mxu1 %v3909_v59  ;;  %1927 = vmatpush.msra.mxu0 %v1303_v15  ;;  %v1163_v1 = vadd.f32 %v1162_v24, %v1143_v20  ;;  %v1453_v15 = vld [vmem:[%s4969_s3 + $0x7a0] sm:$0xff]  ;;  %v1304_v20 = vld [vmem:[%s4969_s3 + $0x2f8] sm:$0xff]  ;;  %v1535_v23 = vld [vmem:[%s4969_s3 + $0xa30] sm:$0xff] }
 0x1f0   :  { %1947 = vmatpush.msra.mxu1 %v1399_v16  ;;  %1898 = vmatpush.msrb.mxu2 %v1428_v30  ;;  %v1213_v16 = vld [vmem:[%s4969_s3 + $0x20] sm:$0xff]  ;;  %v1435_v30 = vld [vmem:[%s4969_s3 + $0x710] sm:$0xff] }
 0x1f1   :  { %1928 = vmatpush.msra.mxu0 %v1297_v19  ;;  %v1309_v18 = vld [vmem:[%s4969_s3 + $0x320] sm:$0xff]  ;;  %v1447_v19 = vld [vmem:[%s4969_s3 + $0x770] sm:$0xff] }
 0x1f2   :  { %v1182_v31 = vpop.f32.mrf.mxu2  ;;  %1948 = vmatpush.msra.mxu1 %v1393_v22  ;;  %1899 = vmatpush.msrb.mxu2 %v1422_v3  ;;  %v1400_v22 = vld [vmem:[%s4969_s3 + $0x5f8] sm:$0xff]  ;;  %v1441_v24 = vld [vmem:[%s4969_s3 + $0x740] sm:$0xff]  ;;  %v1286_v3 = vld [vmem:[%s4969_s3 + $0x268] sm:$0xff] }
 0x1f3   :  { %v1183_v36 = vadd.f32 %v1182_v31, %v1163_v1  ;;  %1929 = vmatpush.msra.mxu0 %v1291_v28  ;;  %v1298_v28 = vld [vmem:[%s4969_s3 + $0x2c8] sm:$0xff]  ;;  %v1292_v31 = vld [vmem:[%s4969_s3 + $0x298] sm:$0xff] }
 0x1f4   :  { %1949 = vmatpush.msra.mxu1 %v1387_v2  ;;  %1900 = vmatpush.msrb.mxu2 %v1416_v21  ;;  %v1394_v1 = vld [vmem:[%s4969_s3 + $0x5c8] sm:$0xff]  ;;  %v1529_v2 = vld [vmem:[%s4969_s3 + $0xa00] sm:$0xff]  ;;  %v1376_v21 = vld [vmem:[%s4969_s3 + $0x538] sm:$0xff] }
 0x1f5   :  { %v1202_v38 = vpop.f32.mrf.mxu3  ;;  %1930 = vmatpush.msra.mxu0 %v1285_v33  ;;  %v1388_v33 = vld [vmem:[%s4969_s3 + $0x598] sm:$0xff] }
 0x1f6   :  { %v1203_v40 = vadd.f32 %v1202_v38, %v1183_v36  ;;  %1950 = vmatpush.msra.mxu1 %v1381_v37  ;;  %1901 = vmatpush.msrb.mxu2 %v1410_v35  ;;  %v1523_v36 = vld [vmem:[%s4969_s3 + $0x9d0] sm:$0xff]  ;;  %v1429_v37 = vld [vmem:[%s4969_s3 + $0x6e0] sm:$0xff]  ;;  %v1382_v38 = vld [vmem:[%s4969_s3 + $0x568] sm:$0xff] }
 0x1f7   :  { %1931 = vmatpush.msra.mxu0 %v1279_v39  ;;  %v1517_v39 = vld [vmem:[%s4969_s3 + $0x9a0] sm:$0xff]  ;;  %v1274_v35 = vld [vmem:[%s4969_s3 + $0x208] sm:$0xff] }
 0x1f8   :  { %v4484_v25 = vmax.f32 %v1203_v40, 0.0  ;;  %1951 = vmatpush.msra.mxu1 %v1375_v41  ;;  %1902 = vmatpush.msrb.mxu2 %v1404_v46  ;;  %v1423_v40 = vld [vmem:[%s4969_s3 + $0x6b0] sm:$0xff]  ;;  %v1280_v41 = vld [vmem:[%s4969_s3 + $0x238] sm:$0xff] }
 0x1f9   :  { %1932 = vmatpush.msra.mxu0 %v1273_v42  ;;  %1903 = vmatmul.f32.vlgmr.msrb.gmra.mxu2 %v4123_v29  ;;  %v1511_v42 = vld [vmem:[%s4969_s3 + $0x970] sm:$0xff]  ;;  %v1268_v46 = vld [vmem:[%s4969_s3 + $0x1d8] sm:$0xff] }
 0x1fa   :  { %1683 = vmatmul.f32.vlgmr.msra.gmra.mxu3 %v4484_v25  ;;  %1952 = vmatpush.msra.mxu1 %v1369_v43  ;;  %v1417_v43 = vld [vmem:[%s4969_s3 + $0x680] sm:$0xff] }
 0x1fb   :  { %1933 = vmatpush.msra.mxu0 %v1267_v44  ;;  %1827 = vmatpush.msra.mxu3 %v1589_v27  ;;  %v1370_v44 = vld [vmem:[%s4969_s3 + $0x508] sm:$0xff]  ;;  %v1505_v27 = vld [vmem:[%s4969_s3 + $0x940] sm:$0xff] }
 0x1fc   :  { %1953 = vmatpush.msra.mxu1 %v1363_v45  ;;  %1967 = vmatpush.msra.mxu2 %v1495_v32  ;;  %v1411_v45 = vld [vmem:[%s4969_s3 + $0x650] sm:$0xff]  ;;  %v1405_v32 = vld [vmem:[%s4969_s3 + $0x620] sm:$0xff] }
 0x1fd   :  { %1934 = vmatpush.msra.mxu0 %v1261_v47  ;;  %1828 = vmatpush.msra.mxu3 %v1583_v48  ;;  %v1364_v47 = vld [vmem:[%s4969_s3 + $0x4d8] sm:$0xff]  ;;  %v1590_v48 = vld [vmem:[%s4969_s3 + $0xbe8] sm:$0xff] }
 0x1fe   :  { %1954 = vmatpush.msra.mxu1 %v1357_v9  ;;  %1968 = vmatpush.msra.mxu2 %v1489_v50  ;;  %v1499_v9 = vld [vmem:[%s4969_s3 + $0x910] sm:$0xff]  ;;  %v1496_v50 = vld [vmem:[%s4969_s3 + $0x8f8] sm:$0xff] }
 0x1ff   :  { %1935 = vmatpush.msra.mxu0 %v1255_v26  ;;  %1829 = vmatpush.msra.mxu3 %v1577_v52  ;;  %v1262_v26 = vld [vmem:[%s4969_s3 + $0x1a8] sm:$0xff]  ;;  %v1584_v52 = vld [vmem:[%s4969_s3 + $0xbb8] sm:$0xff] }
 0x200   :  { %1955 = vmatpush.msra.mxu1 %v1351_v49  ;;  %1969 = vmatpush.msra.mxu2 %v1483_v54  ;;  %v1358_v49 = vld [vmem:[%s4969_s3 + $0x4a8] sm:$0xff] }
 0x201   :  { %1936 = vmatpush.msra.mxu0 %v1249_v53  ;;  %1830 = vmatpush.msra.mxu3 %v1571_v55  ;;  %v1256_v53 = vld [vmem:[%s4969_s3 + $0x178] sm:$0xff]  ;;  %v1490_v54 = vld [vmem:[%s4969_s3 + $0x8c8] sm:$0xff] }
 0x202   :  { %1956 = vmatpush.msra.mxu1 %v1345_v34  ;;  %1970 = vmatpush.msra.mxu2 %v1477_v57  ;;  %v1352_v34 = vld [vmem:[%s4969_s3 + $0x478] sm:$0xff]  ;;  %v1578_v55 = vld [vmem:[%s4969_s3 + $0xb88] sm:$0xff] }
 0x203   :  { %1937 = vmatpush.msra.mxu0 %v1243_v56  ;;  %1763 = vmatmul.f32.vlgmr.msrb.gmra.mxu3 %v4484_v25  ;;  %v1250_v56 = vld [vmem:[%s4969_s3 + $0x148] sm:$0xff]  ;;  %v1484_v57 = vld [vmem:[%s4969_s3 + $0x898] sm:$0xff] }
 0x204   :  { %1957 = vmatpush.msra.mxu1 %v1339_v51  ;;  %1831 = vmatpush.msra.mxu3 %v1565_v61  ;;  %v1346_v51 = vld [vmem:[%s4969_s3 + $0x448] sm:$0xff]  ;;  %v1244_v61 = vld [vmem:[%s4969_s3 + $0x118] sm:$0xff] }
 0x205   :  { %1938 = vmatpush.msra.mxu0 %v1237_v60  ;;  %1971 = vmatpush.msra.mxu2 %v1471_v63  ;;  %v1572_v60 = vld [vmem:[%s4969_s3 + $0xb58] sm:$0xff]  ;;  %v1478_v63 = vld [vmem:[%s4969_s3 + $0x868] sm:$0xff] }
 0x206   :  { %1958 = vmatpush.msra.mxu1 %v1333_v62  ;;  %1832 = vmatpush.msra.mxu3 %v1559_v4  ;;  %v1340_v62 = vld [vmem:[%s4969_s3 + $0x418] sm:$0xff]  ;;  %v1238_v4 = vld [vmem:[%s4969_s3 + $0xe8] sm:$0xff] }
 0x207   :  { %1939 = vmatpush.msra.mxu0 %v1231_v0  ;;  %1972 = vmatpush.msra.mxu2 %v1465_v6  ;;  %v1566_v0 = vld [vmem:[%s4969_s3 + $0xb28] sm:$0xff]  ;;  %v1472_v6 = vld [vmem:[%s4969_s3 + $0x838] sm:$0xff] }
 0x208   :  { %1959 = vmatpush.msra.mxu1 %v1327_v5  ;;  %1833 = vmatpush.msra.mxu3 %v1553_v8  ;;  %v1334_v5 = vld [vmem:[%s4969_s3 + $0x3e8] sm:$0xff]  ;;  %v1232_v8 = vld [vmem:[%s4969_s3 + $0xb8] sm:$0xff] }
 0x209   :  { %1940 = vmatpush.msra.mxu0 %v1225_v7  ;;  %1973 = vmatpush.msra.mxu2 %v1459_v11  ;;  %v1560_v7 = vld [vmem:[%s4969_s3 + $0xaf8] sm:$0xff]  ;;  %v1466_v11 = vld [vmem:[%s4969_s3 + $0x808] sm:$0xff] }
 0x20a   :  { %1960 = vmatpush.msra.mxu1 %v1321_v10  ;;  %1834 = vmatpush.msra.mxu3 %v1547_v13  ;;  %v1328_v10 = vld [vmem:[%s4969_s3 + $0x3b8] sm:$0xff]  ;;  %v1226_v13 = vld [vmem:[%s4969_s3 + $0x88] sm:$0xff] }
 0x20b   :  { %1941 = vmatpush.msra.mxu0 %v1219_v12  ;;  %1974 = vmatpush.msra.mxu2 %v1453_v15  ;;  %v1554_v12 = vld [vmem:[%s4969_s3 + $0xac8] sm:$0xff]  ;;  %v1460_v15 = vld [vmem:[%s4969_s3 + $0x7d8] sm:$0xff] }
 0x20c   :  { %1961 = vmatpush.msra.mxu1 %v1315_v14  ;;  %1835 = vmatpush.msra.mxu3 %v1541_v17  ;;  %v1322_v14 = vld [vmem:[%s4969_s3 + $0x388] sm:$0xff]  ;;  %v1220_v17 = vld [vmem:[%s4969_s3 + $0x58] sm:$0xff] }
 0x20d   :  { %1942 = vmatpush.msra.mxu0 %v1213_v16  ;;  %1975 = vmatpush.msra.mxu2 %v1447_v19  ;;  %v1548_v16 = vld [vmem:[%s4969_s3 + $0xa98] sm:$0xff]  ;;  %v1454_v19 = vld [vmem:[%s4969_s3 + $0x7a8] sm:$0xff] }
 0x20e   :  { %1962 = vmatpush.msra.mxu1 %v1309_v18  ;;  %1943 = vmatmul.f32.vlgmr.msra.gmra.mxu0 %v3907_v58  ;;  %v1316_v18 = vld [vmem:[%s4969_s3 + $0x358] sm:$0xff] }
 0x20f   :  { %1963 = vmatmul.f32.vlgmr.msra.gmra.mxu1 %v3909_v59  ;;  %2007 = vmatpush.msrb.mxu0 %v1304_v20  ;;  %v1542_v20 = vld [vmem:[%s4969_s3 + $0xa68] sm:$0xff] }
 0x210   :  { %2027 = vmatpush.msrb.mxu1 %v1400_v22  ;;  %1836 = vmatpush.msra.mxu3 %v1535_v23  ;;  %v1214_v22 = vld [vmem:[%s4969_s3 + $0x28] sm:$0xff] }
 0x211   :  { %1976 = vmatpush.msra.mxu2 %v1441_v24  ;;  %2008 = vmatpush.msrb.mxu0 %v1298_v28  ;;  %v1310_v23 = vld [vmem:[%s4969_s3 + $0x328] sm:$0xff]  ;;  %v1448_v24 = vld [vmem:[%s4969_s3 + $0x778] sm:$0xff] }
 0x212   :  { %2028 = vmatpush.msrb.mxu1 %v1394_v1  ;;  %1837 = vmatpush.msra.mxu3 %v1529_v2  ;;  %v1536_v28 = vld [vmem:[%s4969_s3 + $0xa38] sm:$0xff]  ;;  %v1442_v1 = vld [vmem:[%s4969_s3 + $0x748] sm:$0xff] }
 0x213   :  { %1977 = vmatpush.msra.mxu2 %v1435_v30  ;;  %2009 = vmatpush.msrb.mxu0 %v1292_v31  ;;  %v1530_v2 = vld [vmem:[%s4969_s3 + $0xa08] sm:$0xff]  ;;  %v1436_v30 = vld [vmem:[%s4969_s3 + $0x718] sm:$0xff] }
 0x214   :  { %2029 = vmatpush.msrb.mxu1 %v1388_v33  ;;  %1838 = vmatpush.msra.mxu3 %v1523_v36  ;;  %v1524_v31 = vld [vmem:[%s4969_s3 + $0x9d8] sm:$0xff] }
 0x215   :  { %1978 = vmatpush.msra.mxu2 %v1429_v37  ;;  %2010 = vmatpush.msrb.mxu0 %v1286_v3  ;;  %v1424_v33 = vld [vmem:[%s4969_s3 + $0x6b8] sm:$0xff]  ;;  %v1418_v37 = vld [vmem:[%s4969_s3 + $0x688] sm:$0xff] }
 0x216   :  { %2030 = vmatpush.msrb.mxu1 %v1382_v38  ;;  %1839 = vmatpush.msra.mxu3 %v1517_v39  ;;  %v1512_v36 = vld [vmem:[%s4969_s3 + $0x978] sm:$0xff]  ;;  %v1506_v3 = vld [vmem:[%s4969_s3 + $0x948] sm:$0xff] }
 0x217   :  { %1979 = vmatpush.msra.mxu2 %v1423_v40  ;;  %2011 = vmatpush.msrb.mxu0 %v1280_v41  ;;  %v1412_v38 = vld [vmem:[%s4969_s3 + $0x658] sm:$0xff]  ;;  %v1406_v40 = vld [vmem:[%s4969_s3 + $0x628] sm:$0xff]  ;;  %v1591_v41 = vld [vmem:[%s4969_s3 + $0xbf0] sm:$0xff] }
 0x218   :  { %2031 = vmatpush.msrb.mxu1 %v1376_v21  ;;  %1840 = vmatpush.msra.mxu3 %v1511_v42  ;;  %v1500_v39 = vld [vmem:[%s4969_s3 + $0x918] sm:$0xff]  ;;  %v1585_v21 = vld [vmem:[%s4969_s3 + $0xbc0] sm:$0xff]  ;;  %v1579_v42 = vld [vmem:[%s4969_s3 + $0xb90] sm:$0xff] }
 0x219   :  { %1980 = vmatpush.msra.mxu2 %v1417_v43  ;;  %2012 = vmatpush.msrb.mxu0 %v1274_v35  ;;  %v1573_v43 = vld [vmem:[%s4969_s3 + $0xb60] sm:$0xff]  ;;  %v1567_v35 = vld [vmem:[%s4969_s3 + $0xb30] sm:$0xff] }
 0x21a   :  { %2032 = vmatpush.msrb.mxu1 %v1370_v44  ;;  %1841 = vmatpush.msra.mxu3 %v1505_v27  ;;  %v1561_v44 = vld [vmem:[%s4969_s3 + $0xb00] sm:$0xff] }
 0x21b   :  { %1981 = vmatpush.msra.mxu2 %v1411_v45  ;;  %2013 = vmatpush.msrb.mxu0 %v1268_v46  ;;  %v1549_v27 = vld [vmem:[%s4969_s3 + $0xaa0] sm:$0xff]  ;;  %v1543_v45 = vld [vmem:[%s4969_s3 + $0xa70] sm:$0xff] }
 0x21c   :  { %2033 = vmatpush.msrb.mxu1 %v1364_v47  ;;  %1842 = vmatpush.msra.mxu3 %v1499_v9  ;;  %v1537_v46 = vld [vmem:[%s4969_s3 + $0xa40] sm:$0xff]  ;;  %v1531_v47 = vld [vmem:[%s4969_s3 + $0xa10] sm:$0xff] }
 0x21d   :  { %1982 = vmatpush.msra.mxu2 %v1405_v32  ;;  %1843 = vmatmul.f32.vlgmr.msra.gmra.mxu3 %v4484_v25  ;;  %v1525_v9 = vld [vmem:[%s4969_s3 + $0x9e0] sm:$0xff]  ;;  %v1519_v32 = vld [vmem:[%s4969_s3 + $0x9b0] sm:$0xff] }
 0x21e   :  { %1907 = vmatpush.msrb.mxu3 %v1590_v48  ;;  %1983 = vmatmul.f32.vlgmr.msra.gmra.mxu2 %v4123_v29  ;;  %v1513_v48 = vld [vmem:[%s4969_s3 + $0x980] sm:$0xff] }
 0x21f   :  { %2014 = vmatpush.msrb.mxu0 %v1262_v26  ;;  %2034 = vmatpush.msrb.mxu1 %v1358_v49  ;;  %v1507_v26 = vld [vmem:[%s4969_s3 + $0x950] sm:$0xff]  ;;  %v1501_v49 = vld [vmem:[%s4969_s3 + $0x920] sm:$0xff] }
 0x220   :  { %2047 = vmatpush.msrb.mxu2 %v1496_v50  ;;  %1908 = vmatpush.msrb.mxu3 %v1584_v52  ;;  %v1592_v50 = vld [vmem:[%s4969_s3 + $0xbf8] sm:$0xff]  ;;  %v1586_v52 = vld [vmem:[%s4969_s3 + $0xbc8] sm:$0xff] }
 0x221   :  { %2015 = vmatpush.msrb.mxu0 %v1256_v53  ;;  %2035 = vmatpush.msrb.mxu1 %v1352_v34  ;;  %v1580_v53 = vld [vmem:[%s4969_s3 + $0xb98] sm:$0xff]  ;;  %v1574_v34 = vld [vmem:[%s4969_s3 + $0xb68] sm:$0xff] }
 0x222   :  { %2048 = vmatpush.msrb.mxu2 %v1490_v54  ;;  %1909 = vmatpush.msrb.mxu3 %v1578_v55  ;;  %v1568_v54 = vld [vmem:[%s4969_s3 + $0xb38] sm:$0xff]  ;;  %v1562_v55 = vld [vmem:[%s4969_s3 + $0xb08] sm:$0xff] }
 0x223   :  { %2016 = vmatpush.msrb.mxu0 %v1250_v56  ;;  %2036 = vmatpush.msrb.mxu1 %v1346_v51  ;;  %v1556_v56 = vld [vmem:[%s4969_s3 + $0xad8] sm:$0xff]  ;;  %v1550_v51 = vld [vmem:[%s4969_s3 + $0xaa8] sm:$0xff] }
 0x224   :  { %2049 = vmatpush.msrb.mxu2 %v1484_v57  ;;  %1910 = vmatpush.msrb.mxu3 %v1572_v60  ;;  %v1544_v57 = vld [vmem:[%s4969_s3 + $0xa78] sm:$0xff]  ;;  %v1538_v60 = vld [vmem:[%s4969_s3 + $0xa48] sm:$0xff] }
 0x225   :  { %2017 = vmatpush.msrb.mxu0 %v1244_v61  ;;  %2037 = vmatpush.msrb.mxu1 %v1340_v62  ;;  %v1532_v61 = vld [vmem:[%s4969_s3 + $0xa18] sm:$0xff]  ;;  %v1526_v62 = vld [vmem:[%s4969_s3 + $0x9e8] sm:$0xff] }
 0x226   :  { %2050 = vmatpush.msrb.mxu2 %v1478_v63  ;;  %1911 = vmatpush.msrb.mxu3 %v1566_v0  ;;  %v1520_v63 = vld [vmem:[%s4969_s3 + $0x9b8] sm:$0xff]  ;;  %v1514_v0 = vld [vmem:[%s4969_s3 + $0x988] sm:$0xff] }
 0x227   :  { %2018 = vmatpush.msrb.mxu0 %v1238_v4  ;;  %2038 = vmatpush.msrb.mxu1 %v1334_v5  ;;  %v1508_v4 = vld [vmem:[%s4969_s3 + $0x958] sm:$0xff]  ;;  %v1502_v5 = vld [vmem:[%s4969_s3 + $0x928] sm:$0xff] }
 0x228   :  { %2051 = vmatpush.msrb.mxu2 %v1472_v6  ;;  %1912 = vmatpush.msrb.mxu3 %v1560_v7  ;;  %v1624_v6 = vpop.f32.mrf.mxu0 }
 0x229   :  { %2019 = vmatpush.msrb.mxu0 %v1232_v8  ;;  %2039 = vmatpush.msrb.mxu1 %v1328_v10  ;;  %v1644_v8 = vpop.f32.mrf.mxu1 }
 0x22a   :  { %2052 = vmatpush.msrb.mxu2 %v1466_v11  ;;  %1913 = vmatpush.msrb.mxu3 %v1554_v12 }
 0x22b   :  { %2020 = vmatpush.msrb.mxu0 %v1226_v13  ;;  %2040 = vmatpush.msrb.mxu1 %v1322_v14 }
 0x22c   :  { %2053 = vmatpush.msrb.mxu2 %v1460_v15  ;;  %1914 = vmatpush.msrb.mxu3 %v1548_v16  ;;  %v1593_v15 = vld [vmem:[%s4970_s4] sm:$0x3f] }
 0x22d   :  { %2021 = vmatpush.msrb.mxu0 %v1220_v17  ;;  %2041 = vmatpush.msrb.mxu1 %v1316_v18  ;;  %v1596_v17 = vperm.slane %v1593_v15, 1  ;;  %v1597_v18 = vperm.slane %v1593_v15, 2 }
 0x22e   :  { %2054 = vmatpush.msrb.mxu2 %v1454_v19  ;;  %1915 = vmatpush.msrb.mxu3 %v1542_v20 }
 0x22f   :  { %2022 = vmatpush.msrb.mxu0 %v1214_v22  ;;  %2042 = vmatpush.msrb.mxu1 %v1310_v23  ;;  %v1598_v23 = vperm.slane %v1593_v15, 3 }
 0x230   :  { %2055 = vmatpush.msrb.mxu2 %v1448_v24  ;;  %2023 = vmatmul.f32.vlgmr.msrb.gmra.mxu0 %v3907_v58  ;;  %v1430_v58 = vld [vmem:[%s4969_s3 + $0x6e8] sm:$0xff]  ;;  %v1704_v10 = vpop.f32.mrf.mxu0  ;;  %v1595_v24 = vperm.slane %v1593_v15, 0 }
 0x231   :  { %2043 = vmatmul.f32.vlgmr.msrb.gmra.mxu1 %v3909_v59  ;;  %1916 = vmatpush.msrb.mxu3 %v1536_v28  ;;  %v1518_v59 = vld [vmem:[%s4969_s3 + $0x9a8] sm:$0xff]  ;;  %v1724_v12 = vpop.f32.mrf.mxu1  ;;  %v1705_v22 = vadd.f32 %v1704_v10, %v1596_v17 }
 0x232   :  { %2056 = vmatpush.msrb.mxu2 %v1442_v1 }
 0x233   :  { %1917 = vmatpush.msrb.mxu3 %v1530_v2  ;;  %v1725_v2 = vadd.f32 %v1724_v12, %v1705_v22 }
 0x234   :  { %2057 = vmatpush.msrb.mxu2 %v1436_v30  ;;  %v1664_v7 = vpop.f32.mrf.mxu2 }
 0x235   :  { %1918 = vmatpush.msrb.mxu3 %v1524_v31  ;;  %v1625_v31 = vadd.f32 %v1624_v6, %v1595_v24 }
 0x236   :  { %2058 = vmatpush.msrb.mxu2 %v1430_v58 }
 0x237   :  { %1919 = vmatpush.msrb.mxu3 %v1518_v59 }
 0x238   :  { %2059 = vmatpush.msrb.mxu2 %v1424_v33 }
 0x239   :  { %1920 = vmatpush.msrb.mxu3 %v1512_v36 }
 0x23a   :  { %2060 = vmatpush.msrb.mxu2 %v1418_v37 }
 0x23b   :  { %1921 = vmatpush.msrb.mxu3 %v1506_v3 }
 0x23c   :  { %2061 = vmatpush.msrb.mxu2 %v1412_v38  ;;  %v1744_v13 = vpop.f32.mrf.mxu2 }
 0x23d   :  { %1922 = vmatpush.msrb.mxu3 %v1500_v39  ;;  %v1745_v58 = vadd.f32 %v1744_v13, %v1725_v2  ;;  %v1645_v39 = vadd.f32 %v1644_v8, %v1625_v31 }
 0x23e   :  { %2062 = vmatpush.msrb.mxu2 %v1406_v40  ;;  %1923 = vmatmul.f32.vlgmr.msrb.gmra.mxu3 %v4484_v25 }
 0x23f   :  { %1987 = vmatpush.msra.mxu3 %v1591_v41  ;;  %2063 = vmatmul.f32.vlgmr.msrb.gmra.mxu2 %v4123_v29  ;;  %v1555_v29 = vld [vmem:[%s4969_s3 + $0xad0] sm:$0xff] }
 0x241   :  { %1988 = vmatpush.msra.mxu3 %v1585_v21 }
 0x243   :  { %1989 = vmatpush.msra.mxu3 %v1579_v42  ;;  %v1665_v42 = vadd.f32 %v1664_v7, %v1645_v39 }
 0x245   :  { %1990 = vmatpush.msra.mxu3 %v1573_v43 }
 0x247   :  { %1991 = vmatpush.msra.mxu3 %v1567_v35 }
 0x249   :  { %1992 = vmatpush.msra.mxu3 %v1561_v44 }
 0x24b   :  { %1993 = vmatpush.msra.mxu3 %v1555_v29  ;;  %v1784_v14 = vpop.f32.mrf.mxu0 }
 0x24c   :  { %v1804_v19 = vpop.f32.mrf.mxu1  ;;  %v1785_v28 = vadd.f32 %v1784_v14, %v1597_v18 }
 0x24d   :  { %1994 = vmatpush.msra.mxu3 %v1549_v27 }
 0x24e   :  { %v1805_v59 = vadd.f32 %v1804_v19, %v1785_v28 }
 0x24f   :  { %1995 = vmatpush.msra.mxu3 %v1543_v45 }
 0x251   :  { %1996 = vmatpush.msra.mxu3 %v1537_v46 }
 0x253   :  { %1997 = vmatpush.msra.mxu3 %v1531_v47 }
 0x255   :  { %1998 = vmatpush.msra.mxu3 %v1525_v9 }
 0x257   :  { %1999 = vmatpush.msra.mxu3 %v1519_v32 }
 0x259   :  { %2000 = vmatpush.msra.mxu3 %v1513_v48 }
 0x25a   :  { %v1824_v20 = vpop.f32.mrf.mxu2 }
 0x25b   :  { %2001 = vmatpush.msra.mxu3 %v1507_v26  ;;  %v1825_v37 = vadd.f32 %v1824_v20, %v1805_v59  ;;  %v1600_v26 = vperm.slane %v1593_v15, 5 }
 0x25d   :  { %2002 = vmatpush.msra.mxu3 %v1501_v49 }
 0x25e   :  { %2003 = vmatmul.f32.vlgmr.msra.gmra.mxu3 %v4484_v25 }
 0x25f   :  { %2067 = vmatpush.msrb.mxu3 %v1592_v50  ;;  %v1599_v50 = vperm.slane %v1593_v15, 4 }
 0x261   :  { %2068 = vmatpush.msrb.mxu3 %v1586_v52 }
 0x263   :  { %2069 = vmatpush.msrb.mxu3 %v1580_v53 }
 0x265   :  { %2070 = vmatpush.msrb.mxu3 %v1574_v34 }
 0x267   :  { %2071 = vmatpush.msrb.mxu3 %v1568_v54 }
 0x269   :  { %2072 = vmatpush.msrb.mxu3 %v1562_v55 }
 0x26b   :  { %2073 = vmatpush.msrb.mxu3 %v1556_v56 }
 0x26c   :  { %v1884_v33 = vpop.f32.mrf.mxu1 }
 0x26d   :  { %2074 = vmatpush.msrb.mxu3 %v1550_v51 }
 0x26f   :  { %2075 = vmatpush.msrb.mxu3 %v1544_v57 }
 0x271   :  { %2076 = vmatpush.msrb.mxu3 %v1538_v60 }
 0x273   :  { %2077 = vmatpush.msrb.mxu3 %v1532_v61 }
 0x275   :  { %2078 = vmatpush.msrb.mxu3 %v1526_v62 }
 0x277   :  { %2079 = vmatpush.msrb.mxu3 %v1520_v63 }
 0x279   :  { %2080 = vmatpush.msrb.mxu3 %v1514_v0 }
 0x27b   :  { %2081 = vmatpush.msrb.mxu3 %v1508_v4 }
 0x27c   :  { %v1904_v36 = vpop.f32.mrf.mxu2 }
 0x27d   :  { %2082 = vmatpush.msrb.mxu3 %v1502_v5  ;;  %v1684_v11 = vpop.f32.mrf.mxu3 }
 0x27e   :  { %2083 = vmatmul.f32.vlgmr.msrb.gmra.mxu3 %v4484_v25  ;;  %v1864_v25 = vpop.f32.mrf.mxu0  ;;  %v1685_v44 = vadd.f32 %v1684_v11, %v1665_v42 }
 0x27f   :  { %v1865_v30 = vadd.f32 %v1864_v25, %v1598_v23 }
 0x281   :  { %v1885_v3 = vadd.f32 %v1884_v33, %v1865_v30 }
 0x283   :  { %v1905_v40 = vadd.f32 %v1904_v36, %v1885_v3 }
 0x286   :  { %v1764_v16 = vpop.f32.mrf.mxu3 }
 0x287   :  { %v1765_v38 = vadd.f32 %v1764_v16, %v1745_v58 }
 0x289   :  { %v2093_v43 = vrot.slane %v1765_v38, 6 }
 0x28b   :  { %v2098_v45 = vsel %vm2097_vm0, %v1685_v44, %v2093_v43  ;;  %v1944_v9 = vpop.f32.mrf.mxu0 }
 0x28c   :  { %v1964_v32 = vpop.f32.mrf.mxu1  ;;  %v1945_v34 = vadd.f32 %v1944_v9, %v1599_v50 }
 0x28e   :  { %v1965_v51 = vadd.f32 %v1964_v32, %v1945_v34 }
 0x2a0   :  { %v1844_v1 = vpop.f32.mrf.mxu3 }
 0x2a1   :  { %v1845_v41 = vadd.f32 %v1844_v1, %v1825_v37  ;;  %v1984_v48 = vpop.f32.mrf.mxu2 }
 0x2a2   :  { %v1985_v61 = vadd.f32 %v1984_v48, %v1965_v51 }
 0x2a3   :  { %v2094_v29 = vrot.slane %v1845_v41, 4 }
 0x2ad   :  { %v2024_v49 = vpop.f32.mrf.mxu0 }
 0x2ae   :  { %v2025_v53 = vadd.f32 %v2024_v49, %v1600_v26  ;;  %v2044_v54 = vpop.f32.mrf.mxu1 }
 0x2b0   :  { %v2045_v56 = vadd.f32 %v2044_v54, %v2025_v53 }
 0x2c1   :  { %v1924_v21 = vpop.f32.mrf.mxu3 }
 0x2c2   :  { %v1925_v35 = vadd.f32 %v1924_v21, %v1905_v40  ;;  %v2064_v55 = vpop.f32.mrf.mxu2 }
 0x2c3   :  { %v2065_v57 = vadd.f32 %v2064_v55, %v2045_v56 }
 0x2c4   :  { %v2095_v27 = vrot.slane %v1925_v35, 2 }
 0x2c6   :  { %v2100_v46 = vsel %vm2099_vm1, %v2094_v29, %v2095_v27 }
 0x2c7   :  { %v2102_v47 = vsel %vm2101_vm2, %v2098_v45, %v2100_v46 }
 0x2c8   :  { %2106 = vst [vmem:[%s4971_s5] sm:$0xff] %v2102_v47 }
 0x2e1   :  { %v2004_v52 = vpop.f32.mrf.mxu3 }
 0x2e2   :  { %v2005_v63 = vadd.f32 %v2004_v52, %v1985_v61 }
 0x301   :  { %v2084_v60 = vpop.f32.mrf.mxu3 }
 0x302   :  { %v2085_v62 = vadd.f32 %v2084_v60, %v2065_v57 }
 0x304   :  { %v2096_v0 = vrot.slane %v2085_v62, 6 }
 0x306   :  { %v2103_v4 = vsel %vm2097_vm0, %v2005_v63, %v2096_v0 }
 0x307   :  { %2107 = vst [vmem:[%s4971_s5 + $0x8] sm:$0xf] %v2103_v4 }

</bundles_post_ra>
